<compile_context>
chip_gen: v7x
topology: tpu7x:2x2x1
jax: 0.10.0
libtpu: 0.0.40
codegen_flags: <defaults>
</compile_context>

<pallas_src>
import functools

import numpy as np
import jax
import jax.numpy as jnp
from jax.experimental import pallas as pl
from jax.experimental.pallas import tpu as pltpu

FEAT_DIM = 32            # in_dim of BidirectionalTreeLSTM
OUT_DIM = 64             # out_dim; each direction uses OUT_DIM // 2
H_DIM = OUT_DIM // 2
PASS_ROOT = False        # module default

_PREC = jax.lax.Precision.HIGHEST   # keep fp32 semantics (Mosaic dot: DEFAULT/HIGHEST only)


# ---------------------------------------------------------------------------
# Fused Pallas kernel: one grid step == one tree level, both directions.
# All refs are VMEM-resident full arrays; per-level rows are sliced dynamically.
# ---------------------------------------------------------------------------
def _fused_level_kernel(
        # forward-direction (leaves -> root) inputs
        f_feat_ref, f_left_ref, f_right_ref, f_valid_ref,   # [NS,F],[NS,1],[NS,1],[NS,1]
        w_fx_ref, w_fhl_ref, w_fhr_ref, b_f_ref,            # [F,7H],[H,7H],[H,7H],[1,7H]
        # backward-direction (root -> leaves) inputs
        b_feat_ref, b_parent_ref, b_valid_ref,               # [NS,F],[NS,1],[NS,1]
        w_bx_ref, w_bh_ref, b_b_ref,                         # [F,6H],[H,6H],[1,6H]
        # outputs (VMEM-resident, written back once)
        f_out_ref, b_out_ref,                                # [NS,H], [NS,H]
        # scratch: packed [c | h] carries
        state_f, state_b,                                    # [NS,2H], [NS,2H]
        *, b_pad, h_dim, n_state):
    lvl = pl.program_id(0)
    H = h_dim
    row0 = pl.multiple_of(lvl * b_pad, b_pad)
    rows = pl.ds(row0, b_pad)

    @pl.when(lvl == 0)
    def _init():
        state_f[...] = jnp.zeros_like(state_f)
        state_b[...] = jnp.zeros_like(state_b)

    iota_k = jax.lax.broadcasted_iota(jnp.int32, (b_pad, n_state), 1)

    def gather_ch(idx_ref, state_ref):
        # one-hot MXU gather; index -1 matches nothing -> zero row (safe).
        onehot = (idx_ref[rows, :] == iota_k).astype(jnp.float32)   # (b_pad, n_state)
        return jnp.dot(onehot, state_ref[...],
                       preferred_element_type=jnp.float32, precision=_PREC)

    def dot(a, w_ref):
        return jnp.dot(a, w_ref[...], preferred_element_type=jnp.float32, precision=_PREC)

    # ---------------- forward direction (leaves -> root) ----------------
    lch = gather_ch(f_left_ref, state_f)      # (b_pad, 2H) = [left_c  | left_h ]
    rch = gather_ch(f_right_ref, state_f)     # (b_pad, 2H) = [right_c | right_h]
    z = (dot(f_feat_ref[rows, :], w_fx_ref)
         + dot(lch[:, H:], w_fhl_ref)
         + dot(rch[:, H:], w_fhr_ref)
         + b_f_ref[...])                      # columns: [i|o|f_l|f_r|r | u | px]
    sg = jax.nn.sigmoid(z[:, :5 * H])         # all sigmoid gates in one contiguous slice
    u = jnp.tanh(z[:, 5 * H:6 * H])
    px = z[:, 6 * H:]
    i, o = sg[:, :H], sg[:, H:2 * H]
    f_l, f_r, r = sg[:, 2 * H:3 * H], sg[:, 3 * H:4 * H], sg[:, 4 * H:5 * H]
    c = i * u + f_l * lch[:, :H] + f_r * rch[:, :H]
    h = r * (o * jnp.tanh(c)) + (1.0 - r) * px
    v = f_valid_ref[rows, :]                  # (b_pad, 1); mask padded slots
    c = c * v
    h = h * v
    f_out_ref[rows, :] = h
    state_f[rows, :] = jnp.concatenate([c, h], axis=1)

    # ---------------- backward direction (root -> leaves) ----------------
    pch = gather_ch(b_parent_ref, state_b)    # (b_pad, 2H) = [parent_c | parent_h]
    z = (dot(b_feat_ref[rows, :], w_bx_ref)
         + dot(pch[:, H:], w_bh_ref)
         + b_b_ref[...])                      # columns: [i|o|f|r | u | px]
    sg = jax.nn.sigmoid(z[:, :4 * H])         # 4*32 = 128 lanes -> one full vreg sigmoid
    u = jnp.tanh(z[:, 4 * H:5 * H])
    px = z[:, 5 * H:]
    i, o = sg[:, :H], sg[:, H:2 * H]
    f, r = sg[:, 2 * H:3 * H], sg[:, 3 * H:4 * H]
    c = i * u + f * pch[:, :H]
    h = r * (o * jnp.tanh(c)) + (1.0 - r) * px
    v = b_valid_ref[rows, :]
    c = c * v
    h = h * v
    b_out_ref[rows, :] = h
    state_b[rows, :] = jnp.concatenate([c, h], axis=1)


# ---------------------------------------------------------------------------
# pallas_call wrapper (single fused call for both directions).
# ---------------------------------------------------------------------------
def _resident_spec(shape):
    zeros = (0,) * len(shape)
    return pl.BlockSpec(shape, lambda l: zeros)


def _run_fused(feat_f, left, right, valid_f, w_fx, w_fhl, w_fhr, b_f,
               feat_b, parent, valid_b, w_bx, w_bh, b_b):
    nl, b_pad, feat_dim = feat_f.shape
    h_dim = w_bh.shape[0]
    n_state = nl * b_pad

    def flat(a):
        return a.reshape((n_state,) + a.shape[2:])

    args = (flat(feat_f), flat(left), flat(right), flat(valid_f),
            w_fx, w_fhl, w_fhr, b_f,
            flat(feat_b), flat(parent), flat(valid_b),
            w_bx, w_bh, b_b)

    kern = functools.partial(_fused_level_kernel,
                             b_pad=b_pad, h_dim=h_dim, n_state=n_state)
    out_shape = (jax.ShapeDtypeStruct((n_state, h_dim), jnp.float32),
                 jax.ShapeDtypeStruct((n_state, h_dim), jnp.float32))
    return pl.pallas_call(
        kern,
        grid=(nl,),
        in_specs=[_resident_spec(a.shape) for a in args],
        out_specs=(_resident_spec((n_state, h_dim)),
                   _resident_spec((n_state, h_dim))),
        out_shape=out_shape,
        scratch_shapes=[
            pltpu.VMEM((n_state, 2 * h_dim), jnp.float32),   # forward carry [c | h]
            pltpu.VMEM((n_state, 2 * h_dim), jnp.float32),   # backward carry [c | h]
        ],
        compiler_params=pltpu.CompilerParams(dimension_semantics=("arbitrary",)),
    )(*args)


@jax.jit
def bidirectional_tree_lstm_pallas(features, sched, packed):
    """features: [num_obj, FEAT_DIM] -> [num_obj, OUT_DIM] (= cat(fwd, bwd), node order)."""
    feat_f = features[sched["fwd_node"]] * sched["fwd_valid"][..., None]
    feat_b = features[sched["bwd_node"]] * sched["bwd_valid"][..., None]
    hf, hb = _run_fused(
        feat_f, sched["fwd_left"][..., None], sched["fwd_right"][..., None],
        sched["fwd_valid"][..., None],
        packed["w_fx"], packed["w_fhl"], packed["w_fhr"], packed["b_f"],
        feat_b, sched["bwd_parent"][..., None], sched["bwd_valid"][..., None],
        packed["w_bx"], packed["w_bh"], packed["b_b"])
    hf = hf[sched["fwd_row"]]
    hb = hb[sched["bwd_row"]]
    return jnp.concatenate([hf, hb], axis=1)


# ---------------------------------------------------------------------------
# Parameters (mirrors block_orthogonal + bias fills of the PyTorch module).
# ---------------------------------------------------------------------------
def _block_orthogonal(key, shape, block):
    """Deterministic block-orthogonal init; shape in PyTorch [out, in] layout."""
    out = np.zeros(shape, np.float32)
    br, bc = block
    n_blocks = (shape[0] // br) * (shape[1] // bc)
    keys = jax.random.split(key, n_blocks)
    k = 0
    for r0 in range(0, shape[0], br):
        for c0 in range(0, shape[1], bc):
            m = jax.random.normal(keys[k], (max(br, bc), min(br, bc)))
            q, _ = jnp.linalg.qr(m)
            q = q if br >= bc else q.T
            out[r0:r0 + br, c0:c0 + bc] = np.asarray(q[:br, :bc])
            k += 1
    return jnp.asarray(out)


def init_params(key):
    H, F = H_DIM, FEAT_DIM
    kb, kf = jax.random.split(key)
    kb1, kb2, kb3 = jax.random.split(kb, 3)
    bwd = {
        "wx": _block_orthogonal(kb1, (5 * H, F), (H, F)).T,   # [F, 5H]  (i,o,f,u,r)
        "wh": _block_orthogonal(kb2, (5 * H, H), (H, H)).T,   # [H, 5H]
        "wp": _block_orthogonal(kb3, (H, F), (H, F)).T,       # [F, H]
        "bx": jnp.zeros((1, 5 * H), jnp.float32),
        "bh": jnp.zeros((1, 5 * H), jnp.float32).at[0, 2 * H:3 * H].set(1.0),
        "bp": jnp.zeros((1, H), jnp.float32),
    }
    kf1, kf2, kf3, kf4 = jax.random.split(kf, 4)
    fwd = {
        "wx": _block_orthogonal(kf1, (6 * H, F), (H, F)).T,    # [F, 6H] (i,o,fl,fr,u,r)
        "whl": _block_orthogonal(kf2, (6 * H, H), (H, H)).T,   # [H, 6H]
        "whr": _block_orthogonal(kf3, (6 * H, H), (H, H)).T,   # [H, 6H]
        "wp": _block_orthogonal(kf4, (H, F), (H, F)).T,        # [F, H]
        "bx": jnp.zeros((1, 6 * H), jnp.float32),
        "bhl": jnp.zeros((1, 6 * H), jnp.float32).at[0, 2 * H:4 * H].set(0.5),
        "bhr": jnp.zeros((1, 6 * H), jnp.float32).at[0, 2 * H:4 * H].set(0.5),
        "bp": jnp.zeros((1, H), jnp.float32),
    }
    return {"bwd": bwd, "fwd": fwd}


def pack_params(params):
    """Split/reordered packing: x-weights carry px in the last H columns; h-weights get
    zero px columns; gate columns reordered so all sigmoid gates are contiguous."""
    H = H_DIM

    def reorder5(w):   # columns (i,o,f,u,r) -> (i,o,f,r,u)
        return jnp.concatenate([w[:, 0:3 * H], w[:, 4 * H:5 * H], w[:, 3 * H:4 * H]], axis=1)

    def reorder6(w):   # columns (i,o,fl,fr,u,r) -> (i,o,fl,fr,r,u)
        return jnp.concatenate([w[:, 0:4 * H], w[:, 5 * H:6 * H], w[:, 4 * H:5 * H]], axis=1)

    b = params["bwd"]
    w_bx = jnp.concatenate([reorder5(b["wx"]), b["wp"]], axis=1)                        # [F,6H]
    w_bh = jnp.concatenate([reorder5(b["wh"]), jnp.zeros((H, H), jnp.float32)], axis=1)  # [H,6H]
    b_b = jnp.concatenate([reorder5(b["bx"] + b["bh"]), b["bp"]], axis=1)                # [1,6H]

    f = params["fwd"]
    w_fx = jnp.concatenate([reorder6(f["wx"]), f["wp"]], axis=1)                         # [F,7H]
    w_fhl = jnp.concatenate([reorder6(f["whl"]), jnp.zeros((H, H), jnp.float32)], axis=1)
    w_fhr = jnp.concatenate([reorder6(f["whr"]), jnp.zeros((H, H), jnp.float32)], axis=1)
    b_f = jnp.concatenate([reorder6(f["bx"] + f["bhl"] + f["bhr"]), f["bp"]], axis=1)    # [1,7H]

    return {"w_fx": w_fx, "w_fhl": w_fhl, "w_fhr": w_fhr, "b_f": b_f,
            "w_bx": w_bx, "w_bh": w_bh, "b_b": b_b}


# ---------------------------------------------------------------------------
# Tree + host-side level schedule (replaces the data-dependent Python recursion).
# ---------------------------------------------------------------------------
class TreeNode:
    def __init__(self, index, is_root=False):
        self.index = index
        self.is_root = is_root
        self.parent = None
        self.left_child = None
        self.right_child = None


def build_complete_tree(depth, index_offset=0):
    n = 2 ** depth - 1
    nodes = [TreeNode(index_offset + i, is_root=(i == 0)) for i in range(n)]
    for i in range(n):
        li, ri = 2 * i + 1, 2 * i + 2
        if li < n:
            nodes[i].left_child = nodes[li]
            nodes[li].parent = nodes[i]
        if ri < n:
            nodes[i].right_child = nodes[ri]
            nodes[ri].parent = nodes[i]
    return nodes[0], n


def build_forest(num_trees=4, depth=4):
    forest, offset = [], 0
    for _ in range(num_trees):
        root, n = build_complete_tree(depth, offset)
        forest.append(root)
        offset += n
    return forest, offset


def build_level_schedule(forest, num_nodes, pass_root):
    """Batch all trees of the forest into shared per-level slots (fills the MXU M dim)."""
    levels = []
    frontier = list(forest)
    while frontier:
        levels.append(list(frontier))
        nxt = []
        for n in frontier:
            if n.left_child is not None:
                nxt.append(n.left_child)
            if n.right_child is not None:
                nxt.append(n.right_child)
        frontier = nxt
    nl = len(levels)
    b_pad = max(8, -(-max(len(lv) for lv in levels) // 8) * 8)   # round up to sublane multiple

    # backward (root -> leaves): grid step t == depth t
    bwd_slot = {}
    for t, lv in enumerate(levels):
        for s, n in enumerate(lv):
            bwd_slot[id(n)] = (t, s)
    bwd_node = np.zeros((nl, b_pad), np.int32)
    bwd_valid = np.zeros((nl, b_pad), np.float32)
    bwd_parent = np.full((nl, b_pad), -1, np.int32)
    bwd_row = np.zeros((num_nodes,), np.int32)
    for t, lv in enumerate(levels):
        for s, n in enumerate(lv):
            bwd_node[t, s] = n.index
            bwd_valid[t, s] = 1.0
            bwd_row[n.index] = t * b_pad + s
            par = n.parent
            if par is not None and not (par.is_root and (not pass_root)):
                pt, ps = bwd_slot[id(par)]
                bwd_parent[t, s] = pt * b_pad + ps

    # forward (leaves -> root): grid step t == depth (nl - 1 - t)
    fwd_slot = {}
    for t in range(nl):
        for s, n in enumerate(levels[nl - 1 - t]):
            fwd_slot[id(n)] = (t, s)
    fwd_node = np.zeros((nl, b_pad), np.int32)
    fwd_valid = np.zeros((nl, b_pad), np.float32)
    fwd_left = np.full((nl, b_pad), -1, np.int32)
    fwd_right = np.full((nl, b_pad), -1, np.int32)
    fwd_row = np.zeros((num_nodes,), np.int32)
    for t in range(nl):
        for s, n in enumerate(levels[nl - 1 - t]):
            fwd_node[t, s] = n.index
            fwd_valid[t, s] = 1.0
            fwd_row[n.index] = t * b_pad + s
            if n.left_child is not None:
                ct, cs = fwd_slot[id(n.left_child)]
                fwd_left[t, s] = ct * b_pad + cs
            if n.right_child is not None:
                ct, cs = fwd_slot[id(n.right_child)]
                fwd_right[t, s] = ct * b_pad + cs

    return {
        "bwd_node": jnp.asarray(bwd_node), "bwd_valid": jnp.asarray(bwd_valid),
        "bwd_parent": jnp.asarray(bwd_parent), "bwd_row": jnp.asarray(bwd_row),
        "fwd_node": jnp.asarray(fwd_node), "fwd_valid": jnp.asarray(fwd_valid),
        "fwd_left": jnp.asarray(fwd_left), "fwd_right": jnp.asarray(fwd_right),
        "fwd_row": jnp.asarray(fwd_row),
    }


# ---------------------------------------------------------------------------
# Pure-JAX reference mirroring the PyTorch recursion exactly (fp32, HIGHEST).
# ---------------------------------------------------------------------------
def node_backward_ref(feat, root_c, root_h, p):
    H = H_DIM
    px = jnp.dot(feat, p["wp"], precision=_PREC) + p["bp"]
    iofu = (jnp.dot(feat, p["wx"], precision=_PREC) + p["bx"]
            + jnp.dot(root_h, p["wh"], precision=_PREC) + p["bh"])
    i = jax.nn.sigmoid(iofu[:, 0 * H:1 * H])
    o = jax.nn.sigmoid(iofu[:, 1 * H:2 * H])
    f = jax.nn.sigmoid(iofu[:, 2 * H:3 * H])
    u = jnp.tanh(iofu[:, 3 * H:4 * H])
    r = jax.nn.sigmoid(iofu[:, 4 * H:5 * H])
    c = i * u + f * root_c
    h = o * jnp.tanh(c)
    return c, r * h + (1.0 - r) * px


def node_forward_ref(feat, left_c, right_c, left_h, right_h, p):
    H = H_DIM
    px = jnp.dot(feat, p["wp"], precision=_PREC) + p["bp"]
    ioffu = (jnp.dot(feat, p["wx"], precision=_PREC) + p["bx"]
             + jnp.dot(left_h, p["whl"], precision=_PREC) + p["bhl"]
             + jnp.dot(right_h, p["whr"], precision=_PREC) + p["bhr"])
    i = jax.nn.sigmoid(ioffu[:, 0 * H:1 * H])
    o = jax.nn.sigmoid(ioffu[:, 1 * H:2 * H])
    f_l = jax.nn.sigmoid(ioffu[:, 2 * H:3 * H])
    f_r = jax.nn.sigmoid(ioffu[:, 3 * H:4 * H])
    u = jnp.tanh(ioffu[:, 4 * H:5 * H])
    r = jax.nn.sigmoid(ioffu[:, 5 * H:6 * H])
    c = i * u + f_l * left_c + f_r * right_c
    h = o * jnp.tanh(c)
    return c, r * h + (1.0 - r) * px


def _ref_backward_traverse(tree, features, io, p, pass_root):
    if tree.parent is None or (tree.parent.is_root and (not pass_root)):
        root_c = jnp.zeros((1, H_DIM), jnp.float32)
        root_h = jnp.zeros((1, H_DIM), jnp.float32)
    else:
        root_c = tree.parent.state_c_backward
        root_h = tree.parent.state_h_backward
    feat = features[tree.index][None, :]
    c, h = node_backward_ref(feat, root_c, root_h, p)
    tree.state_c_backward = c
    tree.state_h_backward = h
    io["hidden"] = h if io["hidden"] is None else jnp.concatenate([io["hidden"], h], 0)
    io["order"][tree.index] = io["order_count"]
    io["order_count"] += 1
    if tree.left_child is not None:
        _ref_backward_traverse(tree.left_child, features, io, p, pass_root)
    if tree.right_child is not None:
        _ref_backward_traverse(tree.right_child, features, io, p, pass_root)


def _ref_forward_traverse(tree, features, io, p):
    if tree.left_child is not None:
        _ref_forward_traverse(tree.left_child, features, io, p)
    if tree.right_child is not None:
        _ref_forward_traverse(tree.right_child, features, io, p)
    zero = jnp.zeros((1, H_DIM), jnp.float32)
    left_c, left_h = (zero, zero) if tree.left_child is None else \
        (tree.left_child.state_c, tree.left_child.state_h)
    right_c, right_h = (zero, zero) if tree.right_child is None else \
        (tree.right_child.state_c, tree.right_child.state_h)
    feat = features[tree.index][None, :]
    c, h = node_forward_ref(feat, left_c, right_c, left_h, right_h, p)
    tree.state_c = c
    tree.state_h = h
    io["hidden"] = h if io["hidden"] is None else jnp.concatenate([io["hidden"], h], 0)
    io["order"][tree.index] = io["order_count"]
    io["order_count"] += 1


def one_directional_ref(forest, features, num_obj, p, direction, pass_root):
    io = {"hidden": None, "order": np.zeros((num_obj,), np.int32), "order_count": 0}
    for tree in forest:
        if direction == "backward":
            _ref_backward_traverse(tree, features, io, p, pass_root)
        else:
            _ref_forward_traverse(tree, features, io, p)
    order = jnp.asarray(io["order"])
    return io["hidden"][order]           # == torch.index_select(hidden, 0, order)


def bidirectional_tree_lstm_ref(forest, features, num_obj, params, pass_root):
    fwd = one_directional_ref(forest, features, num_obj, params["fwd"], "forward", pass_root)
    bwd = one_directional_ref(forest, features, num_obj, params["bwd"], "backward", pass_root)
    return jnp.concatenate([fwd, bwd], axis=1)


# ---------------------------------------------------------------------------
if __name__ == "__main__":
    key = jax.random.PRNGKey(0)
    k_param, k_feat = jax.random.split(key)

    params = init_params(k_param)
    packed = pack_params(params)

    # Batched forest: 4 complete trees of depth 4 -> 60 nodes, level widths 4/8/16/32.
    forest, num_obj = build_forest(num_trees=4, depth=4)
    features = jax.random.normal(k_feat, (num_obj, FEAT_DIM), jnp.float32)

    sched = build_level_schedule(forest, num_obj, PASS_ROOT)

    out = bidirectional_tree_lstm_pallas(features, sched, packed)
    out = jax.block_until_ready(out)

    ref = bidirectional_tree_lstm_ref(forest, features, num_obj, params, PASS_ROOT)
    ref = jax.block_until_ready(ref)

    assert out.shape == (num_obj, OUT_DIM)
    np.testing.assert_allclose(np.asarray(out), np.asarray(ref), rtol=1e-4, atol=1e-4)
    print("KERNEL_OK")
</pallas_src>

<mosaic_0001>
module attributes {stable_mosaic.version = 11 : i64} {
  func.func @_fused_level_kernel(%arg0: i32, %arg1: memref<128x32xf32, #tpu.memory_space<vmem>>, %arg2: memref<128x1xi32, #tpu.memory_space<vmem>>, %arg3: memref<128x1xi32, #tpu.memory_space<vmem>>, %arg4: memref<128x1xf32, #tpu.memory_space<vmem>>, %arg5: memref<32x224xf32, #tpu.memory_space<vmem>>, %arg6: memref<32x224xf32, #tpu.memory_space<vmem>>, %arg7: memref<32x224xf32, #tpu.memory_space<vmem>>, %arg8: memref<1x224xf32, #tpu.memory_space<vmem>>, %arg9: memref<128x32xf32, #tpu.memory_space<vmem>>, %arg10: memref<128x1xi32, #tpu.memory_space<vmem>>, %arg11: memref<128x1xf32, #tpu.memory_space<vmem>>, %arg12: memref<32x192xf32, #tpu.memory_space<vmem>>, %arg13: memref<32x192xf32, #tpu.memory_space<vmem>>, %arg14: memref<1x192xf32, #tpu.memory_space<vmem>>, %arg15: memref<128x32xf32, #tpu.memory_space<vmem>>, %arg16: memref<128x32xf32, #tpu.memory_space<vmem>>, %arg17: memref<128x64xf32, #tpu.memory_space<vmem>>, %arg18: memref<128x64xf32, #tpu.memory_space<vmem>>) attributes {dimension_semantics = [#tpu.dimension_semantics<arbitrary>], iteration_bounds = array<i64: 4>, scalar_prefetch = 0 : i64, scratch_operands = 2 : i64, tpu.core_type = #tpu.core_type<tc>, window_params = [{pipeline_mode = #tpu.pipeline_mode<synchronous>, transform_indices = @transform_0, window_bounds = array<i64: 128, 32>}, {pipeline_mode = #tpu.pipeline_mode<synchronous>, transform_indices = @transform_1, window_bounds = array<i64: 128, 1>}, {pipeline_mode = #tpu.pipeline_mode<synchronous>, transform_indices = @transform_2, window_bounds = array<i64: 128, 1>}, {pipeline_mode = #tpu.pipeline_mode<synchronous>, transform_indices = @transform_3, window_bounds = array<i64: 128, 1>}, {pipeline_mode = #tpu.pipeline_mode<synchronous>, transform_indices = @transform_4, window_bounds = array<i64: 32, 224>}, {pipeline_mode = #tpu.pipeline_mode<synchronous>, transform_indices = @transform_5, window_bounds = array<i64: 32, 224>}, {pipeline_mode = #tpu.pipeline_mode<synchronous>, transform_indices = @transform_6, window_bounds = array<i64: 32, 224>}, {pipeline_mode = #tpu.pipeline_mode<synchronous>, transform_indices = @transform_7, window_bounds = array<i64: 1, 224>}, {pipeline_mode = #tpu.pipeline_mode<synchronous>, transform_indices = @transform_8, window_bounds = array<i64: 128, 32>}, {pipeline_mode = #tpu.pipeline_mode<synchronous>, transform_indices = @transform_9, window_bounds = array<i64: 128, 1>}, {pipeline_mode = #tpu.pipeline_mode<synchronous>, transform_indices = @transform_10, window_bounds = array<i64: 128, 1>}, {pipeline_mode = #tpu.pipeline_mode<synchronous>, transform_indices = @transform_11, window_bounds = array<i64: 32, 192>}, {pipeline_mode = #tpu.pipeline_mode<synchronous>, transform_indices = @transform_12, window_bounds = array<i64: 32, 192>}, {pipeline_mode = #tpu.pipeline_mode<synchronous>, transform_indices = @transform_13, window_bounds = array<i64: 1, 192>}, {pipeline_mode = #tpu.pipeline_mode<synchronous>, transform_indices = @transform_14, window_bounds = array<i64: 128, 32>}, {pipeline_mode = #tpu.pipeline_mode<synchronous>, transform_indices = @transform_15, window_bounds = array<i64: 128, 32>}]} {
    %c32_i32 = arith.constant 32 : i32
    %0 = arith.muli %arg0, %c32_i32 : i32
    %1 = tpu.assume_multiple %0, 32 : i32
    %c0_i32 = arith.constant 0 : i32
    %2 = arith.cmpi eq, %arg0, %c0_i32 : i32
    %3 = arith.extui %2 : i1 to i32
    %c0_i32_0 = arith.constant 0 : i32
    %4 = arith.cmpi ne, %3, %c0_i32_0 : i32
    scf.if %4 {
      %cst_42 = arith.constant 0.000000e+00 : f32
      %130 = vector.broadcast %cst_42 : f32 to vector<128x64xf32>
      %c0_43 = arith.constant 0 : index
      %c0_44 = arith.constant 0 : index
      %131 = vector.load %arg17[%c0_43, %c0_44] : memref<128x64xf32, #tpu.memory_space<vmem>>, vector<128x64xf32>
      tpu.vector_store %arg17[%c0_43, %c0_44], %130 {strides = array<i32>} : memref<128x64xf32, #tpu.memory_space<vmem>>, vector<128x64xf32>,
      %cst_45 = arith.constant 0.000000e+00 : f32
      %132 = vector.broadcast %cst_45 : f32 to vector<128x64xf32>
      %c0_46 = arith.constant 0 : index
      %c0_47 = arith.constant 0 : index
      %133 = vector.load %arg18[%c0_46, %c0_47] : memref<128x64xf32, #tpu.memory_space<vmem>>, vector<128x64xf32>
      tpu.vector_store %arg18[%c0_46, %c0_47], %132 {strides = array<i32>} : memref<128x64xf32, #tpu.memory_space<vmem>>, vector<128x64xf32>,
    } else {
    }
    %5 = tpu.iota {dimensions = array<i32: 1>} : vector<32x128xi32>
    %6 = arith.index_cast %1 : i32 to index
    %c0 = arith.constant 0 : index
    %7 = vector.load %arg2[%6, %c0] : memref<128x1xi32, #tpu.memory_space<vmem>>, vector<32x1xi32>
    %8 = vector.broadcast %7 : vector<32x1xi32> to vector<32x128xi32>
    %9 = arith.cmpi eq, %8, %5 : vector<32x128xi32>
    %10 = arith.extui %9 : vector<32x128xi1> to vector<32x128xi32>
    %11 = arith.sitofp %10 : vector<32x128xi32> to vector<32x128xf32>
    %c0_1 = arith.constant 0 : index
    %c0_2 = arith.constant 0 : index
    %12 = vector.load %arg17[%c0_1, %c0_2] : memref<128x64xf32, #tpu.memory_space<vmem>>, vector<128x64xf32>
    %cst = arith.constant dense<0.000000e+00> : vector<32x64xf32>
    %13 = tpu.matmul %11, %12, %cst {dimension_numbers = #tpu.dot_dimension_numbers<[1], [0], [0], [1], [0, 0, 1, 1], [], []>, precision = #tpu.contract_precision<fp32>} : vector<32x128xf32>, vector<128x64xf32>, vector<32x64xf32> -> vector<32x64xf32>
    %14 = arith.index_cast %1 : i32 to index
    %c0_3 = arith.constant 0 : index
    %15 = vector.load %arg3[%14, %c0_3] : memref<128x1xi32, #tpu.memory_space<vmem>>, vector<32x1xi32>
    %16 = vector.broadcast %15 : vector<32x1xi32> to vector<32x128xi32>
    %17 = arith.cmpi eq, %16, %5 : vector<32x128xi32>
    %18 = arith.extui %17 : vector<32x128xi1> to vector<32x128xi32>
    %19 = arith.sitofp %18 : vector<32x128xi32> to vector<32x128xf32>
    %c0_4 = arith.constant 0 : index
    %c0_5 = arith.constant 0 : index
    %20 = vector.load %arg17[%c0_4, %c0_5] : memref<128x64xf32, #tpu.memory_space<vmem>>, vector<128x64xf32>
    %cst_6 = arith.constant dense<0.000000e+00> : vector<32x64xf32>
    %21 = tpu.matmul %19, %20, %cst_6 {dimension_numbers = #tpu.dot_dimension_numbers<[1], [0], [0], [1], [0, 0, 1, 1], [], []>, precision = #tpu.contract_precision<fp32>} : vector<32x128xf32>, vector<128x64xf32>, vector<32x64xf32> -> vector<32x64xf32>
    %22 = arith.index_cast %1 : i32 to index
    %c0_7 = arith.constant 0 : index
    %23 = vector.load %arg1[%22, %c0_7] : memref<128x32xf32, #tpu.memory_space<vmem>>, vector<32x32xf32>
    %c0_8 = arith.constant 0 : index
    %c0_9 = arith.constant 0 : index
    %24 = vector.load %arg5[%c0_8, %c0_9] : memref<32x224xf32, #tpu.memory_space<vmem>>, vector<32x224xf32>
    %cst_10 = arith.constant dense<0.000000e+00> : vector<32x224xf32>
    %25 = tpu.matmul %23, %24, %cst_10 {dimension_numbers = #tpu.dot_dimension_numbers<[1], [0], [0], [1], [0, 0, 1, 1], [], []>, precision = #tpu.contract_precision<fp32>} : vector<32x32xf32>, vector<32x224xf32>, vector<32x224xf32> -> vector<32x224xf32>
    %26 = vector.extract_strided_slice %13 {offsets = [0, 32], sizes = [32, 32], strides = [1, 1]} : vector<32x64xf32> to vector<32x32xf32>
    %c0_11 = arith.constant 0 : index
    %c0_12 = arith.constant 0 : index
    %27 = vector.load %arg6[%c0_11, %c0_12] : memref<32x224xf32, #tpu.memory_space<vmem>>, vector<32x224xf32>
    %cst_13 = arith.constant dense<0.000000e+00> : vector<32x224xf32>
    %28 = tpu.matmul %26, %27, %cst_13 {dimension_numbers = #tpu.dot_dimension_numbers<[1], [0], [0], [1], [0, 0, 1, 1], [], []>, precision = #tpu.contract_precision<fp32>} : vector<32x32xf32>, vector<32x224xf32>, vector<32x224xf32> -> vector<32x224xf32>
    %29 = arith.addf %25, %28 : vector<32x224xf32>
    %30 = vector.extract_strided_slice %21 {offsets = [0, 32], sizes = [32, 32], strides = [1, 1]} : vector<32x64xf32> to vector<32x32xf32>
    %c0_14 = arith.constant 0 : index
    %c0_15 = arith.constant 0 : index
    %31 = vector.load %arg7[%c0_14, %c0_15] : memref<32x224xf32, #tpu.memory_space<vmem>>, vector<32x224xf32>
    %cst_16 = arith.constant dense<0.000000e+00> : vector<32x224xf32>
    %32 = tpu.matmul %30, %31, %cst_16 {dimension_numbers = #tpu.dot_dimension_numbers<[1], [0], [0], [1], [0, 0, 1, 1], [], []>, precision = #tpu.contract_precision<fp32>} : vector<32x32xf32>, vector<32x224xf32>, vector<32x224xf32> -> vector<32x224xf32>
    %33 = arith.addf %29, %32 : vector<32x224xf32>
    %c0_17 = arith.constant 0 : index
    %c0_18 = arith.constant 0 : index
    %34 = vector.load %arg8[%c0_17, %c0_18] : memref<1x224xf32, #tpu.memory_space<vmem>>, vector<1x224xf32>
    %35 = vector.broadcast %34 : vector<1x224xf32> to vector<32x224xf32>
    %36 = arith.addf %33, %35 : vector<32x224xf32>
    %37 = vector.extract_strided_slice %36 {offsets = [0, 0], sizes = [32, 160], strides = [1, 1]} : vector<32x224xf32> to vector<32x160xf32>
    %38 = arith.negf %37 : vector<32x160xf32>
    %39 = math.exp %38 : vector<32x160xf32>
    %cst_19 = arith.constant 1.000000e+00 : f32
    %40 = vector.broadcast %cst_19 : f32 to vector<32x160xf32>
    %41 = arith.addf %40, %39 : vector<32x160xf32>
    %42 = arith.divf %40, %41 : vector<32x160xf32>
    %43 = vector.extract_strided_slice %36 {offsets = [0, 160], sizes = [32, 32], strides = [1, 1]} : vector<32x224xf32> to vector<32x32xf32>
    %44 = math.tanh %43 : vector<32x32xf32>
    %45 = vector.extract_strided_slice %36 {offsets = [0, 192], sizes = [32, 32], strides = [1, 1]} : vector<32x224xf32> to vector<32x32xf32>
    %46 = vector.extract_strided_slice %42 {offsets = [0, 0], sizes = [32, 32], strides = [1, 1]} : vector<32x160xf32> to vector<32x32xf32>
    %47 = vector.extract_strided_slice %42 {offsets = [0, 32], sizes = [32, 32], strides = [1, 1]} : vector<32x160xf32> to vector<32x32xf32>
    %48 = vector.extract_strided_slice %42 {offsets = [0, 64], sizes = [32, 32], strides = [1, 1]} : vector<32x160xf32> to vector<32x32xf32>
    %49 = vector.extract_strided_slice %42 {offsets = [0, 96], sizes = [32, 32], strides = [1, 1]} : vector<32x160xf32> to vector<32x32xf32>
    %50 = vector.extract_strided_slice %42 {offsets = [0, 128], sizes = [32, 32], strides = [1, 1]} : vector<32x160xf32> to vector<32x32xf32>
    %51 = arith.mulf %46, %44 : vector<32x32xf32>
    %52 = vector.extract_strided_slice %13 {offsets = [0, 0], sizes = [32, 32], strides = [1, 1]} : vector<32x64xf32> to vector<32x32xf32>
    %53 = arith.mulf %48, %52 : vector<32x32xf32>
    %54 = arith.addf %51, %53 : vector<32x32xf32>
    %55 = vector.extract_strided_slice %21 {offsets = [0, 0], sizes = [32, 32], strides = [1, 1]} : vector<32x64xf32> to vector<32x32xf32>
    %56 = arith.mulf %49, %55 : vector<32x32xf32>
    %57 = arith.addf %54, %56 : vector<32x32xf32>
    %58 = math.tanh %57 : vector<32x32xf32>
    %59 = arith.mulf %47, %58 : vector<32x32xf32>
    %60 = arith.mulf %50, %59 : vector<32x32xf32>
    %cst_20 = arith.constant 1.000000e+00 : f32
    %61 = vector.broadcast %cst_20 : f32 to vector<32x32xf32>
    %62 = arith.subf %61, %50 : vector<32x32xf32>
    %63 = arith.mulf %62, %45 : vector<32x32xf32>
    %64 = arith.addf %60, %63 : vector<32x32xf32>
    %65 = arith.index_cast %1 : i32 to index
    %c0_21 = arith.constant 0 : index
    %66 = vector.load %arg4[%65, %c0_21] : memref<128x1xf32, #tpu.memory_space<vmem>>, vector<32x1xf32>
    %67 = vector.broadcast %66 : vector<32x1xf32> to vector<32x32xf32>
    %68 = arith.mulf %57, %67 : vector<32x32xf32>
    %69 = vector.broadcast %66 : vector<32x1xf32> to vector<32x32xf32>
    %70 = arith.mulf %64, %69 : vector<32x32xf32>
    %71 = arith.index_cast %1 : i32 to index
    %c0_22 = arith.constant 0 : index
    %72 = vector.load %arg15[%71, %c0_22] : memref<128x32xf32, #tpu.memory_space<vmem>>, vector<32x32xf32>
    tpu.vector_store %arg15[%71, %c0_22], %70 {strides = array<i32>} : memref<128x32xf32, #tpu.memory_space<vmem>>, vector<32x32xf32>,
    %73 = tpu.concatenate %68, %70 in 1 : vector<32x32xf32>, vector<32x32xf32> -> vector<32x64xf32>
    %74 = arith.index_cast %1 : i32 to index
    %c0_23 = arith.constant 0 : index
    %75 = vector.load %arg17[%74, %c0_23] : memref<128x64xf32, #tpu.memory_space<vmem>>, vector<32x64xf32>
    tpu.vector_store %arg17[%74, %c0_23], %73 {strides = array<i32>} : memref<128x64xf32, #tpu.memory_space<vmem>>, vector<32x64xf32>,
    %76 = arith.index_cast %1 : i32 to index
    %c0_24 = arith.constant 0 : index
    %77 = vector.load %arg10[%76, %c0_24] : memref<128x1xi32, #tpu.memory_space<vmem>>, vector<32x1xi32>
    %78 = vector.broadcast %77 : vector<32x1xi32> to vector<32x128xi32>
    %79 = arith.cmpi eq, %78, %5 : vector<32x128xi32>
    %80 = arith.extui %79 : vector<32x128xi1> to vector<32x128xi32>
    %81 = arith.sitofp %80 : vector<32x128xi32> to vector<32x128xf32>
    %c0_25 = arith.constant 0 : index
    %c0_26 = arith.constant 0 : index
    %82 = vector.load %arg18[%c0_25, %c0_26] : memref<128x64xf32, #tpu.memory_space<vmem>>, vector<128x64xf32>
    %cst_27 = arith.constant dense<0.000000e+00> : vector<32x64xf32>
    %83 = tpu.matmul %81, %82, %cst_27 {dimension_numbers = #tpu.dot_dimension_numbers<[1], [0], [0], [1], [0, 0, 1, 1], [], []>, precision = #tpu.contract_precision<fp32>} : vector<32x128xf32>, vector<128x64xf32>, vector<32x64xf32> -> vector<32x64xf32>
    %84 = arith.index_cast %1 : i32 to index
    %c0_28 = arith.constant 0 : index
    %85 = vector.load %arg9[%84, %c0_28] : memref<128x32xf32, #tpu.memory_space<vmem>>, vector<32x32xf32>
    %c0_29 = arith.constant 0 : index
    %c0_30 = arith.constant 0 : index
    %86 = vector.load %arg12[%c0_29, %c0_30] : memref<32x192xf32, #tpu.memory_space<vmem>>, vector<32x192xf32>
    %cst_31 = arith.constant dense<0.000000e+00> : vector<32x192xf32>
    %87 = tpu.matmul %85, %86, %cst_31 {dimension_numbers = #tpu.dot_dimension_numbers<[1], [0], [0], [1], [0, 0, 1, 1], [], []>, precision = #tpu.contract_precision<fp32>} : vector<32x32xf32>, vector<32x192xf32>, vector<32x192xf32> -> vector<32x192xf32>
    %88 = vector.extract_strided_slice %83 {offsets = [0, 32], sizes = [32, 32], strides = [1, 1]} : vector<32x64xf32> to vector<32x32xf32>
    %c0_32 = arith.constant 0 : index
    %c0_33 = arith.constant 0 : index
    %89 = vector.load %arg13[%c0_32, %c0_33] : memref<32x192xf32, #tpu.memory_space<vmem>>, vector<32x192xf32>
    %cst_34 = arith.constant dense<0.000000e+00> : vector<32x192xf32>
    %90 = tpu.matmul %88, %89, %cst_34 {dimension_numbers = #tpu.dot_dimension_numbers<[1], [0], [0], [1], [0, 0, 1, 1], [], []>, precision = #tpu.contract_precision<fp32>} : vector<32x32xf32>, vector<32x192xf32>, vector<32x192xf32> -> vector<32x192xf32>
    %91 = arith.addf %87, %90 : vector<32x192xf32>
    %c0_35 = arith.constant 0 : index
    %c0_36 = arith.constant 0 : index
    %92 = vector.load %arg14[%c0_35, %c0_36] : memref<1x192xf32, #tpu.memory_space<vmem>>, vector<1x192xf32>
    %93 = vector.broadcast %92 : vector<1x192xf32> to vector<32x192xf32>
    %94 = arith.addf %91, %93 : vector<32x192xf32>
    %95 = vector.extract_strided_slice %94 {offsets = [0, 0], sizes = [32, 128], strides = [1, 1]} : vector<32x192xf32> to vector<32x128xf32>
    %96 = arith.negf %95 : vector<32x128xf32>
    %97 = math.exp %96 : vector<32x128xf32>
    %cst_37 = arith.constant 1.000000e+00 : f32
    %98 = vector.broadcast %cst_37 : f32 to vector<32x128xf32>
    %99 = arith.addf %98, %97 : vector<32x128xf32>
    %100 = arith.divf %98, %99 : vector<32x128xf32>
    %101 = vector.extract_strided_slice %94 {offsets = [0, 128], sizes = [32, 32], strides = [1, 1]} : vector<32x192xf32> to vector<32x32xf32>
    %102 = math.tanh %101 : vector<32x32xf32>
    %103 = vector.extract_strided_slice %94 {offsets = [0, 160], sizes = [32, 32], strides = [1, 1]} : vector<32x192xf32> to vector<32x32xf32>
    %104 = vector.extract_strided_slice %100 {offsets = [0, 0], sizes = [32, 32], strides = [1, 1]} : vector<32x128xf32> to vector<32x32xf32>
    %105 = vector.extract_strided_slice %100 {offsets = [0, 32], sizes = [32, 32], strides = [1, 1]} : vector<32x128xf32> to vector<32x32xf32>
    %106 = vector.extract_strided_slice %100 {offsets = [0, 64], sizes = [32, 32], strides = [1, 1]} : vector<32x128xf32> to vector<32x32xf32>
    %107 = vector.extract_strided_slice %100 {offsets = [0, 96], sizes = [32, 32], strides = [1, 1]} : vector<32x128xf32> to vector<32x32xf32>
    %108 = arith.mulf %104, %102 : vector<32x32xf32>
    %109 = vector.extract_strided_slice %83 {offsets = [0, 0], sizes = [32, 32], strides = [1, 1]} : vector<32x64xf32> to vector<32x32xf32>
    %110 = arith.mulf %106, %109 : vector<32x32xf32>
    %111 = arith.addf %108, %110 : vector<32x32xf32>
    %112 = math.tanh %111 : vector<32x32xf32>
    %113 = arith.mulf %105, %112 : vector<32x32xf32>
    %114 = arith.mulf %107, %113 : vector<32x32xf32>
    %cst_38 = arith.constant 1.000000e+00 : f32
    %115 = vector.broadcast %cst_38 : f32 to vector<32x32xf32>
    %116 = arith.subf %115, %107 : vector<32x32xf32>
    %117 = arith.mulf %116, %103 : vector<32x32xf32>
    %118 = arith.addf %114, %117 : vector<32x32xf32>
    %119 = arith.index_cast %1 : i32 to index
    %c0_39 = arith.constant 0 : index
    %120 = vector.load %arg11[%119, %c0_39] : memref<128x1xf32, #tpu.memory_space<vmem>>, vector<32x1xf32>
    %121 = vector.broadcast %120 : vector<32x1xf32> to vector<32x32xf32>
    %122 = arith.mulf %111, %121 : vector<32x32xf32>
    %123 = vector.broadcast %120 : vector<32x1xf32> to vector<32x32xf32>
    %124 = arith.mulf %118, %123 : vector<32x32xf32>
    %125 = arith.index_cast %1 : i32 to index
    %c0_40 = arith.constant 0 : index
    %126 = vector.load %arg16[%125, %c0_40] : memref<128x32xf32, #tpu.memory_space<vmem>>, vector<32x32xf32>
    tpu.vector_store %arg16[%125, %c0_40], %124 {strides = array<i32>} : memref<128x32xf32, #tpu.memory_space<vmem>>, vector<32x32xf32>,
    %127 = tpu.concatenate %122, %124 in 1 : vector<32x32xf32>, vector<32x32xf32> -> vector<32x64xf32>
    %128 = arith.index_cast %1 : i32 to index
    %c0_41 = arith.constant 0 : index
    %129 = vector.load %arg18[%128, %c0_41] : memref<128x64xf32, #tpu.memory_space<vmem>>, vector<32x64xf32>
    tpu.vector_store %arg18[%128, %c0_41], %127 {strides = array<i32>} : memref<128x64xf32, #tpu.memory_space<vmem>>, vector<32x64xf32>,
    return
  }
  func.func @transform_0(%arg0: i32) -> (i32, i32) {
    %c0_i32 = arith.constant 0 : i32
    %c0_i32_0 = arith.constant 0 : i32
    %c0_i32_1 = arith.constant 0 : i32
    return %c0_i32, %c0_i32_0 : i32, i32
  }
  func.func @transform_1(%arg0: i32) -> (i32, i32) {
    %c0_i32 = arith.constant 0 : i32
    %c0_i32_0 = arith.constant 0 : i32
    %c0_i32_1 = arith.constant 0 : i32
    return %c0_i32, %c0_i32_0 : i32, i32
  }
  func.func @transform_2(%arg0: i32) -> (i32, i32) {
    %c0_i32 = arith.constant 0 : i32
    %c0_i32_0 = arith.constant 0 : i32
    %c0_i32_1 = arith.constant 0 : i32
    return %c0_i32, %c0_i32_0 : i32, i32
  }
  func.func @transform_3(%arg0: i32) -> (i32, i32) {
    %c0_i32 = arith.constant 0 : i32
    %c0_i32_0 = arith.constant 0 : i32
    %c0_i32_1 = arith.constant 0 : i32
    return %c0_i32, %c0_i32_0 : i32, i32
  }
  func.func @transform_4(%arg0: i32) -> (i32, i32) {
    %c0_i32 = arith.constant 0 : i32
    %c0_i32_0 = arith.constant 0 : i32
    %c0_i32_1 = arith.constant 0 : i32
    return %c0_i32, %c0_i32_0 : i32, i32
  }
  func.func @transform_5(%arg0: i32) -> (i32, i32) {
    %c0_i32 = arith.constant 0 : i32
    %c0_i32_0 = arith.constant 0 : i32
    %c0_i32_1 = arith.constant 0 : i32
    return %c0_i32, %c0_i32_0 : i32, i32
  }
  func.func @transform_6(%arg0: i32) -> (i32, i32) {
    %c0_i32 = arith.constant 0 : i32
    %c0_i32_0 = arith.constant 0 : i32
    %c0_i32_1 = arith.constant 0 : i32
    return %c0_i32, %c0_i32_0 : i32, i32
  }
  func.func @transform_7(%arg0: i32) -> (i32, i32) {
    %c0_i32 = arith.constant 0 : i32
    %c0_i32_0 = arith.constant 0 : i32
    %c0_i32_1 = arith.constant 0 : i32
    return %c0_i32, %c0_i32_0 : i32, i32
  }
  func.func @transform_8(%arg0: i32) -> (i32, i32) {
    %c0_i32 = arith.constant 0 : i32
    %c0_i32_0 = arith.constant 0 : i32
    %c0_i32_1 = arith.constant 0 : i32
    return %c0_i32, %c0_i32_0 : i32, i32
  }
  func.func @transform_9(%arg0: i32) -> (i32, i32) {
    %c0_i32 = arith.constant 0 : i32
    %c0_i32_0 = arith.constant 0 : i32
    %c0_i32_1 = arith.constant 0 : i32
    return %c0_i32, %c0_i32_0 : i32, i32
  }
  func.func @transform_10(%arg0: i32) -> (i32, i32) {
    %c0_i32 = arith.constant 0 : i32
    %c0_i32_0 = arith.constant 0 : i32
    %c0_i32_1 = arith.constant 0 : i32
    return %c0_i32, %c0_i32_0 : i32, i32
  }
  func.func @transform_11(%arg0: i32) -> (i32, i32) {
    %c0_i32 = arith.constant 0 : i32
    %c0_i32_0 = arith.constant 0 : i32
    %c0_i32_1 = arith.constant 0 : i32
    return %c0_i32, %c0_i32_0 : i32, i32
  }
  func.func @transform_12(%arg0: i32) -> (i32, i32) {
    %c0_i32 = arith.constant 0 : i32
    %c0_i32_0 = arith.constant 0 : i32
    %c0_i32_1 = arith.constant 0 : i32
    return %c0_i32, %c0_i32_0 : i32, i32
  }
  func.func @transform_13(%arg0: i32) -> (i32, i32) {
    %c0_i32 = arith.constant 0 : i32
    %c0_i32_0 = arith.constant 0 : i32
    %c0_i32_1 = arith.constant 0 : i32
    return %c0_i32, %c0_i32_0 : i32, i32
  }
  func.func @transform_14(%arg0: i32) -> (i32, i32) {
    %c0_i32 = arith.constant 0 : i32
    %c0_i32_0 = arith.constant 0 : i32
    %c0_i32_1 = arith.constant 0 : i32
    return %c0_i32, %c0_i32_0 : i32, i32
  }
  func.func @transform_15(%arg0: i32) -> (i32, i32) {
    %c0_i32 = arith.constant 0 : i32
    %c0_i32_0 = arith.constant 0 : i32
    %c0_i32_1 = arith.constant 0 : i32
    return %c0_i32, %c0_i32_0 : i32, i32
  }
}

</mosaic_0001>

<bundles_post_ra>
// kernel: bidirectional_tree_lstm_pallas.1
= control target key start
LH: loop header
LB: loop body
LE: loop exit
PB: predicated region body
PF: predicated region fallthrough
CT: control target
= control target key end

     0   :  { %s9494_s18 = smov 0   ;;  %s12137_s0 = inlined_call_operand.vmem [shape: f32[128,32], index: 0, kind: input, shape index: {}]   ;;  %s12138_s1 = inlined_call_operand.vmem [shape: s32[128,1], index: 1, kind: input, shape index: {}]   ;;  %s12139_s2 = inlined_call_operand.vmem [shape: s32[128,1], index: 2, kind: input, shape index: {}]   ;;  %s12140_s3 = inlined_call_operand.vmem [shape: f32[128,1], index: 3, kind: input, shape index: {}]   ;;  %s12141_s4 = inlined_call_operand.vmem [shape: f32[32,224], index: 4, kind: input, shape index: {}]   ;;  %s12142_s5 = inlined_call_operand.vmem [shape: f32[32,224], index: 5, kind: input, shape index: {}]   ;;  %s12143_s6 = inlined_call_operand.vmem [shape: f32[32,224], index: 6, kind: input, shape index: {}]   ;;  %s12144_s7 = inlined_call_operand.vmem [shape: f32[1,224], index: 7, kind: input, shape index: {}]   ;;  %s12145_s8 = inlined_call_operand.vmem [shape: f32[128,32], index: 8, kind: input, shape index: {}]   ;;  %s12146_s9 = inlined_call_operand.vmem [shape: s32[128,1], index: 9, kind: input, shape index: {}]   ;;  %s12147_s10 = inlined_call_operand.vmem [shape: f32[128,1], index: 10, kind: input, shape index: {}]   ;;  %s12148_s11 = inlined_call_operand.vmem [shape: f32[32,192], index: 11, kind: input, shape index: {}]   ;;  %s12149_s12 = inlined_call_operand.vmem [shape: f32[32,192], index: 12, kind: input, shape index: {}]   ;;  %s12150_s13 = inlined_call_operand.vmem [shape: f32[1,192], index: 13, kind: input, shape index: {}]   ;;  %s12151_s14 = inlined_call_operand.vmem [shape: f32[128,32], index: 14, kind: output, shape index: {0}]   ;;  %s12152_s15 = inlined_call_operand.vmem [shape: f32[128,32], index: 15, kind: output, shape index: {1}]  }
   0x1 LB: > { %s7091_s19 = sadd.s32 4294967295, %s9405_s18   ;;  %p7093_p0 = scmp.ge.s32.totalorder %s9405_s18, 1  ;;  %s9405_s18 = sphi %s9494_s18, %s26_s18  }
   0x2   : > { %p420_p1 = scmp.lt.s32.totalorder %s9405_s18, 5 }
   0x4   : > { %p421_p2 = pnand %p7093_p0, %p420_p1 }
   0x6   : > { %424 = sbr.rel (%p421_p2) target bundleno = 1723 (0x6bb), region = 76 }
   0xd   : > { %s9502_s20 = sshll.u32 %s7091_s19, 5  ;;  %p7095_p3 = scmp.ne.s32.totalorder %s7091_s19, 0 }
   0xe   : > { %vm463_vm0 = vcmask (!%p7095_p3), 523264   ;;  %v9407_v0 = vmov (!%p7095_p3), 0.0  }
   0xf   : > { %462 = sbr.rel (%p7095_p3) target bundleno = 31 (0x1f), region = 80  ;;  %464 = vst.msk [vmem:[#allocation2] sm:$0xff] (!%p7095_p3), %vm463_vm0, %v9407_v0  ;;  %465 = vst.msk [vmem:[#allocation2 + $0x8] sm:$0xff] (!%p7095_p3), %vm463_vm0, %v9407_v0 }
  0x10   : > { %466 = vst.msk [vmem:[#allocation2 + $0x10] sm:$0xff] (!%p7095_p3), %vm463_vm0, %v9407_v0  ;;  %467 = vst.msk [vmem:[#allocation2 + $0x18] sm:$0xff] (!%p7095_p3), %vm463_vm0, %v9407_v0 }
  0x11   : > { %468 = vst.msk [vmem:[#allocation2 + $0x20] sm:$0xff] (!%p7095_p3), %vm463_vm0, %v9407_v0  ;;  %469 = vst.msk [vmem:[#allocation2 + $0x28] sm:$0xff] (!%p7095_p3), %vm463_vm0, %v9407_v0 }
  0x12   : > { %470 = vst.msk [vmem:[#allocation2 + $0x30] sm:$0xff] (!%p7095_p3), %vm463_vm0, %v9407_v0  ;;  %471 = vst.msk [vmem:[#allocation2 + $0x38] sm:$0xff] (!%p7095_p3), %vm463_vm0, %v9407_v0 }
  0x13   : > { %472 = vst.msk [vmem:[#allocation2 + $0x40] sm:$0xff] (!%p7095_p3), %vm463_vm0, %v9407_v0  ;;  %473 = vst.msk [vmem:[#allocation2 + $0x48] sm:$0xff] (!%p7095_p3), %vm463_vm0, %v9407_v0 }
  0x14   : > { %474 = vst.msk [vmem:[#allocation2 + $0x50] sm:$0xff] (!%p7095_p3), %vm463_vm0, %v9407_v0  ;;  %475 = vst.msk [vmem:[#allocation2 + $0x58] sm:$0xff] (!%p7095_p3), %vm463_vm0, %v9407_v0 }
  0x15   : > { %476 = vst.msk [vmem:[#allocation2 + $0x60] sm:$0xff] (!%p7095_p3), %vm463_vm0, %v9407_v0  ;;  %477 = vst.msk [vmem:[#allocation2 + $0x68] sm:$0xff] (!%p7095_p3), %vm463_vm0, %v9407_v0 }
  0x16   : > { %478 = vst.msk [vmem:[#allocation2 + $0x70] sm:$0xff] %vm463_vm0, %v9407_v0  ;;  %479 = vst.msk [vmem:[#allocation2 + $0x78] sm:$0xff] %vm463_vm0, %v9407_v0 }
  0x17   : > { %480 = vst.msk [vmem:[#allocation3] sm:$0xff] %vm463_vm0, %v9407_v0  ;;  %481 = vst.msk [vmem:[#allocation3 + $0x8] sm:$0xff] %vm463_vm0, %v9407_v0 }
  0x18   : > { %482 = vst.msk [vmem:[#allocation3 + $0x10] sm:$0xff] %vm463_vm0, %v9407_v0  ;;  %483 = vst.msk [vmem:[#allocation3 + $0x18] sm:$0xff] %vm463_vm0, %v9407_v0 }
  0x19   : > { %484 = vst.msk [vmem:[#allocation3 + $0x20] sm:$0xff] %vm463_vm0, %v9407_v0  ;;  %485 = vst.msk [vmem:[#allocation3 + $0x28] sm:$0xff] %vm463_vm0, %v9407_v0 }
  0x1a   : > { %486 = vst.msk [vmem:[#allocation3 + $0x30] sm:$0xff] %vm463_vm0, %v9407_v0  ;;  %487 = vst.msk [vmem:[#allocation3 + $0x38] sm:$0xff] %vm463_vm0, %v9407_v0 }
  0x1b   : > { %488 = vst.msk [vmem:[#allocation3 + $0x40] sm:$0xff] %vm463_vm0, %v9407_v0  ;;  %489 = vst.msk [vmem:[#allocation3 + $0x48] sm:$0xff] %vm463_vm0, %v9407_v0 }
  0x1c   : > { %490 = vst.msk [vmem:[#allocation3 + $0x50] sm:$0xff] %vm463_vm0, %v9407_v0  ;;  %491 = vst.msk [vmem:[#allocation3 + $0x58] sm:$0xff] %vm463_vm0, %v9407_v0 }
  0x1d   : > { %492 = vst.msk [vmem:[#allocation3 + $0x60] sm:$0xff] %vm463_vm0, %v9407_v0  ;;  %493 = vst.msk [vmem:[#allocation3 + $0x68] sm:$0xff] %vm463_vm0, %v9407_v0 }
  0x1e   : > { %494 = vst.msk [vmem:[#allocation3 + $0x70] sm:$0xff] %vm463_vm0, %v9407_v0  ;;  %495 = vst.msk [vmem:[#allocation3 + $0x78] sm:$0xff] %vm463_vm0, %v9407_v0 }
  0x1f PF: > { %s9540_s23 = scalar_lea.vmem %s12139_s2, %s9502_s20  ;;  %s9546_s26 = scalar_lea.vmem %s12138_s1, %s9502_s20  ;;  %v527_v1 = vld [vmem:[#allocation2] sm:$0xff]  ;;  %v528_v2 = vld [vmem:[#allocation2 + $0x8] sm:$0xff]  ;;  %v9408_v4 = vmov 0   ;;  %vm2145_vm13 = vcmask 261120   ;;  %vm4559_vm14 = vcmask 523264  }
  0x20   : > { %v529_v3 = vld [vmem:[#allocation2 + $0x10] sm:$0xff]  ;;  %9318 = vset.pattern.permute.xlu1 %v9408_v4  ;;  %9317 = vset.pattern.permute.xlu0 %v9408_v4  ;;  %v1314_v5 = vld [vmem:[%s9540_s23] sm:$0xff]  ;;  %v544_v7 = vand.u32 4294901760, %v527_v1  ;;  %v547_v8 = vand.u32 4294901760, %v528_v2  ;;  %v1315_v10 = vld [vmem:[%s9540_s23 + $0x8] sm:$0xff]  ;;  %s9598_s29 = scalar_lea.vmem %s12146_s9, %s9502_s20  ;;  %s9411_s19 = smov 96  }
  0x21   : > { %v499_v6 = vld [vmem:[%s9546_s26] sm:$0xff]  ;;  %v550_v9 = vand.u32 4294901760, %v529_v3  ;;  %1319 = vperm.xlu0 %9317, %v1314_v5   ;;  %v500_v11 = vld [vmem:[%s9546_s26 + $0x8] sm:$0xff]  ;;  %v530_v18 = vld [vmem:[#allocation2 + $0x18] sm:$0xff]  ;;  %s9412_s25 = smov 64   ;;  %s11097_s17 = scalar_lea.vmem %s12137_s0, %s9502_s20 }
  0x22   : > { %504 = vperm.xlu1 %9318, %v499_v6   ;;  %v9552_v12 = vpack.c.bf16 %v547_v8, %v544_v7  ;;  %v9554_v13 = vsub.f32 %v527_v1, %v544_v7  ;;  %v9556_v14 = vsub.f32 %v528_v2, %v547_v8  ;;  %v531_v20 = vld [vmem:[#allocation2 + $0x20] sm:$0xff]  ;;  %v532_v21 = vld [vmem:[#allocation2 + $0x28] sm:$0xff]  ;;  %v553_v22 = vand.u32 4294901760, %v530_v18  ;;  %v533_v25 = vld [vmem:[#allocation2 + $0x30] sm:$0xff]  ;;  %s4500_s21 = scalar_lea.vmem %s12140_s3, %s9502_s20  ;;  %s6972_s24 = scalar_lea.vmem %s12147_s10, %s9502_s20 }
  0x23   : > { %v9558_v15 = vsub.f32 %v529_v3, %v550_v9  ;;  %v556_v23 = vand.u32 4294901760, %v531_v20  ;;  %v559_v24 = vand.u32 4294901760, %v532_v21  ;;  %v1316_v26 = vld [vmem:[%s9540_s23 + $0x10] sm:$0xff]  ;;  %v1317_v27 = vld [vmem:[%s9540_s23 + $0x18] sm:$0xff]  ;;  %v562_v31 = vand.u32 4294901760, %v533_v25  ;;  %v9582_v36 = vld [vmem:[#allocation2 + $0x40] sm:$0xff]  ;;  %s7021_s30 = scalar_lea.vmem %s12152_s15, %s9502_s20 }
  0x24   : > { %v667_v16 = vand.u32 4294901760, %v9554_v13  ;;  %v674_v17 = vand.u32 4294901760, %v9556_v14  ;;  %8203 = vmatprep.subr.bf16.mxu0 %v9552_v12  ;;  %v534_v30 = vld [vmem:[#allocation2 + $0x38] sm:$0xff]  ;;  %v9573_v32 = vpack.c.bf16 %v553_v22, %v550_v9  ;;  %v9578_v34 = vsub.f32 %v530_v18, %v553_v22  ;;  %v536_v37 = vld [vmem:[#allocation2 + $0x48] sm:$0xff]  ;;  %v501_v46 = vld [vmem:[%s9546_s26 + $0x10] sm:$0xff]  ;;  %s4558_s27 = scalar_lea.vmem [#allocation2], %s9502_s20 }
  0x25   : > { %v12168_v19 = vand.u32 4294901760, %v9558_v15  ;;  %1322 = vperm.xlu0 %9317, %v1315_v10   ;;  %8205 = vmatpush3.bf16.msra.mxu0 %v9552_v12  ;;  %v9580_v35 = vsub.f32 %v531_v20, %v556_v23  ;;  %v9584_v40 = vpack.c.bf16 %v559_v24, %v556_v23  ;;  %v9586_v41 = vsub.f32 %v532_v21, %v559_v24  ;;  %v502_v47 = vld [vmem:[%s9546_s26 + $0x18] sm:$0xff]  ;;  %v537_v56 = vld [vmem:[#allocation2 + $0x50] sm:$0xff]  ;;  %v4565_v62 = vld [vmem:[%s9598_s29] sm:$0xff]  ;;  %s4533_s26 = scalar_lea.vmem %s12151_s14, %s9502_s20 }
  0x26   : > { %507 = vperm.xlu1 %9318, %v500_v11   ;;  %v668_v28 = vsub.f32 %v9554_v13, %v667_v16  ;;  %v675_v29 = vsub.f32 %v9556_v14, %v674_v17  ;;  %v12167_v42 = vand.u32 4294901760, %v9578_v34  ;;  %v565_v44 = vand.u32 4294901760, %v534_v30  ;;  %8207 = vmatprep.subr.bf16.mxu0 %v9573_v32  ;;  %v538_v61 = vld [vmem:[#allocation2 + $0x58] sm:$0xff]  ;;  %v4566_v3 = vld [vmem:[%s9598_s29 + $0x8] sm:$0xff]  ;;  %v539_v8 = vld [vmem:[#allocation2 + $0x60] sm:$0xff] }
  0x27   : > { %v682_v33 = vsub.f32 %v9558_v15, %v12168_v19  ;;  %v12166_v43 = vand.u32 4294901760, %v9580_v35  ;;  %v9590_v45 = vsub.f32 %v533_v25, %v562_v31  ;;  %v12165_v49 = vand.u32 4294901760, %v9586_v41  ;;  %v540_v20 = vld [vmem:[#allocation2 + $0x68] sm:$0xff]  ;;  %v541_v25 = vld [vmem:[#allocation2 + $0x70] sm:$0xff] }
  0x28   : > { %v669_v38 = vand.u32 4294901760, %v668_v28  ;;  %v676_v39 = vand.u32 4294901760, %v675_v29  ;;  %v568_v50 = vand.u32 4294901760, %v9582_v36  ;;  %v571_v51 = vand.u32 4294901760, %v536_v37 }
  0x29   : > { %1325 = vperm.xlu0 %9317, %v1316_v26   ;;  %v683_v52 = vand.u32 4294901760, %v682_v33  ;;  %v689_v53 = vsub.f32 %v9578_v34, %v12167_v42  ;;  %v696_v54 = vsub.f32 %v9580_v35, %v12166_v43  ;;  %v12164_v55 = vand.u32 4294901760, %v9590_v45  ;;  %8209 = vmatpush3.bf16.msra.mxu0 %v9573_v32  ;;  %v4567_v26 = vld [vmem:[%s9598_s29 + $0x10] sm:$0xff] }
  0x2a   : > { %1328 = vperm.xlu1 %9318, %v1317_v27   ;;  %v9600_v48 = vpack.c.bf16 %v676_v39, %v669_v38  ;;  %v703_v57 = vsub.f32 %v9586_v41, %v12165_v49  ;;  %v9617_v58 = vpack.c.bf16 %v565_v44, %v562_v31  ;;  %v9619_v59 = vsub.f32 %v534_v30, %v565_v44  ;;  %v4568_v31 = vld [vmem:[%s9598_s29 + $0x18] sm:$0xff]  ;;  %s9413_s29 = smov 32  }
  0x2b   : > { %v9622_v60 = vsub.f32 %v9582_v36, %v568_v50  ;;  %v690_v63 = vand.u32 4294901760, %v689_v53  ;;  %v697_v0 = vand.u32 4294901760, %v696_v54  ;;  %v710_v1 = vsub.f32 %v9590_v45, %v12164_v55  ;;  %8211 = vmatprep.subr.bf16.mxu0 %v9584_v40  ;;  %v542_v39 = vld [vmem:[#allocation2 + $0x78] sm:$0xff] }
  0x2c   : > { %8427 = vmatprep.subr.bf16.mxu1 %v9600_v48  ;;  %v9628_v2 = vsub.f32 %v536_v37, %v571_v51  ;;  %v704_v4 = vand.u32 4294901760, %v703_v57  ;;  %v12163_v5 = vand.u32 4294901760, %v9619_v59  ;;  %v574_v7 = vand.u32 4294901760, %v537_v56 }
  0x2d   : > { %510 = vperm.xlu0 %9317, %v501_v46   ;;  %8429 = vmatpush3.bf16.msra.mxu1 %v9600_v48  ;;  %v12161_v6 = vand.u32 4294901760, %v9622_v60  ;;  %v9635_v9 = vpack.c.bf16 %v690_v63, %v683_v52  ;;  %v711_v10 = vand.u32 4294901760, %v710_v1  ;;  %v577_v18 = vand.u32 4294901760, %v538_v61 }
  0x2e   : > { %513 = vperm.xlu1 %9318, %v502_v47   ;;  %v12160_v11 = vand.u32 4294901760, %v9628_v2  ;;  %8213 = vmatpush3.bf16.msra.mxu0 %v9584_v40  ;;  %v9639_v21 = vpack.c.bf16 %v704_v4, %v697_v0  ;;  %v717_v22 = vsub.f32 %v9619_v59, %v12163_v5  ;;  %v9647_v24 = vsub.f32 %v537_v56, %v574_v7 }
  0x2f   : > { %v724_v23 = vsub.f32 %v9622_v60, %v12161_v6  ;;  %8215 = vmatprep.subr.bf16.mxu0 %v9617_v58  ;;  %v9651_v27 = vpack.c.bf16 %v571_v51, %v568_v50  ;;  %v9656_v29 = vsub.f32 %v538_v61, %v577_v18  ;;  %v580_v30 = vand.u32 4294901760, %v539_v8  ;;  %8431 = vmatprep.subr.bf16.mxu1 %v9635_v9 }
  0x30   : > { %v731_v28 = vsub.f32 %v9628_v2, %v12160_v11  ;;  %v718_v33 = vand.u32 4294901760, %v717_v22  ;;  %v12159_v37 = vand.u32 4294901760, %v9647_v24  ;;  %v583_v38 = vand.u32 4294901760, %v540_v20 }
  0x31   : > { %4570 = vperm.xlu0 %9317, %v4565_v62   ;;  %v725_v36 = vand.u32 4294901760, %v724_v23  ;;  %8433 = vmatpush3.bf16.msra.mxu1 %v9635_v9  ;;  %v12158_v46 = vand.u32 4294901760, %v9656_v29  ;;  %v9664_v47 = vsub.f32 %v539_v8, %v580_v30  ;;  %v586_v50 = vand.u32 4294901760, %v541_v25 }
  0x32   : > { %4573 = vperm.xlu1 %9318, %v4566_v3   ;;  %v732_v44 = vand.u32 4294901760, %v731_v28  ;;  %8217 = vmatpush3.bf16.msra.mxu0 %v9617_v58  ;;  %v9667_v51 = vpack.c.bf16 %v718_v33, %v711_v10  ;;  %v9669_v52 = vpack.c.bf16 %v577_v18, %v574_v7  ;;  %v738_v53 = vsub.f32 %v9647_v24, %v12159_v37 }
  0x33   : > { %8435 = vmatprep.subr.bf16.mxu1 %v9639_v21  ;;  %v9674_v54 = vsub.f32 %v540_v20, %v583_v38  ;;  %v745_v56 = vsub.f32 %v9656_v29, %v12158_v46  ;;  %v9679_v57 = vpack.c.bf16 %v583_v38, %v580_v30  ;;  %v12157_v61 = vand.u32 4294901760, %v9664_v47  ;;  %8219 = vmatprep.subr.bf16.mxu0 %v9651_v27 }
  0x34   : > { %v589_v62 = vand.u32 4294901760, %v542_v39  ;;  %v9682_v63 = vpack.c.bf16 %v732_v44, %v725_v36  ;;  %v9686_v1 = vsub.f32 %v541_v25, %v586_v50  ;;  %v9690_v3 = vpack.c.bf16 %v9578_v34, %v9558_v15 }
  0x35   : > { %4576 = vperm.xlu0 %9317, %v4567_v26   ;;  %v12156_v0 = vand.u32 4294901760, %v9674_v54  ;;  %8437 = vmatpush3.bf16.msra.mxu1 %v9639_v21  ;;  %v739_v4 = vand.u32 4294901760, %v738_v53  ;;  %v746_v7 = vand.u32 4294901760, %v745_v56  ;;  %v752_v8 = vsub.f32 %v9664_v47, %v12157_v61 }
  0x36   : > { %4579 = vperm.xlu1 %9318, %v4568_v31   ;;  %8221 = vmatpush3.bf16.msra.mxu0 %v9651_v27  ;;  %v9697_v10 = vsub.f32 %v542_v39, %v589_v62  ;;  %v12155_v20 = vand.u32 4294901760, %v9686_v1  ;;  %v9707_v22 = vpack.c.bf16 %v9586_v41, %v9580_v35  ;;  %v9711_v23 = vpack.c.bf16 %v9619_v59, %v9590_v45 }
  0x37   : > { %8439 = vmatprep.subr.bf16.mxu1 %v9667_v51  ;;  %v759_v18 = vsub.f32 %v9674_v54, %v12156_v0  ;;  %8223 = vmatprep.subr.bf16.mxu0 %v9669_v52  ;;  %v9716_v26 = vpack.c.bf16 %v9628_v2, %v9622_v60  ;;  %v9720_v28 = vpack.c.bf16 %v9656_v29, %v9647_v24  ;;  %v753_v33 = vand.u32 4294901760, %v752_v8 }
  0x38   : > { %v12154_v25 = vand.u32 4294901760, %v9697_v10  ;;  %v9723_v30 = vpack.c.bf16 %v746_v7, %v739_v4  ;;  %v9725_v31 = vpack.c.bf16 %v589_v62, %v586_v50  ;;  %v766_v38 = vsub.f32 %v9686_v1, %v12155_v20 }
  0x39   : > { %8441 = vmatpush3.bf16.msra.mxu1 %v9667_v51  ;;  %v760_v36 = vand.u32 4294901760, %v759_v18  ;;  %v9738_v44 = vpack.c.bf16 %v9674_v54, %v9664_v47  ;;  %v9748_v62 = vpack.c.bf16 %v9697_v10, %v9686_v1  ;;  %v9760_v7 = vpack.c.bf16 %v9556_v14, %v9554_v13 }
  0x3a   : > { %8225 = vmatpush3.bf16.msra.mxu0 %v9669_v52  ;;  %8443 = vmatprep.subr.bf16.mxu1 %v9682_v63  ;;  %v773_v39 = vsub.f32 %v9697_v10, %v12154_v25  ;;  %v767_v53 = vand.u32 4294901760, %v766_v38  ;;  %v9768_v8 = vpack.c.bf16 %v674_v17, %v667_v16  ;;  %v12153_v18 = vlaneseq }
  0x3b   : > { %8227 = vmatprep.subr.bf16.mxu0 %v9679_v57  ;;  %v9743_v50 = vpack.c.bf16 %v760_v36, %v753_v33  ;;  %v12172_v14 = vmov 1.0  }
  0x3c   : > { %v774_v56 = vand.u32 4294901760, %v773_v39  ;;  %v9771_v33 = vand.u32 127, %v12153_v18  ;;  %v12174_v39 = vmov 0.0  }
  0x3d   : > { %8445 = vmatpush3.bf16.msra.mxu1 %v9682_v63 }
  0x3e   : > { %8229 = vmatpush3.bf16.msra.mxu0 %v9679_v57  ;;  %8447 = vmatprep.subr.bf16.mxu1 %v9723_v30  ;;  %v9753_v4 = vpack.c.bf16 %v774_v56, %v767_v53 }
  0x3f   : > { %8231 = vmatprep.subr.bf16.mxu0 %v9725_v31 }
  0x41   : > { %8449 = vmatpush3.bf16.msra.mxu1 %v9723_v30 }
  0x42   : > { %8233 = vmatpush3.bf16.msra.mxu0 %v9725_v31  ;;  %8451 = vmatprep.subr.bf16.mxu1 %v9743_v50 }
  0x43   : > { %8235 = vmatprep.subr.bf16.mxu0 %v9600_v48 }
  0x45   : > { %8453 = vmatpush3.bf16.msra.mxu1 %v9743_v50 }
  0x46   : > { %8455 = vmatprep.subr.bf16.mxu1 %v9753_v4 }
  0x49   : > { %8457 = vmatpush3.bf16.msra.mxu1 %v9753_v4 }
  0x4a   : > { %8459 = vmatprep.subr.bf16.mxu1 %v9760_v7 }
  0xa0   : > { %v9773_v36 = vpop.permute.xlu0 %1319 }
  0xa1   : > { %v9775_v38 = vpop.permute.xlu1 %504  ;;  %vm1330_vm1 = vcmp.eq.s32.totalorder %v9773_v36, %v9771_v33  ;;  %v10140_v36 = vld [vmem:[#allocation3 + $0x10] sm:$0xff] }
  0xa2   : > { %vm515_vm2 = vcmp.eq.s32.totalorder %v9775_v38, %v9771_v33  ;;  %7816 = vmatprep.mubr.msk.f32.mxu1 %vm1330_vm1, %v12172_v14  ;;  %v7112_v16 = vsel %vm1330_vm1, 1.0, %v12174_v39 }
  0xa3   : > { %v7096_v13 = vsel %vm515_vm2, 1.0, %v12174_v39  ;;  %v9795_v53 = vsub.f32 %v7112_v16, %v7112_v16 }
  0xa4   : > { %v9793_v17 = vsub.f32 %v7096_v13, %v7096_v13  ;;  %v9797_v56 = vpop.permute.xlu0 %1322 }
  0xa5   : > { %v9799_v18 = vpop.permute.xlu1 %507  ;;  %vm1331_vm3 = vcmp.eq.s32.totalorder %v9797_v56, %v9771_v33  ;;  %v12171_v20 = vand.u32 4294901760, %v9795_v53 }
  0xa6   : > { %vm516_vm4 = vcmp.eq.s32.totalorder %v9799_v18, %v9771_v33  ;;  %v12162_v25 = vand.u32 4294901760, %v9793_v17  ;;  %v7113_v13 = vsel %vm1331_vm3, 1.0, %v12174_v39  ;;  %7817 = vmatmul.mubr.msk.f32.vlgmr.msra.gmra.mrb[0].mxu1 %vm1331_vm3, %v12172_v14 }
  0xa7   : > { %v7097_v16 = vsel %vm516_vm4, 1.0, %v12174_v39  ;;  %v9819_v0 = vsub.f32 %v7113_v13, %v7113_v13  ;;  %8461 = vmatpush3.bf16.msra.mxu1 %v9760_v7  ;;  %v9835_v6 = vsub.f32 %v9795_v53, %v12171_v20 }
  0xa8   : > { %v9821_v61 = vsub.f32 %v7097_v16, %v7097_v16  ;;  %v627_v46 = vsub.f32 %v9793_v17, %v12162_v25  ;;  %v9827_v37 = vpop.permute.xlu0 %1325  ;;  %8463 = vmatprep.subr.bf16.mxu1 %v9690_v3 }
  0xa9   : > { %v9829_v11 = vpop.permute.xlu1 %1328  ;;  %12243 = vst [vmem:[#allocation4_spill] sm:$0xff] %v9835_v6  ;;  %v12169_v13 = vand.u32 4294901760, %v9819_v0  ;;  %vm1332_vm5 = vcmp.eq.s32.totalorder %v9827_v37, %v9771_v33  ;;  %v10198_v37 = vld [vmem:[#allocation3 + $0x48] sm:$0xff] }
  0xaa   : > { %vm1333_vm6 = vcmp.eq.s32.totalorder %v9829_v11, %v9771_v33  ;;  %v628_v16 = vand.u32 4294901760, %v627_v46  ;;  %7819 = vmatprep.mubr.msk.f32.mxu1 %vm1332_vm5, %v12172_v14  ;;  %v12170_v25 = vand.u32 4294901760, %v9821_v61  ;;  %v7114_v5 = vsel %vm1332_vm5, 1.0, %v12174_v39  ;;  %v10218_v11 = vld [vmem:[#allocation3 + $0x50] sm:$0xff] }
  0xab   : > { %v7115_v55 = vsel %vm1333_vm6, 1.0, %v12174_v39  ;;  %v9858_v46 = vsub.f32 %v9819_v0, %v12169_v13  ;;  %8465 = vmatpush3.bf16.msra.mxu1 %v9690_v3  ;;  %v9861_v49 = vsub.f32 %v7114_v5, %v7114_v5 }
  0xac   : > { %7550 = vmatprep.mubr.f32.mxu0 %v628_v16  ;;  %v9863_v43 = vsub.f32 %v7115_v55, %v7115_v55  ;;  %7820 = vmatmul.mubr.msk.f32.gmra.mrb[2].mxu1 %vm1333_vm6, %v12172_v14  ;;  %v9869_v42 = vpop.permute.xlu0 %510  ;;  %v637_v13 = vsub.f32 %v9821_v61, %v12170_v25 }
  0xad   : > { %12244 = vst [vmem:[#allocation5_spill] sm:$0xff] %v9858_v46  ;;  %v9871_v19 = vpop.permute.xlu1 %513  ;;  %8467 = vmatprep.subr.bf16.mxu1 %v9707_v22  ;;  %vm517_vm7 = vcmp.eq.s32.totalorder %v9869_v42, %v9771_v33  ;;  %7854 = vmatprep.mubr.f32.mxu1 %v9795_v53  ;;  %v1445_v55 = vand.u32 4294901760, %v9861_v49 }
  0xae   : > { %vm518_vm8 = vcmp.eq.s32.totalorder %v9871_v19, %v9771_v33  ;;  %v7098_v5 = vsel %vm517_vm7, 1.0, %v12174_v39  ;;  %v638_v25 = vand.u32 4294901760, %v637_v13  ;;  %v12176_v20 = vand.u32 4294901760, %v9863_v43 }
  0xaf   : > { %v7099_v16 = vsel %vm518_vm8, 1.0, %v12174_v39  ;;  %v9892_v14 = vsub.f32 %v7098_v5, %v7098_v5  ;;  %8469 = vmatpush3.bf16.msra.mxu1 %v9707_v22  ;;  %v9901_v6 = vsub.f32 %v9861_v49, %v1445_v55 }
  0xb0   : > { %v9894_v46 = vsub.f32 %v7099_v16, %v7099_v16  ;;  %7551 = vmatmul.mubr.f32.vlgmr.msra.gmra.mrb[0].mxu0 %v638_v25  ;;  %8471 = vmatprep.subr.bf16.mxu1 %v9711_v23  ;;  %v9906_v13 = vsub.f32 %v9863_v43, %v12176_v20  ;;  %v12282_v18 = vld [vmem:[#allocation4_spill] sm:$0xff] }
  0xb1   : > { %8237 = vmatpush3.bf16.msra.mxu0 %v9600_v48  ;;  %v12177_v5 = vand.u32 4294901760, %v9892_v14 }
  0xb2   : > { %v656_v16 = vand.u32 4294901760, %v9894_v46  ;;  %8239 = vmatprep.subr.bf16.mxu0 %v9635_v9 }
  0xb3   : > { %8473 = vmatpush3.bf16.msra.mxu1 %v9711_v23  ;;  %v647_v25 = vsub.f32 %v9892_v14, %v12177_v5  ;;  %v12245_v5 = vmov 1.0  }
  0xb4   : > { %v657_v39 = vsub.f32 %v9894_v46, %v656_v16  ;;  %8475 = vmatprep.subr.bf16.mxu1 %v9716_v26 }
  0xb5   : > { %8241 = vmatpush3.bf16.msra.mxu0 %v9635_v9  ;;  %v648_v48 = vand.u32 4294901760, %v647_v25  ;;  %v12246_v9 = vand.u32 4294901760, %v9795_v53 }
  0xb6   : > { %8243 = vmatprep.subr.bf16.mxu0 %v9639_v21  ;;  %v658_v20 = vand.u32 4294901760, %v657_v39  ;;  %v10142_v39 = vld [vmem:[#allocation3 + $0x18] sm:$0xff] }
  0xb7   : > { %8477 = vmatpush3.bf16.msra.mxu1 %v9716_v26  ;;  %7553 = vmatprep.mubr.f32.mxu0 %v648_v48  ;;  %v4619_v53 = vand.u32 4294901760, %v10142_v39 }
  0xb8   : > { %7554 = vmatmul.mubr.f32.gmra.mrb[2].mxu0 %v658_v20  ;;  %8479 = vmatprep.subr.bf16.mxu1 %v9720_v28 }
  0xb9   : > { %8245 = vmatpush3.bf16.msra.mxu0 %v9639_v21  ;;  %7588 = vmatprep.mubr.msk.f32.mxu0 %vm515_vm2, %v12245_v5  ;;  %v12247_v21 = vand.u32 4294901760, %v9558_v15  ;;  %v12250_v15 = vand.u32 4294901760, %v9580_v35  ;;  %v12253_v35 = vand.u32 4294901760, %v9590_v45  ;;  %v12257_v45 = vand.u32 4294901760, %v9647_v24 }
  0xba   : > { %8247 = vmatprep.subr.bf16.mxu0 %v9667_v51 }
  0xbb   : > { %8481 = vmatpush3.bf16.msra.mxu1 %v9720_v28 }
  0xbc   : > { %8483 = vmatprep.subr.bf16.mxu1 %v9738_v44 }
  0xbd   : > { %8249 = vmatpush3.bf16.msra.mxu0 %v9667_v51  ;;  %v12248_v51 = vand.u32 4294901760, %v9578_v34  ;;  %v12251_v34 = vand.u32 4294901760, %v9586_v41  ;;  %v12254_v41 = vand.u32 4294901760, %v9619_v59  ;;  %v12258_v59 = vand.u32 4294901760, %v9656_v29 }
  0xbe   : > { %8251 = vmatprep.subr.bf16.mxu0 %v9682_v63  ;;  %v12262_v29 = vand.u32 4294901760, %v9686_v1  ;;  %v10114_v1 = vpop.permute.xlu0 %4570 }
  0xbf   : > { %8485 = vmatpush3.bf16.msra.mxu1 %v9738_v44  ;;  %v10008_v20 = vpack.c.bf16 %v12251_v34, %v12250_v15  ;;  %vm4581_vm9 = vcmp.eq.s32.totalorder %v10114_v1, %v9771_v33 }
  0xc0   : > { %8487 = vmatprep.subr.bf16.mxu1 %v9748_v62 }
  0xc1   : > { %8253 = vmatpush3.bf16.msra.mxu0 %v9682_v63  ;;  %v9994_v63 = vpack.c.bf16 %v12248_v51, %v12247_v21  ;;  %v10172_v51 = vld [vmem:[#allocation3 + $0x30] sm:$0xff] }
  0xc2   : > { %8255 = vmatprep.subr.bf16.mxu0 %v9723_v30  ;;  %v4628_v56 = vand.u32 4294901760, %v10172_v51 }
  0xc3   : > { %8489 = vmatpush3.bf16.msra.mxu1 %v9748_v62 }
  0xc4   : > { %8491 = vmatprep.subr.bf16.mxu1 %v9552_v12 }
  0xc5   : > { %8257 = vmatpush3.bf16.msra.mxu0 %v9723_v30  ;;  %v12263_v30 = vand.u32 4294901760, %v9697_v10  ;;  %v4594_v10 = vld [vmem:[#allocation3 + $0x8] sm:$0xff] }
  0xc6   : > { %7855 = vmatmul.mubr.f32.vlgmr.msra.gmra.mrb[0].mxu1 %v9819_v0  ;;  %8259 = vmatprep.subr.bf16.mxu0 %v9743_v50 }
  0xc7   : > { %7857 = vmatprep.mubr.f32.mxu1 %v9861_v49  ;;  %8493 = vmatpush3.bf16.msra.mxu1 %v9552_v12  ;;  %v10024_v49 = vpack.c.bf16 %v12254_v41, %v12253_v35 }
  0xc8   : > { %8495 = vmatprep.subr.bf16.mxu1 %v9573_v32 }
  0xc9   : > { %8261 = vmatpush3.bf16.msra.mxu0 %v9743_v50  ;;  %v12266_v50 = vmov 0.0  }
  0xca   : > { %7858 = vmatmul.mubr.f32.gmra.mrb[2].mxu1 %v9863_v43  ;;  %8263 = vmatprep.subr.bf16.mxu0 %v9753_v4 }
  0xcb   : > { %8497 = vmatpush3.bf16.msra.mxu1 %v9573_v32  ;;  %7892 = vmatprep.mubr.f32.mxu1 %v12246_v9 }
  0xcc   : > { %8499 = vmatprep.subr.bf16.mxu1 %v9584_v40 }
  0xcd   : > { %8265 = vmatpush3.bf16.msra.mxu0 %v9753_v4 }
  0xce   : > { %8267 = vmatprep.subr.bf16.mxu0 %v9760_v7 }
  0xcf   : > { %8501 = vmatpush3.bf16.msra.mxu1 %v9584_v40 }
  0xd0   : > { %7589 = vmatmul.mubr.msk.f32.vlgmr.msra.gmra.mrb[0].mxu0 %vm516_vm4, %v12245_v5  ;;  %8503 = vmatprep.subr.bf16.mxu1 %v9617_v58 }
  0xd1   : > { %7591 = vmatprep.mubr.msk.f32.mxu0 %vm517_vm7, %v12245_v5  ;;  %8269 = vmatpush3.bf16.msra.mxu0 %v9760_v7  ;;  %v4613_v7 = vand.u32 4294901760, %v4594_v10 }
  0xd2   : > { %8271 = vmatprep.subr.bf16.mxu0 %v9690_v3 }
  0xd3   : > { %8505 = vmatpush3.bf16.msra.mxu1 %v9617_v58 }
  0xd4   : > { %7592 = vmatmul.mubr.msk.f32.gmra.mrb[2].mxu0 %vm518_vm8, %v12245_v5  ;;  %8507 = vmatprep.subr.bf16.mxu1 %v9651_v27 }
  0xd5   : > { %8273 = vmatpush3.bf16.msra.mxu0 %v9690_v3  ;;  %7626 = vmatprep.mubr.f32.mxu0 %v9793_v17  ;;  %v12249_v3 = vand.u32 4294901760, %v9819_v0  ;;  %v12252_v0 = vand.u32 4294901760, %v9863_v43  ;;  %v12255_v43 = vand.u32 4294901760, %v9622_v60  ;;  %v10047_v60 = vpack.c.bf16 %v12258_v59, %v12257_v45 }
  0xd6   : > { %8275 = vmatprep.subr.bf16.mxu0 %v9707_v22  ;;  %v10232_v59 = vsub.f32 %v4594_v10, %v4613_v7  ;;  %v10281_v10 = vld [vmem:[#allocation3 + $0x70] sm:$0xff] }
  0xd7   : > { %8509 = vmatpush3.bf16.msra.mxu1 %v9651_v27 }
  0xd8   : > { %8511 = vmatprep.subr.bf16.mxu1 %v9669_v52 }
  0xd9   : > { %8277 = vmatpush3.bf16.msra.mxu0 %v9707_v22  ;;  %v12256_v22 = vand.u32 4294901760, %v9628_v2  ;;  %v12259_v2 = vand.u32 4294901760, %v9793_v17  ;;  %v4616_v17 = vand.u32 4294901760, %v10140_v36 }
  0xda   : > { %8279 = vmatprep.subr.bf16.mxu0 %v9711_v23 }
  0xdb   : > { %8513 = vmatpush3.bf16.msra.mxu1 %v9669_v52  ;;  %v10164_v25 = vpack.c.bf16 %v4619_v53, %v4616_v17 }
  0xdc   : > { %8515 = vmatprep.subr.bf16.mxu1 %v9679_v57 }
  0xdd   : > { %8281 = vmatpush3.bf16.msra.mxu0 %v9711_v23  ;;  %v10035_v23 = vpack.c.bf16 %v12256_v22, %v12255_v43  ;;  %v10220_v43 = vld [vmem:[#allocation3 + $0x58] sm:$0xff]  ;;  %v10226_v22 = vld [vmem:[#allocation3 + $0x60] sm:$0xff] }
  0xde   : > { %8283 = vmatprep.subr.bf16.mxu0 %v9716_v26 }
  0xdf   : > { %8517 = vmatpush3.bf16.msra.mxu1 %v9679_v57 }
  0xe0   : > { %8519 = vmatprep.subr.bf16.mxu1 %v9725_v31 }
  0xe1   : > { %8285 = vmatpush3.bf16.msra.mxu0 %v9716_v26  ;;  %v12260_v26 = vand.u32 4294901760, %v9664_v47  ;;  %v12264_v47 = vand.u32 4294901760, %v9821_v61 }
  0xe2   : > { %8287 = vmatprep.subr.bf16.mxu0 %v9720_v28 }
  0xe3   : > { %8521 = vmatpush3.bf16.msra.mxu1 %v9725_v31 }
  0xe4   : > { %8523 = vmatprep.subr.bf16.mxu1 %v9768_v8 }
  0xe5   : > { %8289 = vmatpush3.bf16.msra.mxu0 %v9720_v28  ;;  %v12261_v28 = vand.u32 4294901760, %v9674_v54  ;;  %v12265_v54 = vand.u32 4294901760, %v9892_v14 }
  0xe6   : > { %7893 = vmatmul.mubr.f32.vlgmr.msra.gmra.mrb[0].mxu1 %v12249_v3  ;;  %8291 = vmatprep.subr.bf16.mxu0 %v9738_v44 }
  0xe7   : > { %7895 = vmatprep.mubr.f32.mxu1 %v1445_v55  ;;  %8525 = vmatpush3.bf16.msra.mxu1 %v9768_v8  ;;  %v10059_v24 = vpack.c.bf16 %v12261_v28, %v12260_v26  ;;  %v10153_v55 = vld [vmem:[#allocation3 + $0x20] sm:$0xff]  ;;  %v12184_v28 = vand.u32 4294901760, %v10218_v11 }
  0xe8   : > { %8527 = vmatprep.subr.bf16.mxu1 %v9994_v63  ;;  %v4622_v48 = vand.u32 4294901760, %v10153_v55 }
  0xe9   : > { %8293 = vmatpush3.bf16.msra.mxu0 %v9738_v44  ;;  %v10069_v44 = vpack.c.bf16 %v12263_v30, %v12262_v29  ;;  %v12180_v30 = vand.u32 4294901760, %v10226_v22 }
  0xea   : > { %7896 = vmatmul.mubr.f32.gmra.mrb[2].mxu1 %v12252_v0  ;;  %8295 = vmatprep.subr.bf16.mxu0 %v9748_v62  ;;  %v10200_v0 = vpop.permute.xlu1 %4573 }
  0xeb   : > { %8529 = vmatpush3.bf16.msra.mxu1 %v9994_v63  ;;  %7930 = vmatprep.mubr.msk.f32.mxu1 %vm1330_vm1, %v12245_v5  ;;  %vm4582_vm10 = vcmp.eq.s32.totalorder %v10200_v0, %v9771_v33  ;;  %v2126_v0 = vld [vmem:[%s12142_s5 + $0x8] sm:$0xff] }
  0xec   : > { %8531 = vmatprep.subr.bf16.mxu1 %v10008_v20  ;;  %v7137_v29 = vsel %vm4582_vm10, 1.0, %v12266_v50 }
  0xed   : > { %8297 = vmatpush3.bf16.msra.mxu0 %v9748_v62  ;;  %v7136_v62 = vsel %vm4581_vm9, 1.0, %v12266_v50 }
  0xee   : > { %8299 = vmatprep.subr.bf16.mxu0 %v9552_v12 }
  0xef   : > { %8533 = vmatpush3.bf16.msra.mxu1 %v10008_v20 }
  0xf0   : > { %7627 = vmatmul.mubr.f32.vlgmr.msra.gmra.mrb[0].mxu0 %v9821_v61  ;;  %8535 = vmatprep.subr.bf16.mxu1 %v10024_v49  ;;  %v4593_v61 = vld [vmem:[#allocation3] sm:$0xff] }
  0xf1   : > { %7629 = vmatprep.mubr.f32.mxu0 %v9892_v14  ;;  %8301 = vmatpush3.bf16.msra.mxu0 %v9552_v12  ;;  %v4610_v4 = vand.u32 4294901760, %v4593_v61 }
  0xf2   : > { %8303 = vmatprep.subr.bf16.mxu0 %v9573_v32 }
  0xf3   : > { %8537 = vmatpush3.bf16.msra.mxu1 %v10024_v49  ;;  %v10147_v14 = vpack.c.bf16 %v4613_v7, %v4610_v4  ;;  %v10230_v45 = vsub.f32 %v4593_v61, %v4610_v4  ;;  %v10288_v4 = vsub.f32 %v10140_v36, %v4616_v17  ;;  %v10293_v7 = vsub.f32 %v10142_v39, %v4619_v53 }
  0xf4   : > { %7630 = vmatmul.mubr.f32.gmra.mrb[2].mxu0 %v9894_v46  ;;  %8539 = vmatprep.subr.bf16.mxu1 %v10035_v23  ;;  %v12188_v17 = vand.u32 4294901760, %v10281_v10 }
  0xf5   : > { %8305 = vmatpush3.bf16.msra.mxu0 %v9573_v32  ;;  %7664 = vmatprep.mubr.f32.mxu0 %v12259_v2  ;;  %v10236_v2 = vpop.permute.xlu1 %4579 }
  0xf6   : > { %8307 = vmatprep.subr.bf16.mxu0 %v9584_v40  ;;  %vm4584_vm12 = vcmp.eq.s32.totalorder %v10236_v2, %v9771_v33  ;;  %v2127_v2 = vld [vmem:[%s12142_s5 + $0x10] sm:$0xff] }
  0xf7   : > { %8541 = vmatpush3.bf16.msra.mxu1 %v10035_v23  ;;  %v7139_v39 = vsel %vm4584_vm12, 1.0, %v12266_v50 }
  0xf8   : > { %8543 = vmatprep.subr.bf16.mxu1 %v10047_v60 }
  0xf9   : > { %8309 = vmatpush3.bf16.msra.mxu0 %v9584_v40 }
  0xfa   : > { %8311 = vmatprep.subr.bf16.mxu0 %v9617_v58 }
  0xfb   : > { %8545 = vmatpush3.bf16.msra.mxu1 %v10047_v60 }
  0xfc   : > { %8547 = vmatprep.subr.bf16.mxu1 %v10059_v24 }
  0xfd   : > { %8313 = vmatpush3.bf16.msra.mxu0 %v9617_v58 }
  0xfe   : > { %8315 = vmatprep.subr.bf16.mxu0 %v9651_v27 }
  0xff   : > { %8549 = vmatpush3.bf16.msra.mxu1 %v10059_v24 }
 0x100   : > { %8551 = vmatprep.subr.bf16.mxu1 %v10069_v44 }
 0x101   : > { %8317 = vmatpush3.bf16.msra.mxu0 %v9651_v27 }
 0x102   : > { %8319 = vmatprep.subr.bf16.mxu0 %v9669_v52 }
 0x103   : > { %8553 = vmatpush3.bf16.msra.mxu1 %v10069_v44 }
 0x104   : > { %8555 = vmatprep.subr.bf16.mxu1 %v9552_v12 }
 0x105   : > { %8321 = vmatpush3.bf16.msra.mxu0 %v9669_v52 }
 0x106   : > { %7931 = vmatmul.mubr.msk.f32.vlgmr.msra.gmra.mrb[0].mxu1 %vm1331_vm3, %v12245_v5  ;;  %8323 = vmatprep.subr.bf16.mxu0 %v9679_v57 }
 0x107   : > { %7933 = vmatprep.mubr.msk.f32.mxu1 %vm1332_vm5, %v12245_v5  ;;  %8557 = vmatpush3.bf16.msra.mxu1 %v9552_v12 }
 0x108   : > { %8559 = vmatprep.subr.bf16.mxu1 %v9573_v32 }
 0x109   : > { %8325 = vmatpush3.bf16.msra.mxu0 %v9679_v57 }
 0x10a   : > { %7934 = vmatmul.mubr.msk.f32.gmra.mrb[2].mxu1 %vm1333_vm6, %v12245_v5  ;;  %8327 = vmatprep.subr.bf16.mxu0 %v9725_v31 }
 0x10b   : > { %8561 = vmatpush3.bf16.msra.mxu1 %v9573_v32  ;;  %7968 = vmatprep.mubr.msk.f32.mxu1 %vm1330_vm1, %v12245_v5 }
 0x10c   : > { %8563 = vmatprep.subr.bf16.mxu1 %v9584_v40 }
 0x10d   : > { %8329 = vmatpush3.bf16.msra.mxu0 %v9725_v31 }
 0x10e   : > { %8331 = vmatprep.subr.bf16.mxu0 %v9768_v8 }
 0x10f   : > { %8565 = vmatpush3.bf16.msra.mxu1 %v9584_v40 }
 0x110   : > { %7665 = vmatmul.mubr.f32.vlgmr.msra.gmra.mrb[0].mxu0 %v12264_v47  ;;  %8567 = vmatprep.subr.bf16.mxu1 %v9617_v58  ;;  %v12182_v47 = vand.u32 4294901760, %v10230_v45 }
 0x111   : > { %7667 = vmatprep.mubr.f32.mxu0 %v12265_v54  ;;  %8333 = vmatpush3.bf16.msra.mxu0 %v9768_v8  ;;  %v10137_v8 = vsub.f32 %v7136_v62, %v7136_v62  ;;  %v12183_v54 = vand.u32 4294901760, %v10232_v59  ;;  %v10283_v62 = vld [vmem:[#allocation3 + $0x78] sm:$0xff] }
 0x112   : > { %8335 = vmatprep.subr.bf16.mxu0 %v9994_v63  ;;  %v12187_v53 = vand.u32 4294901760, %v10283_v62 }
 0x113   : > { %8569 = vmatpush3.bf16.msra.mxu1 %v9617_v58  ;;  %v12178_v46 = vand.u32 4294901760, %v10137_v8 }
 0x114   : > { %7668 = vmatmul.mubr.f32.gmra.mrb[2].mxu0 %v656_v16  ;;  %8571 = vmatprep.subr.bf16.mxu1 %v9651_v27  ;;  %v10155_v16 = vld [vmem:[#allocation3 + $0x28] sm:$0xff] }
 0x115   : > { %8337 = vmatpush3.bf16.msra.mxu0 %v9994_v63  ;;  %7702 = vmatprep.mubr.msk.f32.mxu0 %vm515_vm2, %v12245_v5  ;;  %v4625_v9 = vand.u32 4294901760, %v10155_v16  ;;  %v4693_v21 = vsub.f32 %v10137_v8, %v12178_v46  ;;  %v10174_v63 = vld [vmem:[#allocation3 + $0x38] sm:$0xff]  ;;  %v12185_v46 = vand.u32 4294901760, %v10288_v4 }
 0x116   : > { %8339 = vmatprep.subr.bf16.mxu0 %v10008_v20  ;;  %v4631_v15 = vand.u32 4294901760, %v10174_v63 }
 0x117   : > { %8573 = vmatpush3.bf16.msra.mxu1 %v9651_v27  ;;  %v10191_v3 = vpack.c.bf16 %v4625_v9, %v4622_v48  ;;  %v4694_v34 = vand.u32 4294901760, %v4693_v21  ;;  %v10300_v21 = vsub.f32 %v7137_v29, %v7137_v29  ;;  %v4741_v29 = vsub.f32 %v10232_v59, %v12183_v54 }
 0x118   : > { %8575 = vmatprep.subr.bf16.mxu1 %v9669_v52  ;;  %v10213_v35 = vpack.c.bf16 %v4631_v15, %v4628_v56 }
 0x119   : > { %8341 = vmatpush3.bf16.msra.mxu0 %v10008_v20  ;;  %v10196_v20 = vld [vmem:[#allocation3 + $0x40] sm:$0xff]  ;;  %v12189_v54 = vand.u32 4294901760, %v10300_v21 }
 0x11a   : > { %8343 = vmatprep.subr.bf16.mxu0 %v10024_v49  ;;  %v4634_v41 = vand.u32 4294901760, %v10196_v20 }
 0x11b   : > { %8577 = vmatpush3.bf16.msra.mxu1 %v9669_v52 }
 0x11c   : > { %8579 = vmatprep.subr.bf16.mxu1 %v9679_v57 }
 0x11d   : > { %8345 = vmatpush3.bf16.msra.mxu0 %v10024_v49  ;;  %v4637_v49 = vand.u32 4294901760, %v10198_v37 }
 0x11e   : > { %8347 = vmatprep.subr.bf16.mxu0 %v10035_v23 }
 0x11f   : > { %8581 = vmatpush3.bf16.msra.mxu1 %v9679_v57  ;;  %v10247_v26 = vpack.c.bf16 %v4637_v49, %v4634_v41 }
 0x120   : > { %8583 = vmatprep.subr.bf16.mxu1 %v9725_v31 }
 0x121   : > { %8349 = vmatpush3.bf16.msra.mxu0 %v10035_v23  ;;  %v10228_v23 = vld [vmem:[#allocation3 + $0x68] sm:$0xff]  ;;  %12267 = vst [vmem:[#allocation6_spill] sm:$0xff] %v10247_v26 }
 0x122   : > { %8351 = vmatprep.subr.bf16.mxu0 %v10047_v60 }
 0x123   : > { %8585 = vmatpush3.bf16.msra.mxu1 %v9725_v31 }
 0x124   : > { %8731 = vmatprep.subr.bf16.mxu1 %v10147_v14 }
 0x125   : > { %8353 = vmatpush3.bf16.msra.mxu0 %v10047_v60  ;;  %v10234_v60 = vpop.permute.xlu0 %4576 }
 0x126   : > { %7969 = vmatmul.mubr.msk.f32.vlgmr.msra.gmra.mrb[0].mxu1 %vm1331_vm3, %v12245_v5  ;;  %8355 = vmatprep.subr.bf16.mxu0 %v10059_v24  ;;  %vm4583_vm11 = vcmp.eq.s32.totalorder %v10234_v60, %v9771_v33  ;;  %v2154_v33 = vand.u32 4294901760, %v2126_v0  ;;  %v2125_v60 = vld [vmem:[%s12142_s5] sm:$0xff] }
 0x127   : > { %7971 = vmatprep.mubr.msk.f32.mxu1 %vm1332_vm5, %v12245_v5  ;;  %8733 = vmatpush3.bf16.msra.mxu1 %v10147_v14  ;;  %v7138_v36 = vsel %vm4583_vm11, 1.0, %v12266_v50 }
 0x128   : > { %8735 = vmatprep.subr.bf16.mxu1 %v10164_v25 }
 0x129   : > { %8357 = vmatpush3.bf16.msra.mxu0 %v10059_v24  ;;  %v12181_v24 = vand.u32 4294901760, %v10220_v43 }
 0x12a   : > { %7972 = vmatmul.mubr.msk.f32.gmra.mrb[2].mxu1 %vm1333_vm6, %v12245_v5  ;;  %8359 = vmatprep.subr.bf16.mxu0 %v10069_v44 }
 0x12b   : > { %8737 = vmatpush3.bf16.msra.mxu1 %v10164_v25  ;;  %8006 = vmatprep.mubr.f32.mxu1 %v4694_v34  ;;  %v10279_v61 = vpack.c.bf16 %v12181_v24, %v12184_v28  ;;  %v4734_v34 = vsub.f32 %v10230_v45, %v12182_v47  ;;  %v10337_v24 = vsub.f32 %v10155_v16, %v4625_v9 }
 0x12c   : > { %8739 = vmatprep.subr.bf16.mxu1 %v10191_v3  ;;  %v10339_v47 = vsub.f32 %v7138_v36, %v7138_v36  ;;  %v10347_v28 = vsub.f32 %v10172_v51, %v4628_v56  ;;  %v10354_v16 = vsub.f32 %v7139_v39, %v7139_v39  ;;  %v4742_v36 = vand.u32 4294901760, %v4741_v29 }
 0x12d   : > { %8361 = vmatpush3.bf16.msra.mxu0 %v10069_v44  ;;  %v12179_v44 = vand.u32 4294901760, %v10228_v23  ;;  %12268 = vst [vmem:[#allocation7_spill] sm:$0xff] %v10279_v61  ;;  %v4735_v9 = vand.u32 4294901760, %v4734_v34  ;;  %v4748_v51 = vsub.f32 %v10288_v4, %v12185_v46  ;;  %v4703_v34 = vsub.f32 %v10300_v21, %v12189_v54 }
 0x12e   : > { %8363 = vmatprep.subr.bf16.mxu0 %v9552_v12  ;;  %v10390_v54 = vsub.f32 %v10198_v37, %v4637_v49  ;;  %v12272_v49 = vand.u32 4294901760, %v10347_v28 }
 0x12f   : > { %8741 = vmatpush3.bf16.msra.mxu1 %v10191_v3  ;;  %v10315_v38 = vpack.c.bf16 %v12179_v44, %v12180_v30  ;;  %v12186_v44 = vand.u32 4294901760, %v10293_v7  ;;  %v10332_v30 = vsub.f32 %v10153_v55, %v4622_v48  ;;  %v10352_v55 = vsub.f32 %v10174_v63, %v4631_v15 }
 0x130   : > { %7703 = vmatmul.mubr.msk.f32.vlgmr.msra.gmra.mrb[0].mxu0 %vm516_vm4, %v12245_v5  ;;  %8743 = vmatprep.subr.bf16.mxu1 %v10213_v35  ;;  %v10361_v48 = vpack.c.bf16 %v12187_v53, %v12188_v17  ;;  %v12190_v15 = vand.u32 4294901760, %v10337_v24  ;;  %v10385_v17 = vsub.f32 %v10196_v20, %v4634_v41  ;;  %v4749_v29 = vand.u32 4294901760, %v4748_v51 }
 0x131   : > { %7705 = vmatprep.mubr.msk.f32.mxu0 %vm517_vm7, %v12245_v5  ;;  %8365 = vmatpush3.bf16.msra.mxu0 %v9552_v12  ;;  %12269 = vst [vmem:[#allocation8_spill] sm:$0xff] %v10315_v38  ;;  %v4755_v63 = vsub.f32 %v10293_v7, %v12186_v44  ;;  %v12191_v56 = vand.u32 4294901760, %v10332_v30  ;;  %v12194_v46 = vand.u32 4294901760, %v10352_v55  ;;  %v8762_v44 = vpack.c.bf16 %v4742_v36, %v4735_v9 }
 0x132   : > { %8367 = vmatprep.subr.bf16.mxu0 %v9573_v32  ;;  %12270 = vst [vmem:[#allocation9_spill] sm:$0xff] %v10361_v48  ;;  %v4769_v36 = vsub.f32 %v10337_v24, %v12190_v15  ;;  %v12271_v20 = vand.u32 4294901760, %v10339_v47  ;;  %v4704_v37 = vand.u32 4294901760, %v4703_v34  ;;  %v4776_v51 = vsub.f32 %v10347_v28, %v12272_v49 }
 0x133   : > { %8745 = vmatpush3.bf16.msra.mxu1 %v10213_v35  ;;  %v4756_v39 = vand.u32 4294901760, %v4755_v63  ;;  %v4762_v9 = vsub.f32 %v10332_v30, %v12191_v56  ;;  %v4783_v63 = vsub.f32 %v10352_v55, %v12194_v46  ;;  %v12273_v53 = vand.u32 4294901760, %v10218_v11 }
 0x134   : > { %7706 = vmatmul.mubr.msk.f32.gmra.mrb[2].mxu0 %vm518_vm8, %v12245_v5  ;;  %8747 = vmatprep.subr.bf16.mxu1 %v10247_v26  ;;  %v4713_v41 = vsub.f32 %v10339_v47, %v12271_v20  ;;  %v12274_v20 = vand.u32 4294901760, %v10220_v43  ;;  %v12275_v49 = vand.u32 4294901760, %v10354_v16  ;;  %v4770_v15 = vand.u32 4294901760, %v4769_v36 }
 0x135   : > { %8369 = vmatpush3.bf16.msra.mxu0 %v9573_v32  ;;  %7740 = vmatprep.mubr.msk.f32.mxu0 %vm515_vm2, %v12245_v5  ;;  %v10416_v34 = vsub.f32 %v10218_v11, %v12273_v53  ;;  %v4777_v11 = vand.u32 4294901760, %v4776_v51  ;;  %v4784_v53 = vand.u32 4294901760, %v4783_v63  ;;  %v12280_v63 = vand.u32 4294901760, %v10281_v10 }
 0x136   : > { %8371 = vmatprep.subr.bf16.mxu0 %v9584_v40  ;;  %v4723_v46 = vsub.f32 %v10354_v16, %v12275_v49  ;;  %v4714_v56 = vand.u32 4294901760, %v4713_v41 }
 0x137   : > { %8749 = vmatpush3.bf16.msra.mxu1 %v10247_v26  ;;  %v12277_v26 = vand.u32 4294901760, %v10390_v54  ;;  %v10463_v49 = vsub.f32 %v10281_v10, %v12280_v63 }
 0x138   : > { %8751 = vmatprep.subr.bf16.mxu1 %v10279_v61  ;;  %v4724_v36 = vand.u32 4294901760, %v4723_v46 }
 0x139   : > { %8373 = vmatpush3.bf16.msra.mxu0 %v9584_v40 }
 0x13a   : > { %8375 = vmatprep.subr.bf16.mxu0 %v9617_v58 }
 0x13b   : > { %8753 = vmatpush3.bf16.msra.mxu1 %v10279_v61  ;;  %v4763_v61 = vand.u32 4294901760, %v4762_v9 }
 0x13c   : > { %8755 = vmatprep.subr.bf16.mxu1 %v10315_v38 }
 0x13d   : > { %8377 = vmatpush3.bf16.msra.mxu0 %v9617_v58  ;;  %v8770_v41 = vpack.c.bf16 %v4770_v15, %v4763_v61 }
 0x13e   : > { %8379 = vmatprep.subr.bf16.mxu0 %v9651_v27 }
 0x13f   : > { %8757 = vmatpush3.bf16.msra.mxu1 %v10315_v38  ;;  %v10421_v38 = vsub.f32 %v10220_v43, %v12274_v20  ;;  %v12276_v43 = vand.u32 4294901760, %v10385_v17 }
 0x140   : > { %8759 = vmatprep.subr.bf16.mxu1 %v10361_v48 }
 0x141   : > { %8381 = vmatpush3.bf16.msra.mxu0 %v9651_v27  ;;  %v4790_v20 = vsub.f32 %v10385_v17, %v12276_v43  ;;  %v4810_v9 = vand.u32 4294901760, %v10421_v38 }
 0x142   : > { %8383 = vmatprep.subr.bf16.mxu0 %v9669_v52 }
 0x143   : > { %8761 = vmatpush3.bf16.msra.mxu1 %v10361_v48  ;;  %v8766_v48 = vpack.c.bf16 %v4756_v39, %v4749_v29  ;;  %v4797_v39 = vsub.f32 %v10390_v54, %v12277_v26  ;;  %v4803_v29 = vand.u32 4294901760, %v10416_v34  ;;  %v8774_v26 = vpack.c.bf16 %v4784_v53, %v4777_v11 }
 0x144   : > { %8763 = vmatprep.subr.bf16.mxu1 %v8762_v44  ;;  %v4791_v46 = vand.u32 4294901760, %v4790_v20  ;;  %v12281_v11 = vand.u32 4294901760, %v10283_v62 }
 0x145   : > { %8385 = vmatpush3.bf16.msra.mxu0 %v9669_v52  ;;  %v4804_v61 = vsub.f32 %v10416_v34, %v4803_v29 }
 0x146   : > { %8007 = vmatmul.mubr.f32.vlgmr.msra.gmra.mrb[4].mxu1 %v4704_v37  ;;  %8387 = vmatprep.subr.bf16.mxu0 %v9679_v57  ;;  %v12278_v37 = vand.u32 4294901760, %v10226_v22  ;;  %v10468_v53 = vsub.f32 %v10283_v62, %v12281_v11  ;;  %v8810_v11 = vpack.c.bf16 %v10390_v54, %v10385_v17 }
 0x147   : > { %8009 = vmatprep.mubr.f32.mxu1 %v4714_v56  ;;  %8765 = vmatpush3.bf16.msra.mxu1 %v8762_v44  ;;  %v12279_v44 = vand.u32 4294901760, %v10228_v23  ;;  %v4805_v20 = vand.u32 4294901760, %v4804_v61 }
 0x148   : > { %8767 = vmatprep.subr.bf16.mxu1 %v8766_v48  ;;  %v10439_v56 = vsub.f32 %v10226_v22, %v12278_v37  ;;  %v4798_v22 = vand.u32 4294901760, %v4797_v39  ;;  %v1427_v37 = vand.u32 4294901760, %v12282_v18  ;;  %v12289_v18 = vand.u32 4294901760, %v10230_v45 }
 0x149   : > { %v10444_v51 = vsub.f32 %v10228_v23, %v12279_v44  ;;  %8389 = vmatpush3.bf16.msra.mxu0 %v9679_v57  ;;  %v4811_v23 = vsub.f32 %v10421_v38, %v4810_v9 }
 0x14a   : > { %8010 = vmatmul.mubr.f32.gmra.mrb[6].mxu1 %v4724_v36  ;;  %8391 = vmatprep.subr.bf16.mxu0 %v9725_v31  ;;  %v4817_v15 = vand.u32 4294901760, %v10439_v56  ;;  %v8778_v43 = vpack.c.bf16 %v4798_v22, %v4791_v46  ;;  %v4831_v36 = vand.u32 4294901760, %v10463_v49 }
 0x14b   : > { %8769 = vmatpush3.bf16.msra.mxu1 %v8766_v48  ;;  %8044 = vmatprep.mubr.msk.f32.mxu1 %vm4581_vm9, %v12245_v5  ;;  %v4824_v48 = vand.u32 4294901760, %v10444_v51  ;;  %v4812_v39 = vand.u32 4294901760, %v4811_v23 }
 0x14c   : > { %8771 = vmatprep.subr.bf16.mxu1 %v8770_v41  ;;  %v4818_v10 = vsub.f32 %v10439_v56, %v4817_v15  ;;  %v4832_v42 = vsub.f32 %v10463_v49, %v4831_v36 }
 0x14d   : > { %8393 = vmatpush3.bf16.msra.mxu0 %v9725_v31  ;;  %v4825_v62 = vsub.f32 %v10444_v51, %v4824_v48  ;;  %v8782_v44 = vpack.c.bf16 %v4812_v39, %v4805_v20  ;;  %v8814_v20 = vpack.c.bf16 %v10421_v38, %v10416_v34  ;;  %v12285_v39 = vld [vmem:[#allocation6_spill] sm:$0xff]  ;;  %v2156_v38 = vand.u32 4294901760, %v2125_v60 }
 0x14e   : > { %8395 = vmatprep.subr.bf16.mxu0 %v9552_v12  ;;  %v4819_v46 = vand.u32 4294901760, %v4818_v10  ;;  %v12286_v10 = vld [vmem:[#allocation7_spill] sm:$0xff] }
 0x14f   : > { %8773 = vmatpush3.bf16.msra.mxu1 %v8770_v41  ;;  %v4838_v41 = vand.u32 4294901760, %v10468_v53  ;;  %v4826_v22 = vand.u32 4294901760, %v4825_v62  ;;  %v12287_v62 = vld [vmem:[#allocation8_spill] sm:$0xff] }
 0x150   : > { %7741 = vmatmul.mubr.msk.f32.vlgmr.msra.gmra.mrb[0].mxu0 %vm516_vm4, %v12245_v5  ;;  %8775 = vmatprep.subr.bf16.mxu1 %v8774_v26 }
 0x151   : > { %7743 = vmatprep.mubr.msk.f32.mxu0 %vm517_vm7, %v12245_v5  ;;  %8397 = vmatpush3.bf16.msra.mxu0 %v9552_v12  ;;  %v4839_v12 = vsub.f32 %v10468_v53, %v4838_v41  ;;  %v8786_v19 = vpack.c.bf16 %v4826_v22, %v4819_v46  ;;  %v12291_v46 = vand.u32 4294901760, %v10288_v4  ;;  %v12292_v22 = vand.u32 4294901760, %v10293_v7 }
 0x152   : > { %8399 = vmatprep.subr.bf16.mxu0 %v9573_v32 }
 0x153   : > { %8777 = vmatpush3.bf16.msra.mxu1 %v8774_v26  ;;  %v4833_v26 = vand.u32 4294901760, %v4832_v42  ;;  %v4840_v61 = vand.u32 4294901760, %v4839_v12  ;;  %v8862_v42 = vpack.c.bf16 %v12292_v22, %v12291_v46  ;;  %v12293_v12 = vand.u32 4294901760, %v10300_v21 }
 0x154   : > { %7744 = vmatmul.mubr.msk.f32.gmra.mrb[2].mxu0 %vm518_vm8, %v12245_v5  ;;  %8779 = vmatprep.subr.bf16.mxu1 %v8778_v43 }
 0x155   : > { %8401 = vmatpush3.bf16.msra.mxu0 %v9573_v32  ;;  %7778 = vmatprep.mubr.f32.mxu0 %v1427_v37  ;;  %v8790_v23 = vpack.c.bf16 %v4840_v61, %v4833_v26  ;;  %v8794_v32 = vpack.c.bf16 %v10232_v59, %v10230_v45  ;;  %v12290_v37 = vand.u32 4294901760, %v10232_v59  ;;  %v12295_v45 = vand.u32 4294901760, %v10332_v30 }
 0x156   : > { %8403 = vmatprep.subr.bf16.mxu0 %v9584_v40  ;;  %v12296_v59 = vand.u32 4294901760, %v10337_v24  ;;  %v12297_v61 = vand.u32 4294901760, %v10354_v16 }
 0x157   : > { %8781 = vmatpush3.bf16.msra.mxu1 %v8778_v43  ;;  %v1457_v43 = vand.u32 4294901760, %v9906_v13  ;;  %v12284_v13 = vand.u32 4294901760, %v10137_v8 }
 0x158   : > { %8783 = vmatprep.subr.bf16.mxu1 %v8782_v44  ;;  %v8866_v26 = vpack.c.bf16 %v12296_v59, %v12295_v45 }
 0x159   : > { %8405 = vmatpush3.bf16.msra.mxu0 %v9584_v40  ;;  %v8798_v40 = vpack.c.bf16 %v10293_v7, %v10288_v4  ;;  %v12299_v4 = vand.u32 4294901760, %v10352_v55 }
 0x15a   : > { %8407 = vmatprep.subr.bf16.mxu0 %v9617_v58 }
 0x15b   : > { %8785 = vmatpush3.bf16.msra.mxu1 %v8782_v44  ;;  %v8858_v44 = vpack.c.bf16 %v12290_v37, %v12289_v18 }
 0x15c   : > { %8787 = vmatprep.subr.bf16.mxu1 %v8786_v19 }
 0x15d   : > { %8409 = vmatpush3.bf16.msra.mxu0 %v9617_v58  ;;  %v8802_v58 = vpack.c.bf16 %v10337_v24, %v10332_v30  ;;  %v12300_v24 = vand.u32 4294901760, %v10385_v17  ;;  %v12301_v30 = vand.u32 4294901760, %v10390_v54  ;;  %v8886_v54 = vpack.c.bf16 %v4838_v41, %v4831_v36 }
 0x15e   : > { %8411 = vmatprep.subr.bf16.mxu0 %v9651_v27  ;;  %v2160_v17 = vand.u32 4294901760, %v2127_v2 }
 0x15f   : > { %8789 = vmatpush3.bf16.msra.mxu1 %v8786_v19  ;;  %v12294_v19 = vand.u32 4294901760, %v10339_v47 }
 0x160   : > { %8791 = vmatprep.subr.bf16.mxu1 %v8790_v23  ;;  %v10677_v34 = vpack.c.bf16 %v2160_v17, %v2156_v38 }
 0x161   : > { %8413 = vmatpush3.bf16.msra.mxu0 %v9651_v27  ;;  %v8806_v27 = vpack.c.bf16 %v10352_v55, %v10347_v28 }
 0x162   : > { %8415 = vmatprep.subr.bf16.mxu0 %v9669_v52 }
 0x163   : > { %8793 = vmatpush3.bf16.msra.mxu1 %v8790_v23  ;;  %v10698_v23 = vsub.f32 %v2126_v0, %v2154_v33 }
 0x164   : > { %8795 = vmatprep.subr.bf16.mxu1 %v8794_v32 }
 0x165   : > { %8417 = vmatpush3.bf16.msra.mxu0 %v9669_v52  ;;  %v12283_v52 = vld [vmem:[#allocation5_spill] sm:$0xff] }
 0x166   : > { %8045 = vmatmul.mubr.msk.f32.vlgmr.msra.gmra.mrb[4].mxu1 %vm4582_vm10, %v12245_v5  ;;  %8419 = vmatprep.subr.bf16.mxu0 %v9679_v57  ;;  %v1437_v63 = vand.u32 4294901760, %v12283_v52 }
 0x167   : > { %8047 = vmatprep.mubr.msk.f32.mxu1 %vm4583_vm11, %v12245_v5  ;;  %8797 = vmatpush3.bf16.msra.mxu1 %v8794_v32 }
 0x168   : > { %8799 = vmatprep.subr.bf16.mxu1 %v8798_v40 }
 0x169   : > { %8421 = vmatpush3.bf16.msra.mxu0 %v9679_v57  ;;  %v1447_v57 = vand.u32 4294901760, %v9901_v6  ;;  %v8818_v6 = vpack.c.bf16 %v10444_v51, %v10439_v56 }
 0x16a   : > { %8048 = vmatmul.mubr.msk.f32.gmra.mrb[6].mxu1 %vm4584_vm12, %v12245_v5  ;;  %8423 = vmatprep.subr.bf16.mxu0 %v9725_v31 }
 0x16b   : > { %8801 = vmatpush3.bf16.msra.mxu1 %v8798_v40  ;;  %8082 = vmatprep.mubr.f32.mxu1 %v10137_v8  ;;  %v12288_v8 = vld [vmem:[#allocation9_spill] sm:$0xff]  ;;  %v10702_v40 = vsub.f32 %v2125_v60, %v2156_v38 }
 0x16c   : > { %8803 = vmatprep.subr.bf16.mxu1 %v8802_v58 }
 0x16d   : > { %8425 = vmatpush3.bf16.msra.mxu0 %v9725_v31  ;;  %v8822_v31 = vpack.c.bf16 %v10468_v53, %v10463_v49 }
 0x16f   : > { %8805 = vmatpush3.bf16.msra.mxu1 %v8802_v58  ;;  %v10704_v58 = vsub.f32 %v2127_v2, %v2160_v17 }
 0x170   : > { %7779 = vmatmul.mubr.f32.vlgmr.msra.gmra.mrb[4].mxu0 %v1437_v63  ;;  %8807 = vmatprep.subr.bf16.mxu1 %v8806_v27 }
 0x171   : > { %7781 = vmatprep.mubr.f32.mxu0 %v1447_v57 }
 0x173   : > { %8809 = vmatpush3.bf16.msra.mxu1 %v8806_v27 }
 0x174   : > { %7782 = vmatmul.mubr.f32.gmra.mrb[6].mxu0 %v1457_v43  ;;  %8811 = vmatprep.subr.bf16.mxu1 %v8810_v11 }
 0x175   : > { %2226 = vmatprep.mubr.f32.mxu0 %v12266_v50 }
 0x177   : > { %8813 = vmatpush3.bf16.msra.mxu1 %v8810_v11 }
 0x178   : > { %8815 = vmatprep.subr.bf16.mxu1 %v8814_v20 }
 0x17b   : > { %8817 = vmatpush3.bf16.msra.mxu1 %v8814_v20  ;;  %v2273_v20 = vand.u32 4294901760, %v10698_v23 }
 0x17c   : > { %8819 = vmatprep.subr.bf16.mxu1 %v8818_v6 }
 0x17f   : > { %8821 = vmatpush3.bf16.msra.mxu1 %v8818_v6 }
 0x180   : > { %8823 = vmatprep.subr.bf16.mxu1 %v8822_v31 }
 0x183   : > { %8825 = vmatpush3.bf16.msra.mxu1 %v8822_v31  ;;  %v2279_v31 = vand.u32 4294901760, %v10702_v40 }
 0x184   : > { %8827 = vmatprep.subr.bf16.mxu1 %v10147_v14 }
 0x186   : > { %8083 = vmatmul.mubr.f32.vlgmr.msra.gmra.mrb[4].mxu1 %v10300_v21  ;;  %v8874_v21 = vpack.c.bf16 %v12301_v30, %v12300_v24 }
 0x187   : > { %8085 = vmatprep.mubr.f32.mxu1 %v10339_v47  ;;  %8829 = vmatpush3.bf16.msra.mxu1 %v10147_v14  ;;  %v12298_v47 = vand.u32 4294901760, %v10347_v28  ;;  %v8882_v28 = vpack.c.bf16 %v4824_v48, %v4817_v15  ;;  %v2129_v15 = vld [vmem:[%s12142_s5 + $0x20] sm:$0xff]  ;;  %v2131_v48 = vld [vmem:[%s12142_s5 + $0x30] sm:$0xff] }
 0x188   : > { %8831 = vmatprep.subr.bf16.mxu1 %v10164_v25  ;;  %v2164_v49 = vand.u32 4294901760, %v2129_v15  ;;  %v2168_v53 = vand.u32 4294901760, %v2131_v48 }
 0x189   : > { %v8870_v7 = vpack.c.bf16 %v12299_v4, %v12298_v47 }
 0x18a   : > { %8086 = vmatmul.mubr.f32.gmra.mrb[6].mxu1 %v10354_v16  ;;  %v8878_v16 = vpack.c.bf16 %v4810_v9, %v4803_v29  ;;  %v2130_v29 = vld [vmem:[%s12142_s5 + $0x28] sm:$0xff]  ;;  %v2132_v9 = vld [vmem:[%s12142_s5 + $0x38] sm:$0xff]  ;;  %v10695_v41 = vpack.c.bf16 %v2168_v53, %v2164_v49  ;;  %v10711_v63 = vsub.f32 %v2129_v15, %v2164_v49  ;;  %v10713_v57 = vsub.f32 %v2131_v48, %v2168_v53 }
 0x18b   : > { %8833 = vmatpush3.bf16.msra.mxu1 %v10164_v25  ;;  %8120 = vmatprep.mubr.f32.mxu1 %v12284_v13  ;;  %v2162_v56 = vand.u32 4294901760, %v2130_v29  ;;  %v2166_v51 = vand.u32 4294901760, %v2132_v9  ;;  %v2291_v13 = vand.u32 4294901760, %v10704_v58 }
 0x18c   : > { %8835 = vmatprep.subr.bf16.mxu1 %v10191_v3  ;;  %v2303_v45 = vand.u32 4294901760, %v10711_v63  ;;  %v2315_v59 = vand.u32 4294901760, %v10713_v57 }
 0x18d   : > { %v10693_v36 = vpack.c.bf16 %v2166_v51, %v2162_v56  ;;  %v10707_v27 = vsub.f32 %v2130_v29, %v2162_v56  ;;  %v10709_v52 = vsub.f32 %v2132_v9, %v2166_v51  ;;  %v2292_v18 = vsub.f32 %v10704_v58, %v2291_v13 }
 0x18e   : > { %v2316_v24 = vsub.f32 %v10713_v57, %v2315_v59  ;;  %v10775_v49 = vpack.c.bf16 %v2291_v13, %v2279_v31 }
 0x18f   : > { %8837 = vmatpush3.bf16.msra.mxu1 %v10191_v3  ;;  %v2297_v22 = vand.u32 4294901760, %v10707_v27 }
 0x190   : > { %8839 = vmatprep.subr.bf16.mxu1 %v10213_v35 }
 0x193   : > { %8841 = vmatpush3.bf16.msra.mxu1 %v10213_v35 }
 0x194   : > { %8843 = vmatprep.subr.bf16.mxu1 %v12285_v39 }
 0x197   : > { %8845 = vmatpush3.bf16.msra.mxu1 %v12285_v39 }
 0x198   : > { %8847 = vmatprep.subr.bf16.mxu1 %v12286_v10 }
 0x19b   : > { %8849 = vmatpush3.bf16.msra.mxu1 %v12286_v10 }
 0x19c   : > { %8851 = vmatprep.subr.bf16.mxu1 %v12287_v62 }
 0x19f   : > { %8853 = vmatpush3.bf16.msra.mxu1 %v12287_v62 }
 0x1a0   : > { %8855 = vmatprep.subr.bf16.mxu1 %v12288_v8 }
 0x1a3   : > { %8857 = vmatpush3.bf16.msra.mxu1 %v12288_v8 }
 0x1a4   : > { %8859 = vmatprep.subr.bf16.mxu1 %v8858_v44 }
 0x1a6   : > { %8121 = vmatmul.mubr.f32.vlgmr.msra.gmra.mrb[4].mxu1 %v12293_v12 }
 0x1a7   : > { %8123 = vmatprep.mubr.f32.mxu1 %v12294_v19  ;;  %8861 = vmatpush3.bf16.msra.mxu1 %v8858_v44  ;;  %v2293_v19 = vand.u32 4294901760, %v2292_v18 }
 0x1a8   : > { %8863 = vmatprep.subr.bf16.mxu1 %v8862_v42 }
 0x1aa   : > { %8124 = vmatmul.mubr.f32.gmra.mrb[6].mxu1 %v12297_v61  ;;  %v2298_v61 = vsub.f32 %v10707_v27, %v2297_v22 }
 0x1ab   : > { %8865 = vmatpush3.bf16.msra.mxu1 %v8862_v42  ;;  %8158 = vmatprep.mubr.msk.f32.mxu1 %vm4581_vm9, %v12245_v5  ;;  %v2309_v42 = vand.u32 4294901760, %v10709_v52 }
 0x1ac   : > { %8867 = vmatprep.subr.bf16.mxu1 %v8866_v26  ;;  %v2299_v30 = vand.u32 4294901760, %v2298_v61 }
 0x1ad   : > { %v2310_v47 = vsub.f32 %v10709_v52, %v2309_v42  ;;  %v10777_v53 = vpack.c.bf16 %v2309_v42, %v2297_v22 }
 0x1af   : > { %8869 = vmatpush3.bf16.msra.mxu1 %v8866_v26 }
 0x1b0   : > { %8871 = vmatprep.subr.bf16.mxu1 %v8870_v7 }
 0x1b3   : > { %8873 = vmatpush3.bf16.msra.mxu1 %v8870_v7  ;;  %v2304_v7 = vsub.f32 %v10711_v63, %v2303_v45 }
 0x1b4   : > { %8875 = vmatprep.subr.bf16.mxu1 %v8874_v21 }
 0x1b7   : > { %8877 = vmatpush3.bf16.msra.mxu1 %v8874_v21  ;;  %v2311_v21 = vand.u32 4294901760, %v2310_v47 }
 0x1b8   : > { %8879 = vmatprep.subr.bf16.mxu1 %v8878_v16 }
 0x1bb   : > { %8881 = vmatpush3.bf16.msra.mxu1 %v8878_v16  ;;  %v2305_v16 = vand.u32 4294901760, %v2304_v7 }
 0x1bc   : > { %8883 = vmatprep.subr.bf16.mxu1 %v8882_v28 }
 0x1bf   : > { %8885 = vmatpush3.bf16.msra.mxu1 %v8882_v28  ;;  %v2317_v28 = vand.u32 4294901760, %v2316_v24  ;;  %v10827_v24 = vld [vmem:[%s12149_s12] sm:$0xff] }
 0x1c0   : > { %8887 = vmatprep.subr.bf16.mxu1 %v8886_v54 }
 0x1c1   : > { %v10751_v0 = vpack.c.bf16 %v2317_v28, %v2305_v16  ;;  %v12204_v28 = vand.u32 4294901760, %v10827_v24 }
 0x1c3   : > { %8889 = vmatpush3.bf16.msra.mxu1 %v8886_v54  ;;  %v10749_v54 = vpack.c.bf16 %v2311_v21, %v2299_v30  ;;  %v10832_v30 = vld [vmem:[%s12149_s12 + $0x10] sm:$0xff] }
 0x1c4   : > { %8891 = vmatprep.subr.bf16.mxu1 %v10147_v14 }
 0x1c6   : > { %8159 = vmatmul.mubr.msk.f32.vlgmr.msra.gmra.mrb[4].mxu1 %vm4582_vm10, %v12245_v5 }
 0x1c7   : > { %8161 = vmatprep.mubr.msk.f32.mxu1 %vm4583_vm11, %v12245_v5  ;;  %8893 = vmatpush3.bf16.msra.mxu1 %v10147_v14 }
 0x1c8   : > { %8895 = vmatprep.subr.bf16.mxu1 %v10164_v25 }
 0x1ca   : > { %8162 = vmatmul.mubr.msk.f32.gmra.mrb[6].mxu1 %vm4584_vm12, %v12245_v5 }
 0x1cb   : > { %8897 = vmatpush3.bf16.msra.mxu1 %v10164_v25  ;;  %8196 = vmatprep.mubr.msk.f32.mxu1 %vm4581_vm9, %v12245_v5 }
 0x1cc   : > { %8899 = vmatprep.subr.bf16.mxu1 %v10191_v3 }
 0x1cf   : > { %8901 = vmatpush3.bf16.msra.mxu1 %v10191_v3 }
 0x1d0   : > { %8903 = vmatprep.subr.bf16.mxu1 %v10213_v35 }
 0x1d3   : > { %8905 = vmatpush3.bf16.msra.mxu1 %v10213_v35  ;;  %v2128_v35 = vld [vmem:[%s12142_s5 + $0x18] sm:$0xff] }
 0x1d4   : > { %8907 = vmatprep.subr.bf16.mxu1 %v12285_v39 }
 0x1d7   : > { %8909 = vmatpush3.bf16.msra.mxu1 %v12285_v39  ;;  %v2274_v39 = vsub.f32 %v10698_v23, %v2273_v20 }
 0x1d8   : > { %8911 = vmatprep.subr.bf16.mxu1 %v12286_v10 }
 0x1d9   : > { %v2275_v44 = vand.u32 4294901760, %v2274_v39 }
 0x1db   : > { %8913 = vmatpush3.bf16.msra.mxu1 %v12286_v10 }
 0x1dc   : > { %8915 = vmatprep.subr.bf16.mxu1 %v12287_v62 }
 0x1df   : > { %8917 = vmatpush3.bf16.msra.mxu1 %v12287_v62 }
 0x1e0   : > { %8919 = vmatprep.subr.bf16.mxu1 %v12288_v8 }
 0x1e3   : > { %8921 = vmatpush3.bf16.msra.mxu1 %v12288_v8  ;;  %v2280_v8 = vsub.f32 %v10702_v40, %v2279_v31 }
 0x1e5   : > { %v2281_v12 = vand.u32 4294901760, %v2280_v8 }
 0x1e6   : > { %8197 = vmatmul.mubr.msk.f32.vlgmr.msra.gmra.mrb[4].mxu1 %vm4582_vm10, %v12245_v5 }
 0x1e7   : > { %8199 = vmatprep.mubr.msk.f32.mxu1 %vm4583_vm11, %v12245_v5  ;;  %v10745_v4 = vpack.c.bf16 %v2293_v19, %v2281_v12 }
 0x1ea   : > { %8200 = vmatmul.mubr.msk.f32.gmra.mrb[6].mxu1 %vm4584_vm12, %v12245_v5  ;;  %v2158_v5 = vand.u32 4294901760, %v2128_v35 }
 0x1eb   : > { %5641 = vmatprep.mubr.f32.mxu1 %v12266_v50 }
 0x1ec   : > { %v10675_v55 = vpack.c.bf16 %v2158_v5, %v2154_v33  ;;  %v10700_v32 = vsub.f32 %v2128_v35, %v2158_v5 }
 0x1ee   : > { %8587 = vmatprep.subr.bf16.mxu0 %v10675_v55  ;;  %v2285_v6 = vand.u32 4294901760, %v10700_v32  ;;  %v8602_v35 = vpack.c.bf16 %v10700_v32, %v10698_v23 }
 0x1ef   : > { %8589 = vmatpush1.bf16.msra.mxu0 %v10677_v34 }
 0x1f0   : > { %8591 = vmatprep.subr.bf16.mxu0 %v10693_v36  ;;  %v2286_v10 = vsub.f32 %v10700_v32, %v2285_v6  ;;  %v10773_v48 = vpack.c.bf16 %v2285_v6, %v2273_v20 }
 0x1f2   : > { %v2287_v46 = vand.u32 4294901760, %v2286_v10 }
 0x1f3   : > { %8593 = vmatpush1.bf16.msra.mxu0 %v10695_v41 }
 0x1f4   : > { %v8594_v26 = vpack.c.bf16 %v2287_v46, %v2275_v44 }
 0x1f6   : > { %8595 = vmatprep.subr.bf16.mxu0 %v8594_v26 }
 0x1f9   : > { %v10655_v1 = vpop.f32.mrb[0].mxu1 }
 0x1fa   : > { %v10657_v14 = vpop.f32.mrb[1].mxu1 }
 0x1fd   : > { %v10659_v25 = vpop.f32.mrb[2].mxu1 }
 0x1fe   : > { %v10661_v3 = vpop.f32.mrb[3].mxu1 }
 0x223   : > { %v10715_v11 = vpop.f32.mrb[0].mxu0 }
 0x224   : > { %2139 = vrot.lane.b32.xlu1 %v10715_v11, %s9411_s19  ;;  %v10719_v43 = vpop.f32.mrb[1].mxu0 }
 0x225   : > { %2137 = vrot.lane.b32.xlu0 %v10719_v43, %s9411_s19 }
 0x227   : > { %v10729_v62 = vpop.f32.mrb[2].mxu0 }
 0x228   : > { %2143 = vrot.lane.b32.xlu1 %v10729_v62, %s9411_s19  ;;  %v10735_v37 = vpop.f32.mrb[3].mxu0 }
 0x229   : > { %2141 = vrot.lane.b32.xlu0 %v10735_v37, %s9411_s19 }
 0x243   : > { %v7780_v2 = vpop.f32.mrb[4].mxu0 }
 0x244   : > { %v10762_v38 = vadd.f32 %v10655_v1, %v7780_v2  ;;  %v1429_v17 = vpop.f32.mrb[5].mxu0  ;;  %v10779_v1 = vpack.c.bf16 %v2315_v59, %v2303_v45  ;;  %v10807_v45 = vld [vmem:[%s12149_s12 + $0x8] sm:$0xff]  ;;  %v10812_v59 = vld [vmem:[%s12149_s12 + $0x18] sm:$0xff] }
 0x245   : > { %v10765_v29 = vadd.f32 %v10657_v14, %v1429_v17  ;;  %v12207_v7 = vand.u32 4294901760, %v10807_v45  ;;  %v12206_v16 = vand.u32 4294901760, %v10812_v59 }
 0x247   : > { %v7783_v9 = vpop.f32.mrb[6].mxu0 }
 0x248   : > { %v10768_v56 = vadd.f32 %v10659_v25, %v7783_v9  ;;  %v1449_v51 = vpop.f32.mrb[7].mxu0  ;;  %v10841_v9 = vsub.f32 %v10807_v45, %v12207_v7 }
 0x249   : > { %v10771_v15 = vadd.f32 %v10661_v3, %v1449_v51  ;;  %v12203_v51 = vand.u32 4294901760, %v10832_v30 }
 0x296   : > { %v2140_v39 = vpop.permute.xlu1 %2139 }
 0x297   : > { %v2148_v14 = vsel %vm2145_vm13, %v2140_v39, 0  ;;  %v2138_v10 = vpop.permute.xlu0 %2137  ;;  %v10847_v39 = vsub.f32 %v10812_v59, %v12206_v16 }
 0x298   : > { %v10782_v8 = vand.u32 4294901760, %v2148_v14  ;;  %v2146_v25 = vsel %vm2145_vm13, %v2138_v10, 0  ;;  %v10857_v10 = vld [vmem:[%s12149_s12 + $0x28] sm:$0xff] }
 0x299   : > { %v10785_v18 = vand.u32 4294901760, %v2146_v25 }
 0x29a   : > { %v10788_v3 = vsub.f32 %v2148_v14, %v10782_v8  ;;  %v2144_v20 = vpop.permute.xlu1 %2143  ;;  %v10852_v14 = vsub.f32 %v10827_v24, %v12204_v28 }
 0x29b   : > { %v10791_v6 = vsub.f32 %v2146_v25, %v10785_v18  ;;  %v2152_v31 = vsel %vm2145_vm13, %v2144_v20, 0  ;;  %v2142_v13 = vpop.permute.xlu0 %2141  ;;  %v10862_v25 = vld [vmem:[%s12149_s12 + $0x38] sm:$0xff] }
 0x29c   : > { %v12201_v44 = vand.u32 4294901760, %v10788_v3  ;;  %v10795_v46 = vand.u32 4294901760, %v2152_v31  ;;  %v2150_v22 = vsel %vm2145_vm13, %v2142_v13, 0  ;;  %v10868_v13 = vsub.f32 %v10832_v30, %v12203_v51  ;;  %v10887_v51 = vld [vmem:[%s12149_s12 + $0x30] sm:$0xff] }
 0x29d   : > { %v12202_v42 = vand.u32 4294901760, %v10791_v6  ;;  %v10799_v12 = vand.u32 4294901760, %v2150_v22 }
 0x29e   : > { %v10802_v19 = vsub.f32 %v2152_v31, %v10795_v46  ;;  %v2241_v47 = vsub.f32 %v10788_v3, %v12201_v44  ;;  %v12209_v31 = vand.u32 4294901760, %v10841_v9  ;;  %v12212_v44 = vand.u32 4294901760, %v10852_v14 }
 0x29f   : > { %v2230_v26 = vsub.f32 %v10791_v6, %v12202_v42  ;;  %v10818_v61 = vsub.f32 %v2150_v22, %v10799_v12  ;;  %v12210_v22 = vand.u32 4294901760, %v10857_v10  ;;  %v12213_v42 = vand.u32 4294901760, %v10862_v25 }
 0x2a0   : > { %v12205_v21 = vand.u32 4294901760, %v10802_v19  ;;  %v2242_v20 = vand.u32 4294901760, %v2241_v47 }
 0x2a1   : > { %v2231_v2 = vand.u32 4294901760, %v2230_v26  ;;  %v12208_v17 = vand.u32 4294901760, %v10818_v61  ;;  %v10874_v26 = vld [vmem:[%s12149_s12 + $0x20] sm:$0xff]  ;;  %v10900_v16 = vsub.f32 %v10857_v10, %v12210_v22 }
 0x2a2   : > { %v2263_v47 = vsub.f32 %v10802_v19, %v12205_v21  ;;  %v12214_v21 = vand.u32 4294901760, %v10868_v13 }
 0x2a3   : > { %2232 = vmatmul.mubr.f32.vlgmr.msra.gmra.mrb[8].mxu0 %v2231_v2  ;;  %v12211_v2 = vand.u32 4294901760, %v10847_v39  ;;  %v2252_v28 = vsub.f32 %v10818_v61, %v12208_v17  ;;  %v5546_v17 = vsub.f32 %v10852_v14, %v12212_v44  ;;  %v5563_v5 = vand.u32 4294901760, %v10900_v16 }
 0x2a4   : > { %2237 = vmatprep.mubr.f32.mxu0 %v12266_v50  ;;  %8597 = vmatpush1.bf16.msra.mxu0 %v10745_v4  ;;  %v5540_v4 = vsub.f32 %v10841_v9, %v12209_v31  ;;  %v12215_v31 = vand.u32 4294901760, %v10874_v26  ;;  %v5558_v22 = vsub.f32 %v10868_v13, %v12214_v21 }
 0x2a5   : > { %8599 = vmatprep.subr.bf16.mxu0 %v10749_v54  ;;  %v5552_v7 = vsub.f32 %v10847_v39, %v12211_v2  ;;  %v10911_v54 = vsub.f32 %v10862_v25, %v12213_v42  ;;  %v5547_v33 = vand.u32 4294901760, %v5546_v17  ;;  %v5564_v2 = vsub.f32 %v10900_v16, %v5563_v5 }
 0x2a6   : > { %v5541_v60 = vand.u32 4294901760, %v5540_v4  ;;  %v2253_v4 = vand.u32 4294901760, %v2252_v28  ;;  %v5559_v21 = vand.u32 4294901760, %v5558_v22 }
 0x2a7   : > { %2243 = vmatmul.mubr.f32.gmra.mrb[10].mxu0 %v2242_v20  ;;  %v5553_v44 = vand.u32 4294901760, %v5552_v7  ;;  %v12216_v42 = vand.u32 4294901760, %v10911_v54  ;;  %v10925_v20 = vsub.f32 %v10874_v26, %v12215_v31  ;;  %v5565_v32 = vand.u32 4294901760, %v5564_v2 }
 0x2a8   : > { %2248 = vmatprep.mubr.f32.mxu0 %v12266_v50  ;;  %8601 = vmatpush1.bf16.msra.mxu0 %v10751_v0  ;;  %v12302_v0 = vand.u32 4294901760, %v10887_v51  ;;  %v8932_v23 = vpack.c.bf16 %v5559_v21, %v5547_v33  ;;  %v8938_v2 = vpack.c.bf16 %v10847_v39, %v10841_v9 }
 0x2a9   : > { %8603 = vmatprep.subr.bf16.mxu0 %v8602_v35  ;;  %v8930_v17 = vpack.c.bf16 %v5553_v44, %v5541_v60  ;;  %v5576_v31 = vsub.f32 %v10911_v54, %v12216_v42  ;;  %v5569_v28 = vand.u32 4294901760, %v10925_v20  ;;  %v2264_v60 = vand.u32 4294901760, %v2263_v47 }
 0x2aa   : > { %v10936_v7 = vsub.f32 %v10887_v51, %v12302_v0  ;;  %v12304_v47 = vpack.c.bf16 %v10709_v52, %v10707_v27  ;;  %v8942_v52 = vpack.c.bf16 %v10911_v54, %v10900_v16 }
 0x2ab   : > { %2254 = vmatmul.mubr.f32.gmra.mrb[12].mxu0 %v2253_v4  ;;  %8931 = vmatprep.subr.bf16.mxu1 %v8930_v17  ;;  %v5577_v22 = vand.u32 4294901760, %v5576_v31  ;;  %v5570_v0 = vsub.f32 %v10925_v20, %v5569_v28  ;;  %v12303_v31 = vpack.c.bf16 %v10704_v58, %v10702_v40  ;;  %v12305_v17 = vpack.c.bf16 %v10713_v57, %v10711_v63 }
 0x2ac   : > { %v5581_v35 = vand.u32 4294901760, %v10936_v7  ;;  %2259 = vmatprep.mubr.f32.mxu0 %v12266_v50  ;;  %8933 = vmatpush1.bf16.msra.mxu1 %v8932_v23  ;;  %v12306_v57 = vand.u32 4294901760, %v10807_v45  ;;  %v12311_v45 = vand.u32 4294901760, %v10862_v25 }
 0x2ad   : > { %v8934_v42 = vpack.c.bf16 %v5577_v22, %v5565_v32  ;;  %v5571_v4 = vand.u32 4294901760, %v5570_v0  ;;  %v12307_v32 = vand.u32 4294901760, %v10812_v59  ;;  %v12308_v0 = vand.u32 4294901760, %v10827_v24 }
 0x2ae   : > { %v5582_v44 = vsub.f32 %v10936_v7, %v5581_v35 }
 0x2af   : > { %2265 = vmatmul.mubr.f32.gmra.mrb[14].mxu0 %v2264_v60  ;;  %8935 = vmatprep.subr.bf16.mxu1 %v8934_v42  ;;  %v8940_v42 = vpack.c.bf16 %v10868_v13, %v10852_v14  ;;  %v10984_v22 = vpack.c.bf16 %v12307_v32, %v12306_v57  ;;  %v12309_v60 = vand.u32 4294901760, %v10832_v30  ;;  %v12317_v30 = vand.u32 4294901760, %v10868_v13 }
 0x2b0   : > { %v5583_v33 = vand.u32 4294901760, %v5582_v44  ;;  %2375 = vmatprep.mubr.f32.mxu0 %v12266_v50 }
 0x2b1   : > { %v10991_v44 = vpack.c.bf16 %v12309_v60, %v12308_v0 }
 0x2b2   : > { %v8936_v21 = vpack.c.bf16 %v5583_v33, %v5571_v4 }
 0x2b3   : > { %2377 = vmatmul.mubr.f32.vlgmr.msra.gmra.mrb[8].mxu0 %v10785_v18 }
 0x2b4   : > { %8937 = vmatpush1.bf16.msra.mxu1 %v8936_v21  ;;  %2382 = vmatprep.mubr.f32.mxu0 %v12266_v50 }
 0x2b5   : > { %8605 = vmatpush1.bf16.msra.mxu0 %v12303_v31  ;;  %8939 = vmatprep.subr.bf16.mxu1 %v8938_v2  ;;  %v2123_v2 = vld [vmem:[%s12141_s4 + $0x30] sm:$0xff] }
 0x2b6   : > { %8607 = vmatprep.subr.bf16.mxu0 %v12304_v47  ;;  %v2121_v47 = vld [vmem:[%s12141_s4 + $0x20] sm:$0xff]  ;;  %v2870_v32 = vand.u32 4294901760, %v2123_v2 }
 0x2b7   : > { %2384 = vmatmul.mubr.f32.gmra.mrb[10].mxu0 %v10782_v8  ;;  %v2866_v57 = vand.u32 4294901760, %v2121_v47 }
 0x2b8   : > { %2389 = vmatprep.mubr.f32.mxu0 %v12266_v50 }
 0x2b9   : > { %8609 = vmatpush1.bf16.msra.mxu0 %v12305_v17  ;;  %v8198_v40 = vpop.f32.mrb[4].mxu1 }
 0x2ba   : > { %8611 = vmatprep.subr.bf16.mxu0 %v10675_v55  ;;  %v5357_v58 = vpop.f32.mrb[5].mxu1  ;;  %5406 = vrot.lane.b32.xlu1 %v8198_v40, %s9411_s19 }
 0x2bb   : > { %2391 = vmatmul.mubr.f32.gmra.mrb[12].mxu0 %v10799_v12  ;;  %5404 = vrot.lane.b32.xlu0 %v5357_v58, %s9411_s19 }
 0x2bc   : > { %2396 = vmatprep.mubr.f32.mxu0 %v12266_v50 }
 0x2bd   : > { %v8201_v27 = vpop.f32.mrb[6].mxu1 }
 0x2be   : > { %v5369_v23 = vpop.f32.mrb[7].mxu1  ;;  %5410 = vrot.lane.b32.xlu1 %v8201_v27, %s9411_s19 }
 0x2bf   : > { %2398 = vmatmul.mubr.f32.gmra.mrb[14].mxu0 %v10795_v46  ;;  %5408 = vrot.lane.b32.xlu0 %v5369_v23, %s9411_s19 }
 0x2c0   : > { %2484 = vmatprep.mubr.f32.mxu0 %v12266_v50 }
 0x2c2   : > { %3560 = vrot.lane.b32.xlu1 %v10762_v38, %s9411_s19  ;;  %v12310_v38 = vand.u32 4294901760, %v10857_v10 }
 0x2c3   : > { %2487 = vmatmul.mubr.f32.vlgmr.msra.gmra.mrb[8].mxu0 %v10791_v6  ;;  %3558 = vrot.lane.b32.xlu0 %v10765_v29, %s9411_s19  ;;  %v12312_v29 = vand.u32 4294901760, %v10874_v26  ;;  %v2124_v26 = vld [vmem:[%s12141_s4 + $0x38] sm:$0xff] }
 0x2c4   : > { %2492 = vmatprep.mubr.f32.mxu0 %v12266_v50  ;;  %8613 = vmatpush1.bf16.msra.mxu0 %v10677_v34  ;;  %v11010_v59 = vpack.c.bf16 %v12311_v45, %v12310_v38  ;;  %v2868_v31 = vand.u32 4294901760, %v2124_v26 }
 0x2c5   : > { %8615 = vmatprep.subr.bf16.mxu0 %v10693_v36 }
 0x2c6   : > { %3564 = vrot.lane.b32.xlu1 %v10768_v56, %s9411_s19  ;;  %v12313_v56 = vand.u32 4294901760, %v10887_v51 }
 0x2c7   : > { %2495 = vmatmul.mubr.f32.gmra.mrb[10].mxu0 %v10788_v3  ;;  %3562 = vrot.lane.b32.xlu0 %v10771_v15, %s9411_s19  ;;  %v12314_v15 = vand.u32 4294901760, %v10841_v9 }
 0x2c8   : > { %2500 = vmatprep.mubr.f32.mxu0 %v12266_v50  ;;  %8617 = vmatpush1.bf16.msra.mxu0 %v10695_v41  ;;  %v11019_v24 = vpack.c.bf16 %v12313_v56, %v12312_v29 }
 0x2c9   : > { %8619 = vmatprep.subr.bf16.mxu0 %v10773_v48  ;;  %v12315_v48 = vand.u32 4294901760, %v10847_v39 }
 0x2ca   : > { %4366 = vrot.lane.b32.xlu1 %v10715_v11, %s9412_s25 }
 0x2cb   : > { %2503 = vmatmul.mubr.f32.gmra.mrb[12].mxu0 %v10818_v61  ;;  %4364 = vrot.lane.b32.xlu0 %v10719_v43, %s9412_s25  ;;  %v11036_v11 = vpack.c.bf16 %v12315_v48, %v12314_v15  ;;  %v12316_v43 = vand.u32 4294901760, %v10852_v14  ;;  %v11149_v15 = vsub.f32 %v2124_v26, %v2868_v31  ;;  %v2115_v48 = vld [vmem:[%s11097_s17 + $0x10] sm:$0xff] }
 0x2cc   : > { %2508 = vmatprep.mubr.f32.mxu0 %v12266_v50 }
 0x2cd   : > { %v11043_v51 = vpack.c.bf16 %v12317_v30, %v12316_v43 }
 0x2ce   : > { %4370 = vrot.lane.b32.xlu1 %v10729_v62, %s9412_s25  ;;  %v12318_v62 = vand.u32 4294901760, %v10791_v6  ;;  %v12320_v6 = vand.u32 4294901760, %v10911_v54 }
 0x2cf   : > { %2511 = vmatmul.mubr.f32.gmra.mrb[14].mxu0 %v10802_v19  ;;  %4368 = vrot.lane.b32.xlu0 %v10735_v37, %s9412_s25  ;;  %v12319_v37 = vand.u32 4294901760, %v10788_v3 }
 0x2d0   : > { %2589 = vmatprep.mubr.f32.mxu0 %v12266_v50  ;;  %v11060_v9 = vpack.c.bf16 %v12320_v6, %v5563_v5  ;;  %v2118_v5 = vld [vmem:[%s12141_s4 + $0x8] sm:$0xff] }
 0x2d1   : > { %v2856_v3 = vand.u32 4294901760, %v2118_v5 }
 0x2d2   : > { %6866 = vrot.lane.b32.xlu1 %v8198_v40, %s9412_s25  ;;  %v2114_v40 = vld [vmem:[%s11097_s17 + $0x8] sm:$0xff] }
 0x2d3   : > { %2593 = vmatmul.mubr.f32.vlgmr.msra.gmra.mrb[8].mxu0 %v12318_v62  ;;  %6864 = vrot.lane.b32.xlu0 %v5357_v58, %s9412_s25  ;;  %v11089_v10 = vsub.f32 %v2118_v5, %v2856_v3  ;;  %v2848_v29 = vsel %vm2145_vm13, %v2114_v40, 0  ;;  %v11153_v62 = vpack.c.bf16 %v2870_v32, %v2866_v57  ;;  %v11164_v5 = vsub.f32 %v2123_v2, %v2870_v32 }
 0x2d4   : > { %2598 = vmatprep.mubr.f32.mxu0 %v12266_v50  ;;  %8621 = vmatpush1.bf16.msra.mxu0 %v10775_v49  ;;  %v11069_v49 = vpack.c.bf16 %v5581_v35, %v5569_v28 }
 0x2d5   : > { %8623 = vmatprep.subr.bf16.mxu0 %v10777_v53  ;;  %v12321_v53 = vand.u32 4294901760, %v10818_v61  ;;  %v2975_v28 = vand.u32 4294901760, %v11089_v10  ;;  %v12323_v13 = vand.u32 4294901760, %v11164_v5 }
 0x2d6   : > { %6870 = vrot.lane.b32.xlu1 %v8201_v27, %s9412_s25 }
 0x2d7   : > { %2602 = vmatmul.mubr.f32.gmra.mrb[10].mxu0 %v12319_v37  ;;  %6868 = vrot.lane.b32.xlu0 %v5369_v23, %s9412_s25  ;;  %v2976_v58 = vsub.f32 %v11089_v10, %v2975_v28  ;;  %v11155_v37 = vsub.f32 %v2121_v47, %v2866_v57 }
 0x2d8   : > { %2607 = vmatprep.mubr.f32.mxu0 %v12266_v50  ;;  %8625 = vmatpush1.bf16.msra.mxu0 %v10779_v1  ;;  %v12322_v1 = vand.u32 4294901760, %v10802_v19  ;;  %v2122_v19 = vld [vmem:[%s12141_s4 + $0x28] sm:$0xff] }
 0x2d9   : > { %8627 = vmatprep.subr.bf16.mxu0 %v10675_v55  ;;  %v2120_v55 = vld [vmem:[%s12141_s4 + $0x18] sm:$0xff]  ;;  %v2864_v21 = vand.u32 4294901760, %v2122_v19  ;;  %v2977_v43 = vand.u32 4294901760, %v2976_v58 }
 0x2da   : > { %v2860_v39 = vand.u32 4294901760, %v2120_v55 }
 0x2db   : > { %2611 = vmatmul.mubr.f32.gmra.mrb[12].mxu0 %v12321_v53  ;;  %v11144_v45 = vpack.c.bf16 %v2868_v31, %v2864_v21  ;;  %v11147_v56 = vsub.f32 %v2122_v19, %v2864_v21  ;;  %v11160_v53 = vand.u32 4294901760, %v2848_v29  ;;  %v3005_v21 = vand.u32 4294901760, %v11155_v37 }
 0x2dc   : > { %2616 = vmatprep.mubr.f32.mxu0 %v12266_v50  ;;  %v11087_v61 = vpack.c.bf16 %v2860_v39, %v2856_v3  ;;  %v11091_v25 = vsub.f32 %v2120_v55, %v2860_v39  ;;  %v2851_v55 = vsel %vm2145_vm13, %v2115_v48, 0  ;;  %v2116_v3 = vld [vmem:[%s11097_s17 + $0x18] sm:$0xff]  ;;  %v12217_v31 = vand.u32 4294901760, %v11164_v5 }
 0x2dd   : > { %v11176_v26 = vsub.f32 %v2848_v29, %v11160_v53  ;;  %v3006_v29 = vsub.f32 %v11155_v37, %v3005_v21 }
 0x2de   : > { %v2987_v35 = vand.u32 4294901760, %v11091_v25 }
 0x2df   : > { %2620 = vmatmul.mubr.f32.gmra.mrb[14].mxu0 %v12322_v1  ;;  %v2942_v40 = vand.u32 4294901760, %v11176_v26 }
 0x2e0   : > { %2714 = vmatprep.mubr.f32.mxu0 %v12266_v50  ;;  %v2988_v27 = vsub.f32 %v11091_v25, %v2987_v35 }
 0x2e2   : > { %v2989_v30 = vand.u32 4294901760, %v2988_v27 }
 0x2e3   : > { %2716 = vmatmul.mubr.f32.vlgmr.msra.gmra.mrb[8].mxu0 %v10785_v18 }
 0x2e4   : > { %2721 = vmatprep.mubr.f32.mxu0 %v12266_v50  ;;  %8629 = vmatpush1.bf16.msra.mxu0 %v10677_v34  ;;  %v2117_v34 = vld [vmem:[%s12141_s4] sm:$0xff]  ;;  %v8642_v39 = vpack.c.bf16 %v2989_v30, %v2977_v43 }
 0x2e5   : > { %8631 = vmatprep.subr.bf16.mxu0 %v10693_v36  ;;  %v2119_v36 = vld [vmem:[%s12141_s4 + $0x10] sm:$0xff]  ;;  %v2858_v4 = vand.u32 4294901760, %v2117_v34 }
 0x2e6   : > { %v2862_v33 = vand.u32 4294901760, %v2119_v36 }
 0x2e7   : > { %2723 = vmatmul.mubr.f32.gmra.mrb[10].mxu0 %v10782_v8  ;;  %v11140_v60 = vsub.f32 %v2117_v34, %v2858_v4  ;;  %v2999_v34 = vand.u32 4294901760, %v11147_v56 }
 0x2e8   : > { %2728 = vmatprep.mubr.f32.mxu0 %v12266_v50  ;;  %8633 = vmatpush1.bf16.msra.mxu0 %v10695_v41  ;;  %v2113_v41 = vld [vmem:[%s11097_s17] sm:$0xff]  ;;  %v11135_v23 = vpack.c.bf16 %v2862_v33, %v2858_v4  ;;  %v11142_v38 = vsub.f32 %v2119_v36, %v2862_v33  ;;  %v3011_v36 = vand.u32 4294901760, %v11149_v15  ;;  %v2854_v4 = vsel %vm2145_vm13, %v2116_v3, 0  ;;  %s11553_s17 = scalar_lea.vmem %s12145_s8, %s9502_s20 }
 0x2e9   : > { %8635 = vmatprep.subr.bf16.mxu0 %v11087_v61  ;;  %v2845_v17 = vsel %vm2145_vm13, %v2113_v41, 0  ;;  %v2981_v1 = vand.u32 4294901760, %v11140_v60  ;;  %v11178_v41 = vand.u32 4294901760, %v2851_v55  ;;  %v3000_v47 = vsub.f32 %v11147_v56, %v2999_v34 }
 0x2ea   : > { %v11137_v0 = vand.u32 4294901760, %v2845_v17  ;;  %v3012_v2 = vsub.f32 %v11149_v15, %v3011_v36  ;;  %v11205_v27 = vand.u32 4294901760, %v2854_v4 }
 0x2eb   : > { %2730 = vmatmul.mubr.f32.gmra.mrb[12].mxu0 %v10799_v12  ;;  %v2982_v33 = vsub.f32 %v11140_v60, %v2981_v1  ;;  %v11203_v58 = vsub.f32 %v2851_v55, %v11178_v41  ;;  %v3001_v48 = vand.u32 4294901760, %v3000_v47  ;;  %v2943_v55 = vsub.f32 %v11176_v26, %v2942_v40 }
 0x2ec   : > { %2735 = vmatprep.mubr.f32.mxu0 %v12266_v50  ;;  %v11158_v6 = vsub.f32 %v2845_v17, %v11137_v0  ;;  %v3013_v43 = vand.u32 4294901760, %v3012_v2 }
 0x2ed   : > { %v2983_v57 = vand.u32 4294901760, %v2982_v33  ;;  %v2953_v3 = vand.u32 4294901760, %v11203_v58  ;;  %v2944_v47 = vand.u32 4294901760, %v2943_v55 }
 0x2ee   : > { %v2931_v19 = vand.u32 4294901760, %v11158_v6 }
 0x2ef   : > { %2737 = vmatmul.mubr.f32.gmra.mrb[14].mxu0 %v10795_v46 }
 0x2f0   : > { %2815 = vmatprep.mubr.f32.mxu0 %v12266_v50  ;;  %v2932_v17 = vsub.f32 %v11158_v6, %v2931_v19 }
 0x2f2   : > { %v2933_v30 = vand.u32 4294901760, %v2932_v17 }
 0x2f3   : > { %2817 = vmatmul.mubr.f32.vlgmr.msra.gmra.mrb[8].mxu0 %v10785_v18  ;;  %v2993_v18 = vand.u32 4294901760, %v11142_v38 }
 0x2f4   : > { %2822 = vmatprep.mubr.f32.mxu0 %v12266_v50  ;;  %8637 = vmatpush1.bf16.msra.mxu0 %v11135_v23 }
 0x2f5   : > { %8639 = vmatprep.subr.bf16.mxu0 %v11144_v45 }
 0x2f7   : > { %2824 = vmatmul.mubr.f32.gmra.mrb[10].mxu0 %v10782_v8  ;;  %v2994_v8 = vsub.f32 %v11142_v38, %v2993_v18 }
 0x2f8   : > { %2829 = vmatprep.mubr.f32.mxu0 %v12266_v50  ;;  %8641 = vmatpush1.bf16.msra.mxu0 %v11153_v62 }
 0x2f9   : > { %8643 = vmatprep.subr.bf16.mxu0 %v8642_v39  ;;  %v2995_v32 = vand.u32 4294901760, %v2994_v8  ;;  %v11220_v39 = vsub.f32 %v2854_v4, %v11205_v27  ;;  %v3007_v8 = vand.u32 4294901760, %v3006_v29  ;;  %v8650_v4 = vpack.c.bf16 %v11091_v25, %v11089_v10 }
 0x2fb   : > { %2831 = vmatmul.mubr.f32.gmra.mrb[12].mxu0 %v10799_v12  ;;  %v3018_v12 = vsub.f32 %v11164_v5, %v12217_v31  ;;  %v8644_v33 = vpack.c.bf16 %v2995_v32, %v2983_v57  ;;  %v8646_v31 = vpack.c.bf16 %v3013_v43, %v3001_v48  ;;  %v2964_v2 = vand.u32 4294901760, %v11220_v39 }
 0x2fc   : > { %2836 = vmatprep.mubr.f32.mxu0 %v12266_v50  ;;  %v8666_v48 = vpack.c.bf16 %v2987_v35, %v2975_v28 }
 0x2fd   : > { %v3019_v63 = vand.u32 4294901760, %v3018_v12  ;;  %v2965_v32 = vsub.f32 %v11220_v39, %v2964_v2  ;;  %v8656_v12 = vpack.c.bf16 %v11164_v5, %v11155_v37 }
 0x2ff   : > { %2838 = vmatmul.mubr.f32.gmra.mrb[14].mxu0 %v10795_v46  ;;  %v2954_v46 = vsub.f32 %v11203_v58, %v2953_v3  ;;  %v8648_v17 = vpack.c.bf16 %v3019_v63, %v3007_v8  ;;  %v2966_v29 = vand.u32 4294901760, %v2965_v32  ;;  %v8652_v63 = vpack.c.bf16 %v11142_v38, %v11140_v60  ;;  %v3552_v32 = vld [vmem:[%s12143_s6 + $0x30] sm:$0xff] }
 0x300   : > { %2928 = vmatprep.mubr.f32.mxu0 %v12266_v50  ;;  %v8668_v8 = vpack.c.bf16 %v2993_v18, %v2981_v1 }
 0x301   : > { %v2955_v57 = vand.u32 4294901760, %v2954_v46 }
 0x303   : > { %2934 = vmatmul.mubr.f32.vlgmr.msra.gmra.mrb[8].mxu0 %v2933_v30 }
 0x304   : > { %2939 = vmatprep.mubr.f32.mxu0 %v12266_v50  ;;  %8645 = vmatpush1.bf16.msra.mxu0 %v8644_v33 }
 0x305   : > { %8647 = vmatprep.subr.bf16.mxu0 %v8646_v31  ;;  %v8654_v31 = vpack.c.bf16 %v11149_v15, %v11147_v56 }
 0x307   : > { %2945 = vmatmul.mubr.f32.gmra.mrb[10].mxu0 %v2944_v47 }
 0x308   : > { %2950 = vmatprep.mubr.f32.mxu0 %v12266_v50  ;;  %8649 = vmatpush1.bf16.msra.mxu0 %v8648_v17 }
 0x309   : > { %8651 = vmatprep.subr.bf16.mxu0 %v8650_v4  ;;  %v8670_v4 = vpack.c.bf16 %v3011_v36, %v2999_v34 }
 0x30b   : > { %2956 = vmatmul.mubr.f32.gmra.mrb[12].mxu0 %v2955_v57 }
 0x30c   : > { %2961 = vmatprep.mubr.f32.mxu0 %v12266_v50 }
 0x30f   : > { %2967 = vmatmul.mubr.f32.gmra.mrb[14].mxu0 %v2966_v29 }
 0x310   : > { %3077 = vmatprep.mubr.f32.mxu0 %v12266_v50 }
 0x313   : > { %3079 = vmatmul.mubr.f32.vlgmr.msra.gmra.mrb[8].mxu0 %v11137_v0 }
 0x314   : > { %3084 = vmatprep.mubr.f32.mxu0 %v12266_v50  ;;  %8653 = vmatpush1.bf16.msra.mxu0 %v8652_v63 }
 0x315   : > { %8655 = vmatprep.subr.bf16.mxu0 %v8654_v31 }
 0x317   : > { %3086 = vmatmul.mubr.f32.gmra.mrb[10].mxu0 %v11160_v53 }
 0x318   : > { %3091 = vmatprep.mubr.f32.mxu0 %v12266_v50  ;;  %8657 = vmatpush1.bf16.msra.mxu0 %v8656_v12 }
 0x319   : > { %8659 = vmatprep.subr.bf16.mxu0 %v11087_v61 }
 0x31b   : > { %3093 = vmatmul.mubr.f32.gmra.mrb[12].mxu0 %v11178_v41 }
 0x31c   : > { %3098 = vmatprep.mubr.f32.mxu0 %v12266_v50 }
 0x31f   : > { %3100 = vmatmul.mubr.f32.gmra.mrb[14].mxu0 %v11205_v27 }
 0x320   : > { %3186 = vmatprep.mubr.f32.mxu0 %v12266_v50 }
 0x323   : > { %3189 = vmatmul.mubr.f32.vlgmr.msra.gmra.mrb[8].mxu0 %v11158_v6 }
 0x324   : > { %3194 = vmatprep.mubr.f32.mxu0 %v12266_v50  ;;  %8661 = vmatpush1.bf16.msra.mxu0 %v11135_v23 }
 0x325   : > { %8663 = vmatprep.subr.bf16.mxu0 %v11144_v45 }
 0x327   : > { %3197 = vmatmul.mubr.f32.gmra.mrb[10].mxu0 %v11176_v26 }
 0x328   : > { %3202 = vmatprep.mubr.f32.mxu0 %v12266_v50  ;;  %8665 = vmatpush1.bf16.msra.mxu0 %v11153_v62 }
 0x329   : > { %8667 = vmatprep.subr.bf16.mxu0 %v8666_v48 }
 0x32b   : > { %3205 = vmatmul.mubr.f32.gmra.mrb[12].mxu0 %v11203_v58 }
 0x32c   : > { %v5407_v43 = vpop.permute.xlu1 %5406  ;;  %3210 = vmatprep.mubr.f32.mxu0 %v12266_v50 }
 0x32d   : > { %v5414_v30 = vsel %vm2145_vm13, %v5407_v43, 0  ;;  %v5405_v55 = vpop.permute.xlu0 %5404 }
 0x32e   : > { %v11265_v33 = vand.u32 4294901760, %v5414_v30  ;;  %v5412_v10 = vsel %vm2145_vm13, %v5405_v55, 0 }
 0x32f   : > { %v11268_v25 = vand.u32 4294901760, %v5412_v10  ;;  %3213 = vmatmul.mubr.f32.gmra.mrb[14].mxu0 %v11220_v39 }
 0x330   : > { %v11272_v28 = vsub.f32 %v5414_v30, %v11265_v33  ;;  %v5411_v35 = vpop.permute.xlu1 %5410  ;;  %3291 = vmatprep.mubr.f32.mxu0 %v12266_v50 }
 0x331   : > { %v11280_v47 = vsub.f32 %v5412_v10, %v11268_v25  ;;  %v5418_v46 = vsel %vm2145_vm13, %v5411_v35, 0  ;;  %5643 = vmatmul.mubr.f32.vlgmr.msra.gmra.mrb[8].mxu1 %v11268_v25  ;;  %v5409_v17 = vpop.permute.xlu0 %5408  ;;  %v3588_v35 = vand.u32 4294901760, %v3552_v32 }
 0x332   : > { %v11288_v57 = vand.u32 4294901760, %v5418_v46  ;;  %8941 = vmatpush1.bf16.msra.mxu1 %v8940_v42  ;;  %v5416_v60 = vsel %vm2145_vm13, %v5409_v17, 0  ;;  %5648 = vmatprep.mubr.f32.mxu1 %v12266_v50  ;;  %v5506_v38 = vand.u32 4294901760, %v11272_v28  ;;  %v8672_v42 = vpack.c.bf16 %v12323_v13, %v3005_v21 }
 0x333   : > { %v5495_v1 = vand.u32 4294901760, %v11280_v47  ;;  %v11297_v18 = vand.u32 4294901760, %v5416_v60  ;;  %3295 = vmatmul.mubr.f32.vlgmr.msra.gmra.mrb[8].mxu0 %v2931_v19  ;;  %8943 = vmatprep.subr.bf16.mxu1 %v8942_v52  ;;  %v12324_v52 = vpack.c.bf16 %v10936_v7, %v10925_v20  ;;  %v3547_v7 = vld [vmem:[%s12143_s6 + $0x8] sm:$0xff] }
 0x334   : > { %v11305_v14 = vsub.f32 %v5418_v46, %v11288_v57  ;;  %3300 = vmatprep.mubr.f32.mxu0 %v12266_v50  ;;  %8669 = vmatpush1.bf16.msra.mxu0 %v8668_v8  ;;  %v11315_v56 = vsub.f32 %v11272_v28, %v5506_v38  ;;  %v3574_v5 = vand.u32 4294901760, %v3547_v7  ;;  %v11421_v43 = vpop.permute.xlu1 %3560 }
 0x335   : > { %v11320_v16 = vsub.f32 %v11280_v47, %v5495_v1  ;;  %v11323_v54 = vsub.f32 %v5416_v60, %v11297_v18  ;;  %5650 = vmatmul.mubr.f32.gmra.mrb[10].mxu1 %v11265_v33  ;;  %8671 = vmatprep.subr.bf16.mxu0 %v8670_v4  ;;  %v11401_v58 = vpop.permute.xlu0 %3558  ;;  %12328 = vst [vmem:[#allocation7_spill] sm:$0xff] %v11421_v43 }
 0x336   : > { %5655 = vmatprep.mubr.f32.mxu1 %v12266_v50  ;;  %8945 = vmatpush1.bf16.msra.mxu1 %v12324_v52  ;;  %v5528_v15 = vand.u32 4294901760, %v11305_v14  ;;  %v11374_v19 = vsub.f32 %v3547_v7, %v3574_v5  ;;  %12327 = vst [vmem:[#allocation6_spill] sm:$0xff] %v11401_v58  ;;  %v3566_v48 = vsel %vm2145_vm13, %v11401_v58, 0  ;;  %v3568_v52 = vsel %vm2145_vm13, %v11421_v43, 0  ;;  %v5382_v58 = vld [vmem:[%s11553_s17 + $0x10] sm:$0xff] }
 0x337   : > { %3304 = vmatmul.mubr.f32.gmra.mrb[10].mxu0 %v2942_v40  ;;  %8947 = vmatprep.subr.bf16.mxu1 %v10984_v22  ;;  %v5517_v37 = vand.u32 4294901760, %v11323_v54  ;;  %v3553_v40 = vld [vmem:[%s12143_s6 + $0x38] sm:$0xff]  ;;  %v11435_v4 = vand.u32 4294901760, %v3566_v48 }
 0x338   : > { %3309 = vmatprep.mubr.f32.mxu0 %v12266_v50  ;;  %8673 = vmatpush1.bf16.msra.mxu0 %v8672_v42  ;;  %v11339_v6 = vsub.f32 %v11305_v14, %v5528_v15  ;;  %v12231_v21 = vand.u32 4294901760, %v11374_v19  ;;  %v3586_v63 = vand.u32 4294901760, %v3553_v40 }
 0x339   : > { %5657 = vmatmul.mubr.f32.gmra.mrb[12].mxu1 %v11297_v18  ;;  %8675 = vmatprep.subr.bf16.mxu0 %v11087_v61  ;;  %v11346_v20 = vsub.f32 %v11323_v54, %v5517_v37  ;;  %v3549_v61 = vld [vmem:[%s12143_s6 + $0x18] sm:$0xff]  ;;  %v11445_v7 = vpop.permute.xlu0 %3562 }
 0x33a   : > { %12325 = vst [vmem:[#allocation4_spill] sm:$0xff] %v11339_v6  ;;  %5662 = vmatprep.mubr.f32.mxu1 %v12266_v50  ;;  %v3578_v34 = vand.u32 4294901760, %v3549_v61  ;;  %v3694_v31 = vsub.f32 %v11374_v19, %v12231_v21  ;;  %v11433_v17 = vsub.f32 %v3553_v40, %v3586_v63  ;;  %12329 = vst [vmem:[#allocation8_spill] sm:$0xff] %v11445_v7  ;;  %v11473_v40 = vpop.permute.xlu1 %3564 }
 0x33b   : > { %12326 = vst [vmem:[#allocation5_spill] sm:$0xff] %v11346_v20  ;;  %3313 = vmatmul.mubr.f32.gmra.mrb[12].mxu0 %v2953_v3  ;;  %12330 = vst [vmem:[#allocation9_spill] sm:$0xff] %v11473_v40 }
 0x33c   : > { %3318 = vmatprep.mubr.f32.mxu0 %v12266_v50  ;;  %v11372_v36 = vpack.c.bf16 %v3578_v34, %v3574_v5  ;;  %v11376_v26 = vsub.f32 %v3549_v61, %v3578_v34  ;;  %v3695_v13 = vand.u32 4294901760, %v3694_v31 }
 0x33d   : > { %5664 = vmatmul.mubr.f32.gmra.mrb[14].mxu1 %v11288_v57 }
 0x33e   : > { %5750 = vmatprep.mubr.f32.mxu1 %v12266_v50 }
 0x33f   : > { %3322 = vmatmul.mubr.f32.gmra.mrb[14].mxu0 %v2964_v2  ;;  %v3550_v2 = vld [vmem:[%s12143_s6 + $0x20] sm:$0xff] }
 0x340   : > { %3416 = vmatprep.mubr.f32.mxu0 %v12266_v50  ;;  %v3584_v10 = vand.u32 4294901760, %v3550_v2 }
 0x341   : > { %5753 = vmatmul.mubr.f32.vlgmr.msra.gmra.mrb[8].mxu1 %v11280_v47 }
 0x342   : > { %8949 = vmatpush1.bf16.msra.mxu1 %v10991_v44  ;;  %5758 = vmatprep.mubr.f32.mxu1 %v12266_v50  ;;  %v11449_v61 = vpack.c.bf16 %v3588_v35, %v3584_v10  ;;  %v11455_v5 = vsub.f32 %v3550_v2, %v3584_v10 }
 0x343   : > { %3418 = vmatmul.mubr.f32.vlgmr.msra.gmra.mrb[8].mxu0 %v11137_v0  ;;  %8951 = vmatprep.subr.bf16.mxu1 %v11010_v59 }
 0x344   : > { %3423 = vmatprep.mubr.f32.mxu0 %v12266_v50  ;;  %8677 = vmatpush1.bf16.msra.mxu0 %v11135_v23  ;;  %v3546_v23 = vld [vmem:[%s12143_s6] sm:$0xff] }
 0x345   : > { %5761 = vmatmul.mubr.f32.gmra.mrb[10].mxu1 %v11272_v28  ;;  %8679 = vmatprep.subr.bf16.mxu0 %v11144_v45  ;;  %v3548_v45 = vld [vmem:[%s12143_s6 + $0x10] sm:$0xff]  ;;  %v3576_v3 = vand.u32 4294901760, %v3546_v23 }
 0x346   : > { %5766 = vmatprep.mubr.f32.mxu1 %v12266_v50  ;;  %8953 = vmatpush1.bf16.msra.mxu1 %v11019_v24  ;;  %v3580_v39 = vand.u32 4294901760, %v3548_v45 }
 0x347   : > { %3425 = vmatmul.mubr.f32.gmra.mrb[10].mxu0 %v11160_v53  ;;  %8955 = vmatprep.subr.bf16.mxu1 %v11036_v11  ;;  %v12230_v11 = vand.u32 4294901760, %v11376_v26  ;;  %v11424_v30 = vsub.f32 %v3546_v23, %v3576_v3  ;;  %v11461_v23 = vand.u32 4294901760, %v3568_v52 }
 0x348   : > { %3430 = vmatprep.mubr.f32.mxu0 %v12266_v50  ;;  %8681 = vmatpush1.bf16.msra.mxu0 %v11153_v62  ;;  %v3551_v62 = vld [vmem:[%s12143_s6 + $0x28] sm:$0xff]  ;;  %v11426_v55 = vsub.f32 %v3548_v45, %v3580_v39  ;;  %v11429_v8 = vpack.c.bf16 %v3580_v39, %v3576_v3  ;;  %v12219_v3 = vand.u32 4294901760, %v11455_v5 }
 0x349   : > { %5769 = vmatmul.mubr.f32.gmra.mrb[12].mxu1 %v11323_v54  ;;  %8683 = vmatprep.subr.bf16.mxu0 %v11372_v36  ;;  %v3582_v29 = vand.u32 4294901760, %v3551_v62  ;;  %v3706_v12 = vsub.f32 %v11376_v26, %v12230_v11  ;;  %v12227_v47 = vand.u32 4294901760, %v11424_v30  ;;  %v11494_v2 = vsub.f32 %v3568_v52, %v11461_v23 }
 0x34a   : > { %5774 = vmatprep.mubr.f32.mxu1 %v12266_v50 }
 0x34b   : > { %3432 = vmatmul.mubr.f32.gmra.mrb[12].mxu0 %v11178_v41  ;;  %v11431_v46 = vsub.f32 %v3551_v62, %v3582_v29  ;;  %v11439_v60 = vpack.c.bf16 %v3586_v63, %v3582_v29  ;;  %v3707_v42 = vand.u32 4294901760, %v3706_v12  ;;  %v3570_v62 = vsel %vm2145_vm13, %v11445_v7, 0 }
 0x34c   : > { %3437 = vmatprep.mubr.f32.mxu0 %v12266_v50  ;;  %v3700_v28 = vsub.f32 %v11424_v30, %v12227_v47  ;;  %v11497_v29 = vand.u32 4294901760, %v3570_v62  ;;  %v3572_v63 = vsel %vm2145_vm13, %v11473_v40, 0 }
 0x34d   : > { %5777 = vmatmul.mubr.f32.gmra.mrb[14].mxu1 %v11305_v14  ;;  %v12225_v34 = vand.u32 4294901760, %v11431_v46  ;;  %v8690_v45 = vpack.c.bf16 %v3707_v42, %v3695_v13  ;;  %v11521_v42 = vand.u32 4294901760, %v3572_v63 }
 0x34e   : > { %5855 = vmatprep.mubr.f32.mxu1 %v12266_v50  ;;  %v3701_v31 = vand.u32 4294901760, %v3700_v28  ;;  %v11524_v52 = vsub.f32 %v3570_v62, %v11497_v29 }
 0x34f   : > { %3439 = vmatmul.mubr.f32.gmra.mrb[14].mxu0 %v11205_v27 }
 0x350   : > { %3517 = vmatprep.mubr.f32.mxu0 %v12266_v50 }
 0x351   : > { %5859 = vmatmul.mubr.f32.vlgmr.msra.gmra.mrb[8].mxu1 %v5495_v1  ;;  %v12226_v1 = vand.u32 4294901760, %v11426_v55 }
 0x352   : > { %8957 = vmatpush1.bf16.msra.mxu1 %v11043_v51  ;;  %5864 = vmatprep.mubr.f32.mxu1 %v12266_v50  ;;  %v11457_v51 = vsub.f32 %v3552_v32, %v3588_v35  ;;  %v3724_v35 = vsub.f32 %v11455_v5, %v12219_v3 }
 0x353   : > { %3519 = vmatmul.mubr.f32.vlgmr.msra.gmra.mrb[8].mxu0 %v11137_v0  ;;  %8959 = vmatprep.subr.bf16.mxu1 %v11060_v9  ;;  %v12224_v0 = vand.u32 4294901760, %v11433_v17  ;;  %v11464_v9 = vsub.f32 %v3566_v48, %v11435_v4 }
 0x354   : > { %3524 = vmatprep.mubr.f32.mxu0 %v12266_v50  ;;  %8685 = vmatpush1.bf16.msra.mxu0 %v11429_v8  ;;  %v12218_v39 = vand.u32 4294901760, %v11457_v51 }
 0x355   : > { %5868 = vmatmul.mubr.f32.gmra.mrb[10].mxu1 %v5506_v38  ;;  %8687 = vmatprep.subr.bf16.mxu0 %v11439_v60  ;;  %v3712_v38 = vsub.f32 %v11426_v55, %v12226_v1  ;;  %v12220_v32 = vand.u32 4294901760, %v11464_v9 }
 0x356   : > { %5873 = vmatprep.mubr.f32.mxu1 %v12266_v50  ;;  %8961 = vmatpush1.bf16.msra.mxu1 %v11069_v49  ;;  %v3718_v49 = vsub.f32 %v11431_v46, %v12225_v34  ;;  %v3736_v54 = vsub.f32 %v11457_v51, %v12218_v39  ;;  %v3725_v39 = vand.u32 4294901760, %v3724_v35 }
 0x357   : > { %3526 = vmatmul.mubr.f32.gmra.mrb[10].mxu0 %v11160_v53  ;;  %8963 = vmatprep.subr.bf16.mxu1 %v10984_v22  ;;  %v3730_v53 = vsub.f32 %v11433_v17, %v12224_v0  ;;  %v3713_v12 = vand.u32 4294901760, %v3712_v38  ;;  %v3650_v13 = vsub.f32 %v11464_v9, %v12220_v32  ;;  %v11533_v32 = vsub.f32 %v3572_v63, %v11521_v42 }
 0x358   : > { %3531 = vmatprep.mubr.f32.mxu0 %v12266_v50  ;;  %8689 = vmatpush1.bf16.msra.mxu0 %v11449_v61  ;;  %v3719_v48 = vand.u32 4294901760, %v3718_v49  ;;  %v3737_v3 = vand.u32 4294901760, %v3736_v54  ;;  %v5384_v54 = vld [vmem:[%s12148_s11] sm:$0xff] }
 0x359   : > { %5877 = vmatmul.mubr.f32.gmra.mrb[12].mxu1 %v5517_v37  ;;  %8691 = vmatprep.subr.bf16.mxu0 %v8690_v45  ;;  %v3731_v10 = vand.u32 4294901760, %v3730_v53  ;;  %v5385_v37 = vld [vmem:[%s12148_s11 + $0x8] sm:$0xff]  ;;  %v12222_v45 = vand.u32 4294901760, %v11494_v2  ;;  %v8692_v49 = vpack.c.bf16 %v3713_v12, %v3701_v31  ;;  %v3651_v62 = vand.u32 4294901760, %v3650_v13  ;;  %v5391_v13 = vld [vmem:[%s12148_s11 + $0x38] sm:$0xff] }
 0x35a   : > { %5882 = vmatprep.mubr.f32.mxu1 %v12266_v50  ;;  %v6122_v28 = vand.u32 4294901760, %v5385_v37  ;;  %v8696_v12 = vpack.c.bf16 %v3737_v3, %v3725_v39  ;;  %v12223_v35 = vand.u32 4294901760, %v11533_v32  ;;  %v5386_v3 = vld [vmem:[%s12148_s11 + $0x10] sm:$0xff]  ;;  %v5380_v39 = vld [vmem:[%s11553_s17] sm:$0xff] }
 0x35b   : > { %3533 = vmatmul.mubr.f32.gmra.mrb[12].mxu0 %v11178_v41  ;;  %v5387_v41 = vld [vmem:[%s12148_s11 + $0x18] sm:$0xff]  ;;  %v8694_v53 = vpack.c.bf16 %v3731_v10, %v3719_v48  ;;  %v3661_v14 = vsub.f32 %v11494_v2, %v12222_v45  ;;  %v6134_v45 = vand.u32 4294901760, %v5391_v13 }
 0x35c   : > { %3538 = vmatprep.mubr.f32.mxu0 %v12266_v50  ;;  %v6126_v38 = vand.u32 4294901760, %v5387_v41  ;;  %v11545_v31 = vsub.f32 %v5385_v37, %v6122_v28  ;;  %v8698_v37 = vpack.c.bf16 %v11376_v26, %v11374_v19 }
 0x35d   : > { %5886 = vmatmul.mubr.f32.gmra.mrb[14].mxu1 %v5528_v15  ;;  %v3662_v48 = vand.u32 4294901760, %v3661_v14  ;;  %v6128_v14 = vand.u32 4294901760, %v5386_v3  ;;  %v11617_v7 = vsub.f32 %v5391_v13, %v6134_v45  ;;  %v6117_v13 = vsel %vm2145_vm13, %v5382_v58, 0 }
 0x35e   : > { %5980 = vmatprep.mubr.f32.mxu1 %v12266_v50  ;;  %v11543_v15 = vpack.c.bf16 %v6126_v38, %v6122_v28  ;;  %v11547_v63 = vsub.f32 %v5387_v41, %v6126_v38  ;;  %v5389_v41 = vld [vmem:[%s12148_s11 + $0x28] sm:$0xff]  ;;  %v12228_v28 = vand.u32 4294901760, %v11545_v31 }
 0x35f   : > { %3540 = vmatmul.mubr.f32.gmra.mrb[14].mxu0 %v11205_v27  ;;  %v12221_v27 = vand.u32 4294901760, %v11524_v52  ;;  %v11609_v47 = vsub.f32 %v5386_v3, %v6128_v14 }
 0x360   : > { %3646 = vmatprep.mubr.f32.mxu0 %v12266_v50  ;;  %v12229_v38 = vand.u32 4294901760, %v11547_v63 }
 0x361   : > { %5982 = vmatmul.mubr.f32.vlgmr.msra.gmra.mrb[8].mxu1 %v11268_v25  ;;  %v3672_v10 = vsub.f32 %v11524_v52, %v12221_v27  ;;  %v6130_v27 = vand.u32 4294901760, %v5389_v41 }
 0x362   : > { %8965 = vmatpush1.bf16.msra.mxu1 %v10991_v44  ;;  %5987 = vmatprep.mubr.f32.mxu1 %v12266_v50 }
 0x363   : > { %3652 = vmatmul.mubr.f32.vlgmr.msra.gmra.mrb[8].mxu0 %v3651_v62  ;;  %8967 = vmatprep.subr.bf16.mxu1 %v11010_v59  ;;  %v3683_v62 = vsub.f32 %v11533_v32, %v12223_v35  ;;  %v6242_v35 = vsub.f32 %v11545_v31, %v12228_v28  ;;  %v11612_v28 = vpack.c.bf16 %v6134_v45, %v6130_v27 }
 0x364   : > { %3657 = vmatprep.mubr.f32.mxu0 %v12266_v50  ;;  %8693 = vmatpush1.bf16.msra.mxu0 %v8692_v49  ;;  %v6124_v49 = vand.u32 4294901760, %v5384_v54  ;;  %v11615_v40 = vsub.f32 %v5389_v41, %v6130_v27 }
 0x365   : > { %5989 = vmatmul.mubr.f32.gmra.mrb[10].mxu1 %v11265_v33  ;;  %8695 = vmatprep.subr.bf16.mxu0 %v8694_v53  ;;  %v3673_v53 = vand.u32 4294901760, %v3672_v10  ;;  %v5390_v10 = vld [vmem:[%s12148_s11 + $0x30] sm:$0xff]  ;;  %v3684_v0 = vand.u32 4294901760, %v3683_v62  ;;  %v6243_v62 = vand.u32 4294901760, %v6242_v35 }
 0x366   : > { %5994 = vmatprep.mubr.f32.mxu1 %v12266_v50  ;;  %8969 = vmatpush1.bf16.msra.mxu1 %v11019_v24  ;;  %v11605_v34 = vpack.c.bf16 %v6128_v14, %v6124_v49  ;;  %v11607_v1 = vsub.f32 %v5384_v54, %v6124_v49  ;;  %v6136_v11 = vand.u32 4294901760, %v5390_v10  ;;  %v8700_v54 = vpack.c.bf16 %v11426_v55, %v11424_v30 }
 0x367   : > { %3663 = vmatmul.mubr.f32.gmra.mrb[10].mxu0 %v3662_v48  ;;  %8971 = vmatprep.subr.bf16.mxu1 %v11543_v15  ;;  %v6111_v48 = vsel %vm2145_vm13, %v5380_v39, 0  ;;  %v5381_v39 = vld [vmem:[%s11553_s17 + $0x8] sm:$0xff] }
 0x368   : > { %3668 = vmatprep.mubr.f32.mxu0 %v12266_v50  ;;  %8697 = vmatpush1.bf16.msra.mxu0 %v8696_v12  ;;  %v5388_v12 = vld [vmem:[%s12148_s11 + $0x20] sm:$0xff]  ;;  %v6114_v21 = vsel %vm2145_vm13, %v5381_v39, 0  ;;  %v12239_v45 = vand.u32 4294901760, %v11607_v1  ;;  %v11638_v41 = vsub.f32 %v5390_v10, %v6136_v11  ;;  %v11658_v10 = vand.u32 4294901760, %v6117_v13 }
 0x369   : > { %5996 = vmatmul.mubr.f32.gmra.mrb[12].mxu1 %v11297_v18  ;;  %8699 = vmatprep.subr.bf16.mxu0 %v8698_v37  ;;  %v6254_v37 = vsub.f32 %v11547_v63, %v12229_v38  ;;  %v6132_v38 = vand.u32 4294901760, %v5388_v12  ;;  %v11632_v27 = vand.u32 4294901760, %v6114_v21 }
 0x36a   : > { %6001 = vmatprep.mubr.f32.mxu1 %v12266_v50 }
 0x36b   : > { %3674 = vmatmul.mubr.f32.gmra.mrb[12].mxu0 %v3673_v53  ;;  %v11602_v53 = vand.u32 4294901760, %v6111_v48  ;;  %v6255_v43 = vand.u32 4294901760, %v6254_v37  ;;  %v11627_v49 = vsub.f32 %v5388_v12, %v6132_v38  ;;  %v11636_v35 = vpack.c.bf16 %v6136_v11, %v6132_v38  ;;  %v5383_v37 = vld [vmem:[%s11553_s17 + $0x18] sm:$0xff] }
 0x36c   : > { %3679 = vmatprep.mubr.f32.mxu0 %v12266_v50  ;;  %v12238_v12 = vand.u32 4294901760, %v11617_v7  ;;  %v8704_v11 = vpack.c.bf16 %v11457_v51, %v11455_v5  ;;  %v11656_v38 = vsub.f32 %v6114_v21, %v11632_v27 }
 0x36d   : > { %6003 = vmatmul.mubr.f32.gmra.mrb[14].mxu1 %v11288_v57  ;;  %v11624_v3 = vsub.f32 %v6111_v48, %v11602_v53  ;;  %v8978_v14 = vpack.c.bf16 %v6255_v43, %v6243_v62  ;;  %v12237_v48 = vand.u32 4294901760, %v11615_v40  ;;  %v6248_v43 = vsub.f32 %v11607_v1, %v12239_v45 }
 0x36e   : > { %6081 = vmatprep.mubr.f32.mxu1 %v12266_v50  ;;  %v12241_v39 = vand.u32 4294901760, %v11627_v49  ;;  %v12242_v62 = vand.u32 4294901760, %v11638_v41 }
 0x36f   : > { %3685 = vmatmul.mubr.f32.gmra.mrb[14].mxu0 %v3684_v0  ;;  %v8702_v0 = vpack.c.bf16 %v11433_v17, %v11431_v46  ;;  %v12240_v58 = vand.u32 4294901760, %v11624_v3  ;;  %v6266_v21 = vsub.f32 %v11615_v40, %v12237_v48 }
 0x370   : > { %3795 = vmatprep.mubr.f32.mxu0 %v12266_v50 }
 0x371   : > { %6083 = vmatmul.mubr.f32.vlgmr.msra.gmra.mrb[8].mxu1 %v11268_v25  ;;  %v12236_v25 = vand.u32 4294901760, %v11609_v47 }
 0x372   : > { %8973 = vmatpush1.bf16.msra.mxu1 %v11605_v34  ;;  %6088 = vmatprep.mubr.f32.mxu1 %v12266_v50 }
 0x373   : > { %3797 = vmatmul.mubr.f32.vlgmr.msra.gmra.mrb[8].mxu0 %v11435_v4  ;;  %8975 = vmatprep.subr.bf16.mxu1 %v11612_v28 }
 0x374   : > { %3802 = vmatprep.mubr.f32.mxu0 %v12266_v50  ;;  %8701 = vmatpush1.bf16.msra.mxu0 %v8700_v54  ;;  %v6120_v54 = vsel %vm2145_vm13, %v5383_v37, 0  ;;  %v6198_v37 = vsub.f32 %v11624_v3, %v12240_v58 }
 0x375   : > { %6090 = vmatmul.mubr.f32.gmra.mrb[10].mxu1 %v11265_v33  ;;  %8703 = vmatprep.subr.bf16.mxu0 %v8702_v0  ;;  %v6260_v33 = vsub.f32 %v11609_v47, %v12236_v25  ;;  %v6278_v0 = vsub.f32 %v11617_v7, %v12238_v12  ;;  %v11685_v48 = vand.u32 4294901760, %v6120_v54  ;;  %v6249_v12 = vand.u32 4294901760, %v6248_v43 }
 0x376   : > { %6095 = vmatprep.mubr.f32.mxu1 %v12266_v50  ;;  %8977 = vmatpush1.bf16.msra.mxu1 %v11636_v35  ;;  %v6199_v25 = vand.u32 4294901760, %v6198_v37  ;;  %v12331_v43 = vand.u32 4294901760, %v11656_v38 }
 0x377   : > { %3804 = vmatmul.mubr.f32.gmra.mrb[10].mxu0 %v11461_v23  ;;  %8979 = vmatprep.subr.bf16.mxu1 %v8978_v14  ;;  %v11682_v14 = vsub.f32 %v6117_v13, %v11658_v10  ;;  %v6261_v45 = vand.u32 4294901760, %v6260_v33  ;;  %v6267_v13 = vand.u32 4294901760, %v6266_v21  ;;  %v6279_v58 = vand.u32 4294901760, %v6278_v0 }
 0x378   : > { %3809 = vmatprep.mubr.f32.mxu0 %v12266_v50  ;;  %8705 = vmatpush1.bf16.msra.mxu0 %v8704_v11  ;;  %v6284_v11 = vsub.f32 %v11638_v41, %v12242_v62  ;;  %v6209_v33 = vsub.f32 %v11656_v38, %v12331_v43 }
 0x379   : > { %6097 = vmatmul.mubr.f32.gmra.mrb[12].mxu1 %v11297_v18  ;;  %8707 = vmatprep.subr.bf16.mxu0 %v11372_v36  ;;  %v6272_v18 = vsub.f32 %v11627_v49, %v12241_v39  ;;  %v6219_v6 = vand.u32 4294901760, %v11682_v14  ;;  %v11702_v39 = vsub.f32 %v6120_v54, %v11685_v48  ;;  %v8980_v62 = vpack.c.bf16 %v6261_v45, %v6249_v12 }
 0x37a   : > { %6102 = vmatprep.mubr.f32.mxu1 %v12266_v50  ;;  %v6285_v21 = vand.u32 4294901760, %v6284_v11  ;;  %v8982_v0 = vpack.c.bf16 %v6279_v58, %v6267_v13  ;;  %v8986_v45 = vpack.c.bf16 %v11547_v63, %v11545_v31  ;;  %v12333_v58 = vand.u32 4294901760, %v11376_v26 }
 0x37b   : > { %3811 = vmatmul.mubr.f32.gmra.mrb[12].mxu0 %v11497_v29  ;;  %v6273_v20 = vand.u32 4294901760, %v6272_v18  ;;  %v6220_v37 = vsub.f32 %v11682_v14, %v6219_v6  ;;  %v6230_v43 = vand.u32 4294901760, %v11702_v39  ;;  %v8990_v26 = vpack.c.bf16 %v11617_v7, %v11615_v40 }
 0x37c   : > { %3816 = vmatprep.mubr.f32.mxu0 %v12266_v50  ;;  %v12334_v11 = vand.u32 4294901760, %v11424_v30  ;;  %v12335_v13 = vand.u32 4294901760, %v11426_v55  ;;  %v12339_v30 = vand.u32 4294901760, %v11455_v5  ;;  %v12340_v55 = vand.u32 4294901760, %v11457_v51 }
 0x37d   : > { %6104 = vmatmul.mubr.f32.gmra.mrb[14].mxu1 %v11288_v57  ;;  %v6210_v57 = vand.u32 4294901760, %v6209_v33  ;;  %v8984_v54 = vpack.c.bf16 %v6285_v21, %v6273_v20  ;;  %v6231_v12 = vsub.f32 %v11702_v39, %v6230_v43  ;;  %v12332_v20 = vand.u32 4294901760, %v11374_v19 }
 0x37e   : > { %6194 = vmatprep.mubr.f32.mxu1 %v12266_v50  ;;  %v8988_v19 = vpack.c.bf16 %v11609_v47, %v11607_v1  ;;  %v8716_v33 = vpack.c.bf16 %v12335_v13, %v12334_v11  ;;  %v12336_v21 = vand.u32 4294901760, %v11431_v46  ;;  %v8720_v46 = vpack.c.bf16 %v12340_v55, %v12339_v30 }
 0x37f   : > { %3818 = vmatmul.mubr.f32.gmra.mrb[14].mxu0 %v11521_v42  ;;  %v6232_v18 = vand.u32 4294901760, %v6231_v12  ;;  %v12342_v5 = vand.u32 4294901760, %v11524_v52  ;;  %v12343_v51 = vand.u32 4294901760, %v11533_v32 }
 0x380   : > { %3904 = vmatprep.mubr.f32.mxu0 %v12266_v50 }
 0x381   : > { %6200 = vmatmul.mubr.f32.vlgmr.msra.gmra.mrb[8].mxu1 %v6199_v25  ;;  %v6221_v25 = vand.u32 4294901760, %v6220_v37  ;;  %v8992_v37 = vpack.c.bf16 %v11638_v41, %v11627_v49 }
 0x382   : > { %8981 = vmatpush1.bf16.msra.mxu1 %v8980_v62  ;;  %6205 = vmatprep.mubr.f32.mxu1 %v12266_v50  ;;  %v8714_v62 = vpack.c.bf16 %v12333_v58, %v12332_v20 }
 0x383   : > { %3907 = vmatmul.mubr.f32.vlgmr.msra.gmra.mrb[8].mxu0 %v11464_v9  ;;  %8983 = vmatprep.subr.bf16.mxu1 %v8982_v0  ;;  %v12337_v0 = vand.u32 4294901760, %v11433_v17  ;;  %v12341_v17 = vand.u32 4294901760, %v11494_v2 }
 0x384   : > { %3912 = vmatprep.mubr.f32.mxu0 %v12266_v50  ;;  %8709 = vmatpush1.bf16.msra.mxu0 %v11429_v8 }
 0x385   : > { %6211 = vmatmul.mubr.f32.gmra.mrb[10].mxu1 %v6210_v57  ;;  %8711 = vmatprep.subr.bf16.mxu0 %v11439_v60  ;;  %v8718_v57 = vpack.c.bf16 %v12337_v0, %v12336_v21 }
 0x386   : > { %6216 = vmatprep.mubr.f32.mxu1 %v12266_v50  ;;  %8985 = vmatpush1.bf16.msra.mxu1 %v8984_v54  ;;  %v12338_v54 = vand.u32 4294901760, %v11464_v9  ;;  %v12345_v9 = vand.u32 4294901760, %v11547_v63 }
 0x387   : > { %3915 = vmatmul.mubr.f32.gmra.mrb[10].mxu0 %v11494_v2  ;;  %8987 = vmatprep.subr.bf16.mxu1 %v8986_v45 }
 0x388   : > { %3920 = vmatprep.mubr.f32.mxu0 %v12266_v50  ;;  %8713 = vmatpush1.bf16.msra.mxu0 %v11449_v61 }
 0x389   : > { %6222 = vmatmul.mubr.f32.gmra.mrb[12].mxu1 %v6221_v25  ;;  %8715 = vmatprep.subr.bf16.mxu0 %v8714_v62 }
 0x38a   : > { %6227 = vmatprep.mubr.f32.mxu1 %v12266_v50 }
 0x38b   : > { %3923 = vmatmul.mubr.f32.gmra.mrb[12].mxu0 %v11524_v52 }
 0x38c   : > { %3928 = vmatprep.mubr.f32.mxu0 %v12266_v50 }
 0x38d   : > { %6233 = vmatmul.mubr.f32.gmra.mrb[14].mxu1 %v6232_v18 }
 0x38e   : > { %6343 = vmatprep.mubr.f32.mxu1 %v12266_v50 }
 0x38f   : > { %3931 = vmatmul.mubr.f32.gmra.mrb[14].mxu0 %v11533_v32 }
 0x390   : > { %4009 = vmatprep.mubr.f32.mxu0 %v12266_v50 }
 0x391   : > { %6345 = vmatmul.mubr.f32.vlgmr.msra.gmra.mrb[8].mxu1 %v11602_v53 }
 0x392   : > { %8989 = vmatpush1.bf16.msra.mxu1 %v8988_v19  ;;  %6350 = vmatprep.mubr.f32.mxu1 %v12266_v50 }
 0x393   : > { %4013 = vmatmul.mubr.f32.vlgmr.msra.gmra.mrb[8].mxu0 %v12338_v54  ;;  %8991 = vmatprep.subr.bf16.mxu1 %v8990_v26 }
 0x394   : > { %4018 = vmatprep.mubr.f32.mxu0 %v12266_v50  ;;  %8717 = vmatpush1.bf16.msra.mxu0 %v8716_v33 }
 0x395   : > { %6352 = vmatmul.mubr.f32.gmra.mrb[10].mxu1 %v11632_v27  ;;  %8719 = vmatprep.subr.bf16.mxu0 %v8718_v57 }
 0x396   : > { %6357 = vmatprep.mubr.f32.mxu1 %v12266_v50  ;;  %8993 = vmatpush1.bf16.msra.mxu1 %v8992_v37 }
 0x397   : > { %4022 = vmatmul.mubr.f32.gmra.mrb[10].mxu0 %v12341_v17  ;;  %8995 = vmatprep.subr.bf16.mxu1 %v11543_v15 }
 0x398   : > { %4027 = vmatprep.mubr.f32.mxu0 %v12266_v50  ;;  %8721 = vmatpush1.bf16.msra.mxu0 %v8720_v46 }
 0x399   : > { %6359 = vmatmul.mubr.f32.gmra.mrb[12].mxu1 %v11658_v10  ;;  %8723 = vmatprep.subr.bf16.mxu0 %v11372_v36  ;;  %v12344_v36 = vand.u32 4294901760, %v11545_v31  ;;  %v12350_v31 = vand.u32 4294901760, %v11624_v3 }
 0x39a   : > { %6364 = vmatprep.mubr.f32.mxu1 %v12266_v50 }
 0x39b   : > { %4031 = vmatmul.mubr.f32.gmra.mrb[12].mxu0 %v12342_v5  ;;  %v9002_v2 = vpack.c.bf16 %v12345_v9, %v12344_v36 }
 0x39c   : > { %4036 = vmatprep.mubr.f32.mxu0 %v12266_v50 }
 0x39d   : > { %6366 = vmatmul.mubr.f32.gmra.mrb[14].mxu1 %v11685_v48 }
 0x39e   : > { %6452 = vmatprep.mubr.f32.mxu1 %v12266_v50 }
 0x39f   : > { %4040 = vmatmul.mubr.f32.gmra.mrb[14].mxu0 %v12343_v51 }
 0x3a0   : > { %4134 = vmatprep.mubr.f32.mxu0 %v12266_v50 }
 0x3a1   : > { %6455 = vmatmul.mubr.f32.vlgmr.msra.gmra.mrb[8].mxu1 %v11624_v3 }
 0x3a2   : > { %8997 = vmatpush1.bf16.msra.mxu1 %v11605_v34  ;;  %6460 = vmatprep.mubr.f32.mxu1 %v12266_v50 }
 0x3a3   : > { %4136 = vmatmul.mubr.f32.vlgmr.msra.gmra.mrb[8].mxu0 %v11435_v4  ;;  %8999 = vmatprep.subr.bf16.mxu1 %v11612_v28 }
 0x3a4   : > { %4141 = vmatprep.mubr.f32.mxu0 %v12266_v50  ;;  %8725 = vmatpush1.bf16.msra.mxu0 %v11429_v8  ;;  %v12346_v8 = vand.u32 4294901760, %v11607_v1  ;;  %v12351_v1 = vand.u32 4294901760, %v11627_v49 }
 0x3a5   : > { %6463 = vmatmul.mubr.f32.gmra.mrb[10].mxu1 %v11656_v38  ;;  %8727 = vmatprep.subr.bf16.mxu0 %v11439_v60  ;;  %v12347_v60 = vand.u32 4294901760, %v11609_v47  ;;  %v12352_v47 = vand.u32 4294901760, %v11638_v41 }
 0x3a6   : > { %6468 = vmatprep.mubr.f32.mxu1 %v12266_v50  ;;  %9001 = vmatpush1.bf16.msra.mxu1 %v11636_v35 }
 0x3a7   : > { %4143 = vmatmul.mubr.f32.gmra.mrb[10].mxu0 %v11461_v23  ;;  %9003 = vmatprep.subr.bf16.mxu1 %v9002_v2  ;;  %v9004_v32 = vpack.c.bf16 %v12347_v60, %v12346_v8  ;;  %v9008_v63 = vpack.c.bf16 %v12352_v47, %v12351_v1  ;;  %v4365_v8 = vpop.permute.xlu0 %4364 }
 0x3a8   : > { %4148 = vmatprep.mubr.f32.mxu0 %v12266_v50  ;;  %8729 = vmatpush1.bf16.msra.mxu0 %v11449_v61  ;;  %v12348_v61 = vand.u32 4294901760, %v11615_v40  ;;  %v11870_v40 = vld [vmem:[%s12150_s13] sm:$0x3] }
 0x3a9   : > { %6471 = vmatmul.mubr.f32.gmra.mrb[12].mxu1 %v11682_v14  ;;  %8923 = vmatprep.subr.bf16.mxu0 %v10984_v22  ;;  %v12349_v22 = vand.u32 4294901760, %v11617_v7  ;;  %v12353_v7 = vand.u32 4294901760, %v11656_v38 }
 0x3aa   : > { %6476 = vmatprep.mubr.f32.mxu1 %v12266_v50 }
 0x3ab   : > { %4150 = vmatmul.mubr.f32.gmra.mrb[12].mxu0 %v11497_v29  ;;  %v9006_v52 = vpack.c.bf16 %v12349_v22, %v12348_v61 }
 0x3ac   : > { %4155 = vmatprep.mubr.f32.mxu0 %v12266_v50 }
 0x3ad   : > { %6479 = vmatmul.mubr.f32.gmra.mrb[14].mxu1 %v11702_v39 }
 0x3ae   : > { %6557 = vmatprep.mubr.f32.mxu1 %v12266_v50 }
 0x3af   : > { %4157 = vmatmul.mubr.f32.gmra.mrb[14].mxu0 %v11521_v42 }
 0x3b0   : > { %4235 = vmatprep.mubr.f32.mxu0 %v12266_v50 }
 0x3b1   : > { %6561 = vmatmul.mubr.f32.vlgmr.msra.gmra.mrb[8].mxu1 %v12350_v31 }
 0x3b2   : > { %9005 = vmatpush1.bf16.msra.mxu1 %v9004_v32  ;;  %6566 = vmatprep.mubr.f32.mxu1 %v12266_v50 }
 0x3b3   : > { %4237 = vmatmul.mubr.f32.vlgmr.msra.gmra.mrb[8].mxu0 %v11435_v4  ;;  %9007 = vmatprep.subr.bf16.mxu1 %v9006_v52  ;;  %v12356_v4 = vlaneseq }
 0x3b4   : > { %4242 = vmatprep.mubr.f32.mxu0 %v12266_v50  ;;  %8925 = vmatpush1.bf16.msra.mxu0 %v10991_v44  ;;  %v5497_v44 = vand.u32 4294901760, %v11320_v16 }
 0x3b5   : > { %6570 = vmatmul.mubr.f32.gmra.mrb[10].mxu1 %v12353_v7  ;;  %8927 = vmatprep.subr.bf16.mxu0 %v11010_v59  ;;  %v5508_v59 = vand.u32 4294901760, %v11315_v56  ;;  %v4367_v7 = vpop.permute.xlu1 %4366 }
 0x3b6   : > { %6575 = vmatprep.mubr.f32.mxu1 %v12266_v50  ;;  %9009 = vmatpush1.bf16.msra.mxu1 %v9008_v63 }
 0x3b7   : > { %4244 = vmatmul.mubr.f32.gmra.mrb[10].mxu0 %v11461_v23  ;;  %9011 = vmatprep.subr.bf16.mxu1 %v11543_v15 }
 0x3b8   : > { %4249 = vmatprep.mubr.f32.mxu0 %v12266_v50  ;;  %8929 = vmatpush1.bf16.msra.mxu0 %v11019_v24  ;;  %v12354_v24 = vld [vmem:[#allocation5_spill] sm:$0xff] }
 0x3b9   : > { %6579 = vmatmul.mubr.f32.gmra.mrb[12].mxu1 %v6219_v6  ;;  %v5519_v16 = vand.u32 4294901760, %v12354_v24  ;;  %v12355_v6 = vld [vmem:[#allocation4_spill] sm:$0xff] }
 0x3ba   : > { %6584 = vmatprep.mubr.f32.mxu1 %v12266_v50  ;;  %v5530_v56 = vand.u32 4294901760, %v12355_v6 }
 0x3bb   : > { %4251 = vmatmul.mubr.f32.gmra.mrb[12].mxu0 %v11497_v29 }
 0x3bc   : > { %4256 = vmatprep.mubr.f32.mxu0 %v12266_v50 }
 0x3bd   : > { %6588 = vmatmul.mubr.f32.gmra.mrb[14].mxu1 %v6230_v43 }
 0x3be   : > { %6682 = vmatprep.mubr.f32.mxu1 %v12266_v50 }
 0x3bf   : > { %4258 = vmatmul.mubr.f32.gmra.mrb[14].mxu0 %v11521_v42 }
 0x3c0   : > { %5492 = vmatprep.mubr.f32.mxu0 %v12266_v50 }
 0x3c1   : > { %6684 = vmatmul.mubr.f32.vlgmr.msra.gmra.mrb[8].mxu1 %v11602_v53 }
 0x3c2   : > { %9013 = vmatpush1.bf16.msra.mxu1 %v11605_v34  ;;  %6689 = vmatprep.mubr.f32.mxu1 %v12266_v50  ;;  %v11864_v34 = vshrl.u32 %v12356_v4, 7 }
 0x3c3   : > { %5498 = vmatmul.mubr.f32.vlgmr.msra.gmra.mrb[16].mxu0 %v5497_v44  ;;  %9015 = vmatprep.subr.bf16.mxu1 %v11612_v28 }
 0x3c4   : > { %5503 = vmatprep.mubr.f32.mxu0 %v12266_v50  ;;  %v4280_v23 = vsub.s32 1, %v11864_v34  ;;  %v4276_v42 = vsub.s32 0, %v11864_v34 }
 0x3c5   : > { %6691 = vmatmul.mubr.f32.gmra.mrb[10].mxu1 %v11632_v27 }
 0x3c6   : > { %6696 = vmatprep.mubr.f32.mxu1 %v12266_v50  ;;  %9017 = vmatpush1.bf16.msra.mxu1 %v11636_v35  ;;  %v11873_v29 = vrot.slane %v11870_v40, %v4280_v23  ;;  %v6817_v22 = vrot.slane %v11870_v40, %v4276_v42 }
 0x3c7   : > { %5509 = vmatmul.mubr.f32.gmra.mrb[18].mxu0 %v5508_v59 }
 0x3c8   : > { %5514 = vmatprep.mubr.f32.mxu0 %v12266_v50 }
 0x3c9   : > { %6698 = vmatmul.mubr.f32.gmra.mrb[12].mxu1 %v11658_v10 }
 0x3ca   : > { %6703 = vmatprep.mubr.f32.mxu1 %v12266_v50 }
 0x3cb   : > { %5520 = vmatmul.mubr.f32.gmra.mrb[20].mxu0 %v5519_v16  ;;  %v12357_v16 = vld [vmem:[#allocation6_spill] sm:$0xff] }
 0x3cc   : > { %5525 = vmatprep.mubr.f32.mxu0 %v12266_v50 }
 0x3cd   : > { %6705 = vmatmul.mubr.f32.gmra.mrb[14].mxu1 %v11685_v48 }
 0x3ce   : > { %6783 = vmatprep.mubr.f32.mxu1 %v12266_v50 }
 0x3cf   : > { %5531 = vmatmul.mubr.f32.gmra.mrb[22].mxu0 %v5530_v56 }
 0x3d1   : > { %6785 = vmatmul.mubr.f32.vlgmr.msra.gmra.mrb[8].mxu1 %v11602_v53 }
 0x3d2   : > { %6790 = vmatprep.mubr.f32.mxu1 %v12266_v50 }
 0x3d5   : > { %6792 = vmatmul.mubr.f32.gmra.mrb[10].mxu1 %v11632_v27 }
 0x3d6   : > { %6797 = vmatprep.mubr.f32.mxu1 %v12266_v50 }
 0x3d9   : > { %6799 = vmatmul.mubr.f32.gmra.mrb[12].mxu1 %v11658_v10 }
 0x3da   : > { %6804 = vmatprep.mubr.f32.mxu1 %v12266_v50  ;;  %v4272_v50 = vld [vmem:[%s12144_s7] sm:$0x3] }
 0x3db   : > { %v4277_v15 = vrot.slane %v4272_v50, %v4276_v42  ;;  %v4281_v28 = vrot.slane %v4272_v50, %v4280_v23  ;;  %v4369_v50 = vpop.permute.xlu0 %4368 }
 0x3dd   : > { %6806 = vmatmul.mubr.f32.gmra.mrb[14].mxu1 %v11685_v48 }
 0x486   : > { %v4238_v53 = vpop.f32.mrb[8].mxu0 }
 0x487   : > { %v4284_v3 = vadd.f32 %v4277_v15, %v4238_v53  ;;  %v4240_v49 = vpop.f32.mrb[9].mxu0  ;;  %v12358_v53 = vld [vmem:[#allocation7_spill] sm:$0xff] }
 0x488   : > { %v11879_v27 = vadd.f32 %v4281_v28, %v4240_v49 }
 0x489   : > { %v7128_v35 = vmul.f32 -1.442695, %v4284_v3 }
 0x48a   : > { %9319 = vtanh.f32 %v11879_v27  ;;  %v4245_v41 = vpop.f32.mrb[10].mxu0 }
 0x48b   : > { %9321 = vpow2.f32 %v7128_v35  ;;  %v4286_v48 = vadd.f32 %v4277_v15, %v4245_v41  ;;  %v4247_v38 = vpop.f32.mrb[11].mxu0 }
 0x48c   : > { %v11882_v10 = vadd.f32 %v4281_v28, %v4247_v38 }
 0x48d   : > { %v7130_v39 = vmul.f32 -1.442695, %v4286_v48 }
 0x48e   : > { %9323 = vtanh.f32 %v11882_v10  ;;  %v4252_v14 = vpop.f32.mrb[12].mxu0 }
 0x48f   : > { %9325 = vpow2.f32 %v7130_v39  ;;  %v4288_v43 = vadd.f32 %v4277_v15, %v4252_v14  ;;  %v4254_v45 = vpop.f32.mrb[13].mxu0 }
 0x490   : > { %v11885_v25 = vadd.f32 %v4281_v28, %v4254_v45 }
 0x491   : > { %v7132_v12 = vmul.f32 -1.442695, %v4288_v43  ;;  %v4371_v43 = vpop.permute.xlu1 %4370 }
 0x492   : > { %9327 = vtanh.f32 %v11885_v25  ;;  %v4259_v20 = vpop.f32.mrb[14].mxu0 }
 0x493   : > { %9329 = vpow2.f32 %v7132_v12  ;;  %v4290_v58 = vadd.f32 %v4277_v15, %v4259_v20  ;;  %v4261_v62 = vpop.f32.mrb[15].mxu0 }
 0x494   : > { %v9320_v18 = vpop.eup %9319  ;;  %v11888_v19 = vadd.f32 %v4281_v28, %v4261_v62 }
 0x495   : > { %v9322_v26 = vpop.eup %9321  ;;  %v7134_v11 = vmul.f32 -1.442695, %v4290_v58  ;;  %4348 = vrot.lane.b32.xlu0 %v9320_v18, %s9411_s19  ;;  %v12359_v58 = vld [vmem:[#allocation8_spill] sm:$0xff] }
 0x496   : > { %v4316_v13 = vadd.f32 1.0, %v9322_v26  ;;  %9331 = vtanh.f32 %v11888_v19  ;;  %v5499_v33 = vpop.f32.mrb[16].mxu0 }
 0x497   : > { %9333 = vpow2.f32 %v7134_v11  ;;  %v5501_v21 = vpop.f32.mrb[17].mxu0 }
 0x498   : > { %v9324_v0 = vpop.eup %9323  ;;  %9335 = vrcp.f32 %v4316_v13 }
 0x499   : > { %v9326_v57 = vpop.eup %9325  ;;  %4350 = vrot.lane.b32.xlu1 %v9324_v0, %s9411_s19 }
 0x49a   : > { %v4318_v37 = vadd.f32 1.0, %v9326_v57  ;;  %v5510_v54 = vpop.f32.mrb[18].mxu0  ;;  %v12360_v57 = vld [vmem:[#allocation9_spill] sm:$0xff] }
 0x49b   : > { %v5512_v30 = vpop.f32.mrb[19].mxu0 }
 0x49c   : > { %v9328_v55 = vpop.eup %9327  ;;  %9337 = vrcp.f32 %v4318_v37 }
 0x49d   : > { %v9330_v46 = vpop.eup %9329  ;;  %4352 = vrot.lane.b32.xlu0 %v9328_v55, %s9411_s19 }
 0x49e   : > { %v4320_v17 = vadd.f32 1.0, %v9330_v46  ;;  %v5521_v5 = vpop.f32.mrb[20].mxu0 }
 0x49f   : > { %v5523_v51 = vpop.f32.mrb[21].mxu0 }
 0x4a0   : > { %v9332_v36 = vpop.eup %9331  ;;  %9339 = vrcp.f32 %v4320_v17 }
 0x4a1   : > { %v9334_v9 = vpop.eup %9333  ;;  %4354 = vrot.lane.b32.xlu1 %v9332_v36, %s9411_s19 }
 0x4a2   : > { %v11895_v2 = vpop.eup %9335  ;;  %v4322_v60 = vadd.f32 1.0, %v9334_v9  ;;  %v5532_v32 = vpop.f32.mrb[22].mxu0 }
 0x4a3   : > { %v5534_v61 = vpop.f32.mrb[23].mxu0  ;;  %v4376_v52 = vmul.f32 %v11895_v2, %v4365_v8  ;;  %v4404_v6 = vmul.f32 %v11895_v2, %v12357_v16 }
 0x4a4   : > { %9341 = vrcp.f32 %v4322_v60  ;;  %v6786_v31 = vpop.f32.mrb[8].mxu1  ;;  %v6865_v60 = vpop.permute.xlu0 %6864 }
 0x4a5   : > { %v9022_v1 = vadd.f32 %v6786_v31, %v5499_v33  ;;  %4384 = vrot.lane.b32.xlu0 %v4376_v52, %s9412_s25  ;;  %v6788_v47 = vpop.f32.mrb[9].mxu1 }
 0x4a6   : > { %v11900_v63 = vpop.eup %9337  ;;  %v9023_v44 = vadd.f32 %v6788_v47, %v5501_v21 }
 0x4a7   : > { %v6824_v59 = vadd.f32 %v9022_v1, %v6817_v22  ;;  %v4377_v24 = vmul.f32 %v11900_v63, %v4367_v7  ;;  %v4405_v3 = vmul.f32 %v11900_v63, %v12358_v53 }
 0x4a8   : > { %v11906_v56 = vadd.f32 %v9023_v44, %v11873_v29  ;;  %v6793_v4 = vpop.f32.mrb[10].mxu1  ;;  %v6869_v1 = vpop.permute.xlu0 %6868 }
 0x4a9   : > { %v7152_v34 = vmul.f32 -1.442695, %v6824_v59  ;;  %v9024_v23 = vadd.f32 %v6793_v4, %v5510_v54  ;;  %4386 = vrot.lane.b32.xlu1 %v4377_v24, %s9412_s25  ;;  %4412 = vrot.lane.b32.xlu0 %v4404_v6, %s9413_s29  ;;  %v6795_v40 = vpop.f32.mrb[11].mxu1 }
 0x4aa   : > { %v11910_v42 = vpop.eup %9339  ;;  %v9025_v15 = vadd.f32 %v6795_v40, %v5512_v30 }
 0x4ab   : > { %9343 = vpow2.f32 %v7152_v34  ;;  %v6826_v28 = vadd.f32 %v9024_v23, %v6817_v22  ;;  %v4378_v49 = vmul.f32 %v11910_v42, %v4369_v50  ;;  %v4406_v62 = vmul.f32 %v11910_v42, %v12359_v58 }
 0x4ac   : > { %v11916_v35 = vadd.f32 %v9025_v15, %v11873_v29  ;;  %v6800_v41 = vpop.f32.mrb[12].mxu1 }
 0x4ad   : > { %v7153_v48 = vmul.f32 -1.442695, %v6826_v28  ;;  %v9026_v38 = vadd.f32 %v6800_v41, %v5521_v5  ;;  %4414 = vrot.lane.b32.xlu1 %v4405_v3, %s9413_s29  ;;  %4388 = vrot.lane.b32.xlu0 %v4378_v49, %s9412_s25  ;;  %v6802_v39 = vpop.f32.mrb[13].mxu1 }
 0x4ae   : > { %v11920_v14 = vpop.eup %9341  ;;  %v9027_v45 = vadd.f32 %v6802_v39, %v5523_v51 }
 0x4af   : > { %9345 = vpow2.f32 %v7153_v48  ;;  %v6828_v12 = vadd.f32 %v9026_v38, %v6817_v22  ;;  %v4379_v20 = vmul.f32 %v11920_v14, %v4371_v43  ;;  %v4407_v37 = vmul.f32 %v11920_v14, %v12360_v57 }
 0x4b0   : > { %v11926_v18 = vadd.f32 %v9027_v45, %v11873_v29  ;;  %v6807_v26 = vpop.f32.mrb[14].mxu1 }
 0x4b1   : > { %v7154_v11 = vmul.f32 -1.442695, %v6828_v12  ;;  %v9028_v13 = vadd.f32 %v6807_v26, %v5532_v32  ;;  %4390 = vrot.lane.b32.xlu1 %v4379_v20, %s9412_s25  ;;  %4416 = vrot.lane.b32.xlu0 %v4406_v62, %s9413_s29  ;;  %v6809_v33 = vpop.f32.mrb[15].mxu1 }
 0x4b2   : > { %v9029_v21 = vadd.f32 %v6809_v33, %v5534_v61 }
 0x4b3   : > { %9347 = vpow2.f32 %v7154_v11  ;;  %v6830_v0 = vadd.f32 %v9028_v13, %v6817_v22  ;;  %v6867_v22 = vpop.permute.xlu1 %6866 }
 0x4b4   : > { %v11933_v54 = vadd.f32 %v9029_v21, %v11873_v29 }
 0x4b5   : > { %v9344_v30 = vpop.eup %9343  ;;  %v7155_v55 = vmul.f32 -1.442695, %v6830_v0  ;;  %4418 = vrot.lane.b32.xlu1 %v4407_v37, %s9413_s29 }
 0x4b6   : > { %v6844_v46 = vadd.f32 1.0, %v9344_v30 }
 0x4b7   : > { %9349 = vpow2.f32 %v7155_v55  ;;  %v6871_v44 = vpop.permute.xlu1 %6870 }
 0x4b8   : > { %9351 = vrcp.f32 %v6844_v46 }
 0x4b9   : > { %v9346_v17 = vpop.eup %9345 }
 0x4ba   : > { %v6845_v5 = vadd.f32 1.0, %v9346_v17 }
 0x4bc   : > { %9353 = vrcp.f32 %v6845_v5 }
 0x4bd   : > { %v9348_v51 = vpop.eup %9347 }
 0x4be   : > { %v6846_v36 = vadd.f32 1.0, %v9348_v51 }
 0x4c0   : > { %9355 = vrcp.f32 %v6846_v36 }
 0x4c1   : > { %v9350_v9 = vpop.eup %9349 }
 0x4c2   : > { %v11936_v8 = vpop.eup %9351  ;;  %v6847_v32 = vadd.f32 1.0, %v9350_v9 }
 0x4c3   : > { %v6876_v29 = vmul.f32 %v11936_v8, %v6865_v60 }
 0x4c4   : > { %9357 = vrcp.f32 %v6847_v32 }
 0x4c5   : > { %6884 = vrot.lane.b32.xlu0 %v6876_v29, %s9412_s25 }
 0x4c6   : > { %v11940_v61 = vpop.eup %9353 }
 0x4c7   : > { %v6877_v52 = vmul.f32 %v11940_v61, %v6867_v22 }
 0x4c9   : > { %6886 = vrot.lane.b32.xlu1 %v6877_v52, %s9412_s25 }
 0x4ca   : > { %v11944_v31 = vpop.eup %9355 }
 0x4cb   : > { %v6878_v47 = vmul.f32 %v11944_v31, %v6869_v1 }
 0x4cd   : > { %6888 = vrot.lane.b32.xlu0 %v6878_v47, %s9412_s25 }
 0x4ce   : > { %v11948_v7 = vpop.eup %9357 }
 0x4cf   : > { %v6879_v59 = vmul.f32 %v11948_v7, %v6871_v44 }
 0x4d1   : > { %6890 = vrot.lane.b32.xlu1 %v6879_v59, %s9412_s25  ;;  %v4501_v59 = vld [vmem:[%s4500_s21] sm:$0xff] }
 0x507   : > { %v4349_v24 = vpop.permute.xlu0 %4348 }
 0x508   : > { %v4360_v23 = vmul.f32 %v11895_v2, %v4349_v24 }
 0x50b   : > { %v4351_v16 = vpop.permute.xlu1 %4350 }
 0x50c   : > { %v4361_v28 = vmul.f32 %v11900_v63, %v4351_v16  ;;  %v4502_v16 = vld [vmem:[%s4500_s21 + $0x8] sm:$0xff] }
 0x50f   : > { %v4353_v6 = vpop.permute.xlu0 %4352 }
 0x510   : > { %v4362_v48 = vmul.f32 %v11910_v42, %v4353_v6  ;;  %v4503_v6 = vld [vmem:[%s4500_s21 + $0x10] sm:$0xff] }
 0x513   : > { %v4355_v4 = vpop.permute.xlu1 %4354 }
 0x514   : > { %v4363_v12 = vmul.f32 %v11920_v14, %v4355_v4  ;;  %v4504_v4 = vld [vmem:[%s4500_s21 + $0x18] sm:$0xff] }
 0x517   : > { %v4385_v34 = vpop.permute.xlu0 %4384 }
 0x518   : > { %v4396_v40 = vadd.f32 %v4385_v34, %v4360_v23  ;;  %v6973_v34 = vld [vmem:[%s6972_s24] sm:$0xff]  ;;  %v6974_v23 = vld [vmem:[%s6972_s24 + $0x8] sm:$0xff] }
 0x51b   : > { %v4387_v50 = vpop.permute.xlu1 %4386  ;;  %v4413_v15 = vpop.permute.xlu0 %4412 }
 0x51c   : > { %v11954_v53 = vadd.f32 %v4413_v15, %v4396_v40  ;;  %v4397_v3 = vadd.f32 %v4387_v50, %v4361_v28  ;;  %v6975_v40 = vld [vmem:[%s6972_s24 + $0x10] sm:$0xff]  ;;  %v6976_v50 = vld [vmem:[%s6972_s24 + $0x18] sm:$0xff] }
 0x51e   : > { %9359 = vtanh.f32 %v11954_v53 }
 0x51f   : > { %v4415_v49 = vpop.permute.xlu1 %4414  ;;  %v4389_v41 = vpop.permute.xlu0 %4388 }
 0x520   : > { %v11958_v38 = vadd.f32 %v4415_v49, %v4397_v3  ;;  %v4398_v39 = vadd.f32 %v4389_v41, %v4362_v48 }
 0x522   : > { %9361 = vtanh.f32 %v11958_v38 }
 0x523   : > { %v4391_v43 = vpop.permute.xlu1 %4390  ;;  %v4417_v45 = vpop.permute.xlu0 %4416 }
 0x524   : > { %v11962_v20 = vadd.f32 %v4417_v45, %v4398_v39  ;;  %v4399_v58 = vadd.f32 %v4391_v43, %v4363_v12 }
 0x526   : > { %9363 = vtanh.f32 %v11962_v20 }
 0x527   : > { %v4419_v62 = vpop.permute.xlu1 %4418 }
 0x528   : > { %v9360_v26 = vpop.eup %9359  ;;  %v11965_v11 = vadd.f32 %v4419_v62, %v4399_v58 }
 0x529   : > { %4436 = vrot.lane.b32.xlu0 %v9360_v26, %s9413_s29  ;;  %v7129_v26 = vmul.f32 -1.442695, %v11879_v27 }
 0x52a   : > { %9365 = vtanh.f32 %v11965_v11 }
 0x52b   : > { %9367 = vtanh.f32 %v11906_v56 }
 0x52c   : > { %v9362_v13 = vpop.eup %9361  ;;  %9369 = vtanh.f32 %v11916_v35 }
 0x52d   : > { %4438 = vrot.lane.b32.xlu1 %v9362_v13, %s9413_s29  ;;  %9371 = vtanh.f32 %v11926_v18 }
 0x52e   : > { %9373 = vtanh.f32 %v11933_v54 }
 0x530   : > { %v9364_v33 = vpop.eup %9363 }
 0x531   : > { %4440 = vrot.lane.b32.xlu0 %v9364_v33, %s9413_s29  ;;  %v7131_v33 = vmul.f32 -1.442695, %v11882_v10 }
 0x534   : > { %v9366_v21 = vpop.eup %9365 }
 0x535   : > { %v9368_v0 = vpop.eup %9367  ;;  %4442 = vrot.lane.b32.xlu1 %v9366_v21, %s9413_s29 }
 0x536   : > { %v6860_v57 = vmul.f32 %v9368_v0, %v11936_v8  ;;  %v9370_v55 = vpop.eup %9369 }
 0x537   : > { %v6885_v37 = vpop.permute.xlu0 %6884  ;;  %v6861_v46 = vmul.f32 %v9370_v55, %v11940_v61  ;;  %v9372_v51 = vpop.eup %9371 }
 0x538   : > { %v11977_v30 = vadd.f32 %v6885_v37, %v6860_v57  ;;  %v6862_v36 = vmul.f32 %v9372_v51, %v11944_v31  ;;  %v9374_v32 = vpop.eup %9373 }
 0x539   : > { %v6863_v29 = vmul.f32 %v9374_v32, %v11948_v7 }
 0x53a   : > { %9375 = vtanh.f32 %v11977_v30 }
 0x53b   : > { %v6887_v17 = vpop.permute.xlu1 %6886 }
 0x53c   : > { %v11981_v5 = vadd.f32 %v6887_v17, %v6861_v46 }
 0x53e   : > { %9377 = vtanh.f32 %v11981_v5 }
 0x53f   : > { %v6889_v9 = vpop.permute.xlu0 %6888 }
 0x540   : > { %v11985_v60 = vadd.f32 %v6889_v9, %v6862_v36 }
 0x542   : > { %9379 = vtanh.f32 %v11985_v60 }
 0x543   : > { %v6891_v22 = vpop.permute.xlu1 %6890 }
 0x544   : > { %v9376_v52 = vpop.eup %9375  ;;  %v11989_v1 = vadd.f32 %v6891_v22, %v6863_v29 }
 0x545   : > { %6908 = vrot.lane.b32.xlu0 %v9376_v52, %s9413_s29 }
 0x546   : > { %9381 = vtanh.f32 %v11989_v1 }
 0x547   : > { %9383 = vpow2.f32 %v7129_v26 }
 0x548   : > { %v9378_v47 = vpop.eup %9377  ;;  %9385 = vpow2.f32 %v7131_v33 }
 0x549   : > { %6910 = vrot.lane.b32.xlu1 %v9378_v47, %s9413_s29 }
 0x54c   : > { %v9380_v44 = vpop.eup %9379 }
 0x54d   : > { %6912 = vrot.lane.b32.xlu0 %v9380_v44, %s9413_s29 }
 0x550   : > { %v9382_v24 = vpop.eup %9381 }
 0x551   : > { %6914 = vrot.lane.b32.xlu1 %v9382_v24, %s9413_s29  ;;  %4507 = vperm.xlu0 %9317, %v4501_v59  }
 0x555   : > { %4512 = vperm.xlu1 %9318, %v4502_v16   ;;  %4517 = vperm.xlu0 %9317, %v4503_v6  }
 0x559   : > { %4522 = vperm.xlu1 %9318, %v4504_v4   ;;  %6979 = vperm.xlu0 %9317, %v6973_v34  }
 0x55d   : > { %6984 = vperm.xlu1 %9318, %v6974_v23   ;;  %6989 = vperm.xlu0 %9317, %v6975_v40  }
 0x561   : > { %6994 = vperm.xlu1 %9318, %v6976_v50   ;;  %4480 = vrot.lane.b32.xlu0 %v11879_v27, %s9412_s25  ;;  %v9384_v27 = vpop.eup %9383 }
 0x562   : > { %v4317_v55 = vadd.f32 1.0, %v9384_v27 }
 0x565   : > { %4482 = vrot.lane.b32.xlu1 %v11882_v10, %s9412_s25  ;;  %4484 = vrot.lane.b32.xlu0 %v11885_v25, %s9412_s25  ;;  %v9386_v10 = vpop.eup %9385 }
 0x566   : > { %v4319_v51 = vadd.f32 1.0, %v9386_v10  ;;  %v6945_v10 = vsub.f32 1.0, %v11940_v61 }
 0x569   : > { %4486 = vrot.lane.b32.xlu1 %v11888_v19, %s9412_s25  ;;  %6952 = vrot.lane.b32.xlu0 %v11906_v56, %s9412_s25 }
 0x56d   : > { %6954 = vrot.lane.b32.xlu1 %v11916_v35, %s9412_s25 }
 0x59b   : > { %v4437_v15 = vpop.permute.xlu0 %4436 }
 0x59c   : > { %v4448_v28 = vmul.f32 %v11895_v2, %v4437_v15 }
 0x59e   : > { %4456 = vrot.lane.b32.xlu0 %v4448_v28, %s9411_s19 }
 0x59f   : > { %v4439_v3 = vpop.permute.xlu1 %4438 }
 0x5a0   : > { %v4449_v49 = vmul.f32 %v11900_v63, %v4439_v3 }
 0x5a2   : > { %4458 = vrot.lane.b32.xlu1 %v4449_v49, %s9411_s19 }
 0x5a3   : > { %v4441_v41 = vpop.permute.xlu0 %4440 }
 0x5a4   : > { %v4450_v48 = vmul.f32 %v11910_v42, %v4441_v41 }
 0x5a6   : > { %4460 = vrot.lane.b32.xlu0 %v4450_v48, %s9411_s19 }
 0x5a7   : > { %v4443_v39 = vpop.permute.xlu1 %4442 }
 0x5a8   : > { %v4451_v56 = vmul.f32 %v11920_v14, %v4443_v39 }
 0x5aa   : > { %4462 = vrot.lane.b32.xlu1 %v4451_v56, %s9411_s19 }
 0x5b7   : > { %v6909_v35 = vpop.permute.xlu0 %6908 }
 0x5b8   : > { %v6920_v2 = vmul.f32 %v11936_v8, %v6909_v35 }
 0x5ba   : > { %6928 = vrot.lane.b32.xlu0 %v6920_v2, %s9412_s25 }
 0x5bb   : > { %v6911_v43 = vpop.permute.xlu1 %6910 }
 0x5bc   : > { %v6921_v63 = vmul.f32 %v11940_v61, %v6911_v43 }
 0x5be   : > { %6930 = vrot.lane.b32.xlu1 %v6921_v63, %s9412_s25 }
 0x5bf   : > { %v6913_v45 = vpop.permute.xlu0 %6912 }
 0x5c0   : > { %v6922_v42 = vmul.f32 %v11944_v31, %v6913_v45 }
 0x5c2   : > { %6932 = vrot.lane.b32.xlu0 %v6922_v42, %s9412_s25 }
 0x5c3   : > { %v6915_v12 = vpop.permute.xlu1 %6914 }
 0x5c4   : > { %v6923_v14 = vmul.f32 %v11948_v7, %v6915_v12 }
 0x5c6   : > { %6934 = vrot.lane.b32.xlu1 %v6923_v14, %s9412_s25  ;;  %6956 = vrot.lane.b32.xlu0 %v11926_v18, %s9412_s25  ;;  %v7133_v18 = vmul.f32 -1.442695, %v11885_v25 }
 0x5c8   : > { %9387 = vpow2.f32 %v7133_v18  ;;  %v6944_v18 = vsub.f32 1.0, %v11936_v8 }
 0x5ca   : > { %6958 = vrot.lane.b32.xlu1 %v11933_v54, %s9412_s25  ;;  %v7135_v54 = vmul.f32 -1.442695, %v11888_v19 }
 0x5cc   : > { %9389 = vpow2.f32 %v7135_v54 }
 0x5cd   : > { %9391 = vrcp.f32 %v4317_v55 }
 0x5ce   : > { %9393 = vrcp.f32 %v4319_v51 }
 0x5d0   : > { %v12036_v58 = vpop.permute.xlu0 %4507 }
 0x5d2   : > { %v9388_v36 = vpop.eup %9387 }
 0x5d3   : > { %v4321_v25 = vadd.f32 1.0, %v9388_v36 }
 0x5d4   : > { %v12038_v62 = vpop.permute.xlu1 %4512  ;;  %v12041_v13 = vpop.permute.xlu0 %4517 }
 0x5d5   : > { %9395 = vrcp.f32 %v4321_v25 }
 0x5d6   : > { %v9390_v29 = vpop.eup %9389 }
 0x5d7   : > { %v4323_v19 = vadd.f32 1.0, %v9390_v29  ;;  %v9392_v52 = vpop.eup %9391 }
 0x5d8   : > { %v12044_v21 = vpop.permute.xlu1 %4522  ;;  %v12046_v0 = vpop.permute.xlu0 %6979  ;;  %v4472_v44 = vsub.f32 1.0, %v9392_v52 }
 0x5d9   : > { %9397 = vrcp.f32 %v4323_v19  ;;  %v9394_v59 = vpop.eup %9393 }
 0x5da   : > { %v4473_v34 = vsub.f32 1.0, %v9394_v59 }
 0x5dc   : > { %v12049_v57 = vpop.permute.xlu1 %6984  ;;  %v12052_v37 = vpop.permute.xlu0 %6989 }
 0x5df   : > { %v9396_v40 = vpop.eup %9395 }
 0x5e0   : > { %v12054_v46 = vpop.permute.xlu1 %6994  ;;  %v4481_v17 = vpop.permute.xlu0 %4480  ;;  %v4474_v49 = vsub.f32 1.0, %v9396_v40 }
 0x5e1   : > { %v4492_v6 = vmul.f32 %v4481_v17, %v4472_v44 }
 0x5e3   : > { %v9398_v48 = vpop.eup %9397 }
 0x5e4   : > { %v4483_v9 = vpop.permute.xlu1 %4482  ;;  %v4485_v32 = vpop.permute.xlu0 %4484  ;;  %v4475_v43 = vsub.f32 1.0, %v9398_v48 }
 0x5e5   : > { %v4493_v15 = vmul.f32 %v4483_v9, %v4473_v34  ;;  %v4494_v56 = vmul.f32 %v4485_v32, %v4474_v49  ;;  %v4528_v49 = vmul.f32 %v12044_v21, %v11965_v11 }
 0x5e8   : > { %v4487_v22 = vpop.permute.xlu1 %4486  ;;  %v6953_v47 = vpop.permute.xlu0 %6952 }
 0x5e9   : > { %v4495_v42 = vmul.f32 %v4487_v22, %v4475_v43  ;;  %v6964_v27 = vmul.f32 %v6953_v47, %v6944_v18 }
 0x5ec   : > { %v6955_v24 = vpop.permute.xlu1 %6954 }
 0x5ed   : > { %v6965_v36 = vmul.f32 %v6955_v24, %v6945_v10 }
 0x610   : > { %v4457_v16 = vpop.permute.xlu0 %4456 }
 0x611   : > { %v4468_v4 = vmul.f32 %v9392_v52, %v4457_v16 }
 0x613   : > { %v4496_v23 = vadd.f32 %v4492_v6, %v4468_v4 }
 0x614   : > { %v4459_v50 = vpop.permute.xlu1 %4458 }
 0x615   : > { %v4469_v28 = vmul.f32 %v9394_v59, %v4459_v50  ;;  %v4529_v3 = vmul.f32 %v12036_v58, %v4496_v23  ;;  %v6947_v59 = vsub.f32 1.0, %v11948_v7  ;;  %v4526_v50 = vmul.f32 %v12038_v62, %v11958_v38 }
 0x617   : > { %v4497_v41 = vadd.f32 %v4493_v15, %v4469_v28  ;;  %4542 = vrot.lane.b32.xlu0 %v4529_v3, %s9413_s29  ;;  %4534 = vst.msk [vmem:[%s4533_s26] sm:$0xff] %vm2145_vm13, %v4529_v3 }
 0x618   : > { %v4461_v39 = vpop.permute.xlu0 %4460 }
 0x619   : > { %v4470_v35 = vmul.f32 %v9396_v40, %v4461_v39  ;;  %v4530_v2 = vmul.f32 %v12038_v62, %v4497_v41  ;;  %v6997_v62 = vmul.f32 %v12046_v0, %v11977_v30 }
 0x61b   : > { %v4498_v63 = vadd.f32 %v4494_v56, %v4470_v35  ;;  %4544 = vrot.lane.b32.xlu1 %v4530_v2, %s9413_s29  ;;  %4535 = vst.msk [vmem:[%s4533_s26 + $0x8] sm:$0xff] %vm2145_vm13, %v4530_v2 }
 0x61c   : > { %v4463_v45 = vpop.permute.xlu1 %4462 }
 0x61d   : > { %v4471_v12 = vmul.f32 %v9398_v48, %v4463_v45  ;;  %v4531_v14 = vmul.f32 %v12041_v13, %v4498_v63 }
 0x61f   : > { %v4499_v26 = vadd.f32 %v4495_v42, %v4471_v12  ;;  %4546 = vrot.lane.b32.xlu0 %v4531_v14, %s9413_s29  ;;  %4536 = vst.msk [vmem:[%s4533_s26 + $0x10] sm:$0xff] %vm2145_vm13, %v4531_v14 }
 0x621   : > { %v4532_v33 = vmul.f32 %v12044_v21, %v4499_v26 }
 0x623   : > { %4548 = vrot.lane.b32.xlu1 %v4532_v33, %s9413_s29  ;;  %4537 = vst.msk [vmem:[%s4533_s26 + $0x18] sm:$0xff] %vm2145_vm13, %v4532_v33 }
 0x62c   : > { %v6929_v54 = vpop.permute.xlu0 %6928 }
 0x62d   : > { %v6940_v55 = vmul.f32 %v11936_v8, %v6929_v54  ;;  %v6946_v8 = vsub.f32 1.0, %v11944_v31 }
 0x62f   : > { %v6968_v17 = vadd.f32 %v6964_v27, %v6940_v55 }
 0x630   : > { %v6931_v51 = vpop.permute.xlu1 %6930 }
 0x631   : > { %v6941_v9 = vmul.f32 %v11940_v61, %v6931_v51  ;;  %v7001_v25 = vmul.f32 %v12046_v0, %v6968_v17  ;;  %v6999_v0 = vmul.f32 %v12052_v37, %v11985_v60 }
 0x633   : > { %v6969_v32 = vadd.f32 %v6965_v36, %v6941_v9  ;;  %7026 = vrot.lane.b32.xlu0 %v7001_v25, %s9412_s25 }
 0x634   : > { %v6933_v29 = vpop.permute.xlu0 %6932 }
 0x635   : > { %v7002_v19 = vmul.f32 %v12049_v57, %v6969_v32  ;;  %v6942_v47 = vmul.f32 %v11944_v31, %v6933_v29  ;;  %v4525_v31 = vmul.f32 %v12036_v58, %v11954_v53  ;;  %v4527_v53 = vmul.f32 %v12041_v13, %v11962_v20 }
 0x636   : > { %v6998_v20 = vmul.f32 %v12049_v57, %v11981_v5  ;;  %v7000_v5 = vmul.f32 %v12054_v46, %v11989_v1 }
 0x637   : > { %7028 = vrot.lane.b32.xlu1 %v7002_v19, %s9412_s25  ;;  %7009 = vrot.lane.b32.xlu0 %v7001_v25, %s9413_s29 }
 0x638   : > { %v6935_v22 = vpop.permute.xlu1 %6934  ;;  %v6957_v52 = vpop.permute.xlu0 %6956 }
 0x639   : > { %v6966_v44 = vmul.f32 %v6957_v52, %v6946_v8  ;;  %v6943_v16 = vmul.f32 %v11948_v7, %v6935_v22 }
 0x63b   : > { %v6970_v61 = vadd.f32 %v6966_v44, %v6942_v47  ;;  %7011 = vrot.lane.b32.xlu1 %v7002_v19, %s9413_s29 }
 0x63c   : > { %v6959_v24 = vpop.permute.xlu1 %6958 }
 0x63d   : > { %v6967_v6 = vmul.f32 %v6959_v24, %v6947_v59  ;;  %v7003_v4 = vmul.f32 %v12052_v37, %v6970_v61 }
 0x63f   : > { %v6971_v34 = vadd.f32 %v6967_v6, %v6943_v16  ;;  %7030 = vrot.lane.b32.xlu0 %v7003_v4, %s9412_s25 }
 0x641   : > { %v7004_v23 = vmul.f32 %v12054_v46, %v6971_v34 }
 0x643   : > { %7032 = vrot.lane.b32.xlu1 %v7004_v23, %s9412_s25  ;;  %7013 = vrot.lane.b32.xlu0 %v7003_v4, %s9413_s29  ;;  %s7042_s25 = scalar_lea.vmem [#allocation3], %s9502_s20 }
 0x647   : > { %7015 = vrot.lane.b32.xlu1 %v7004_v23, %s9413_s29 }
 0x689   : > { %v4543_v40 = vpop.permute.xlu0 %4542 }
 0x68a   : > { %v4554_v7 = vsel %vm2145_vm13, %v4525_v31, %v4543_v40 }
 0x68b   : > { %4560 = vst.msk [vmem:[%s4558_s27] sm:$0xff] %vm4559_vm14, %v4554_v7 }
 0x68d   : > { %v4545_v15 = vpop.permute.xlu1 %4544 }
 0x68e   : > { %v4555_v28 = vsel %vm2145_vm13, %v4526_v50, %v4545_v15 }
 0x68f   : > { %4561 = vst.msk [vmem:[%s4558_s27 + $0x8] sm:$0xff] %vm4559_vm14, %v4555_v28 }
 0x691   : > { %v4547_v58 = vpop.permute.xlu0 %4546 }
 0x692   : > { %v4556_v3 = vsel %vm2145_vm13, %v4527_v53, %v4547_v58 }
 0x693   : > { %4562 = vst.msk [vmem:[%s4558_s27 + $0x10] sm:$0xff] %vm4559_vm14, %v4556_v3 }
 0x695   : > { %v4549_v41 = vpop.permute.xlu1 %4548 }
 0x696   : > { %v4557_v38 = vsel %vm2145_vm13, %v4528_v49, %v4549_v41 }
 0x697   : > { %4563 = vst.msk [vmem:[%s4558_s27 + $0x18] sm:$0xff] %vm4559_vm14, %v4557_v38 }
 0x6a5   : > { %v7027_v48 = vpop.permute.xlu0 %7026 }
 0x6a6   : > { %v7038_v39 = vsel %vm2145_vm13, %v6997_v62, %v7027_v48 }
 0x6a7   : > { %7043 = vst.msk [vmem:[%s7042_s25] sm:$0xff] %vm4559_vm14, %v7038_v39 }
 0x6a9   : > { %v7029_v11 = vpop.permute.xlu1 %7028  ;;  %v7010_v13 = vpop.permute.xlu0 %7009 }
 0x6aa   : > { %v7039_v21 = vsel %vm2145_vm13, %v6998_v20, %v7029_v11  ;;  %7022 = vst.msk [vmem:[%s7021_s30] sm:$0xff] %vm2145_vm13, %v7010_v13 }
 0x6ab   : > { %7044 = vst.msk [vmem:[%s7042_s25 + $0x8] sm:$0xff] %vm4559_vm14, %v7039_v21 }
 0x6ad   : > { %v7012_v30 = vpop.permute.xlu1 %7011 }
 0x6ae   : > { %7023 = vst.msk [vmem:[%s7021_s30 + $0x8] sm:$0xff] %vm2145_vm13, %v7012_v30 }
 0x6b1   : > { %v7031_v56 = vpop.permute.xlu0 %7030 }
 0x6b2   : > { %v7040_v35 = vsel %vm2145_vm13, %v6999_v0, %v7031_v56 }
 0x6b3   : > { %7045 = vst.msk [vmem:[%s7042_s25 + $0x10] sm:$0xff] %vm4559_vm14, %v7040_v35 }
 0x6b5   : > { %v7033_v57 = vpop.permute.xlu1 %7032  ;;  %v7014_v2 = vpop.permute.xlu0 %7013 }
 0x6b6   : > { %v7041_v43 = vsel %vm2145_vm13, %v7000_v5, %v7033_v57  ;;  %7024 = vst.msk [vmem:[%s7021_s30 + $0x10] sm:$0xff] %vm2145_vm13, %v7014_v2 }
 0x6b7   : > { %7046 = vst.msk [vmem:[%s7042_s25 + $0x18] sm:$0xff] %vm4559_vm14, %v7041_v43 }
 0x6b9   : > { %v7016_v63 = vpop.permute.xlu1 %7015 }
 0x6ba   : > { %7025 = vst.msk [vmem:[%s7021_s30 + $0x18] sm:$0xff] %vm2145_vm13, %v7016_v63 }
 0x6bb PF: > { %s26_s18 = sadd.s32 1, %s9405_s18  }
 0x6bc   : > { %p23_p4 = scmp.ge.s32.totalorder %s26_s18, 6  }
 0x6be   :  { %25 = sbr.rel (!%p23_p4) target bundleno = 1 (0x1), region = 122 }

</bundles_post_ra>
